<compile_context>
chip_gen: v6e
topology: v6e:2x2x1
jax: 0.10.0
libtpu: 0.0.40
codegen_flags: <defaults>
</compile_context>

<pallas_src>
import math

import jax
import jax.numpy as jnp
import numpy as np
from jax import lax
from jax.experimental import pallas as pl
from jax.experimental.pallas import tpu as pltpu


# ----------------------------------------------------------------------------
# Kernel
# ----------------------------------------------------------------------------
def _make_kernel(num_heads, embed_dim, din, batch_block, time_bins):
    H, E = num_heads, embed_dim
    dh = E // H
    Bb, T = batch_block, time_bins

    def to_heads(z):
        # (Bb*T, 2E) head-major columns -> (Bb*H, T, 2*dh)
        z = z.reshape(Bb, T, H, 2 * dh)
        z = jnp.transpose(z, (0, 2, 1, 3))
        return z.reshape(Bb * H, T, 2 * dh)

    def from_heads(z):
        # (Bb*H, T, 2*dh) -> (Bb*T, 2E) head-major columns
        z = z.reshape(Bb, H, T, 2 * dh)
        z = jnp.transpose(z, (0, 2, 1, 3))
        return z.reshape(Bb * T, 2 * E)

    def kernel(x_ref, w_qkv_ref, b_qkv_ref, w_out_ref, b_out_ref, o_ref):
        # x_ref: (Bb, T, 2*Din) bf16, last dim = [re | im]  (lane dense)
        x = x_ref[...].reshape(Bb * T, 2 * din)

        # ---- fused (input_projection ∘ Q/K/V) projection: ONE real matmul --
        # columns: [Q_hm | K_hm | V_hm], each 2E wide, head-major inside,
        # 1/sqrt(dh) already folded into the Q columns + bias.
        qkv = jnp.dot(x, w_qkv_ref[...],
                      preferred_element_type=jnp.float32) + b_qkv_ref[...]

        q = to_heads(qkv[:, 0 * E:2 * E].astype(jnp.bfloat16))
        k = to_heads(qkv[:, 2 * E:4 * E].astype(jnp.bfloat16))
        v = to_heads(qkv[:, 4 * E:6 * E].astype(jnp.bfloat16))

        # ---- head-batched complex attention --------------------------------
        # Re(q . conj(k)) = qr.kr + qi.ki  ==  one contraction over 2*dh lanes
        dn_qk = (((2,), (2,)), ((0,), (0,)))
        s = lax.dot_general(q, k, dn_qk, preferred_element_type=jnp.float32)

        # softmax in f32 (v5e VPU/EUP have no bf16 arithmetic)
        s = s - jnp.max(s, axis=-1, keepdims=True)
        p = jnp.exp(s)
        # TODO(synk): approx reciprocal leaves ~1e-3 row-normalisation error;
        # switch to an exact divide if this ever feeds a tight-tolerance path.
        p = p * pl.reciprocal(jnp.sum(p, axis=-1, keepdims=True), approx=True)
        p16 = p.astype(jnp.bfloat16)

        # PV: one matmul produces [o_re | o_im] per head (width 2*dh)
        dn_pv = (((2,), (1,)), ((0,), (0,)))
        o = lax.dot_general(p16, v, dn_pv, preferred_element_type=jnp.float32)
        attn = from_heads(o)                         # (Bb*T, 2E) head-major

        # ---- fused (attn out-proj ∘ output_projection): ONE real matmul ----
        out = jnp.dot(attn.astype(jnp.bfloat16), w_out_ref[...],
                      preferred_element_type=jnp.float32) + b_out_ref[...]

        o_ref[...] = out.reshape(Bb, T, 2 * din)     # lane-dense (2*Din) store

    return kernel


# ----------------------------------------------------------------------------
# Host-side complex-weight fusion + block-stacked / head-major repacking
# ----------------------------------------------------------------------------
def pack_params(params, num_heads):
    """Produce 4 real tensors:
       w_qkv (2Din, 6E) bf16, b_qkv (1, 6E) f32   -- fused x->QKV, head-major
       w_out (2E, 2Din) bf16, b_out (1, 2Din) f32 -- fused attn->out
    All complex compositions are done in f32 and cast to bf16 once."""
    E = params["wq_r"].shape[0]
    Din = params["win_r"].shape[0]
    H = num_heads
    dh = E // H
    scale = 1.0 / math.sqrt(dh)

    def cmul(ar, ai, br, bi):
        # (Ar + iAi) @ (Br + iBi)
        return ar @ br - ai @ bi, ar @ bi + ai @ br

    # ---- fuse input projection into Q/K/V (no nonlinearity in between) -----
    fused_w, fused_b = {}, {}
    for n in ("q", "k", "v"):
        wr, wi = cmul(params["win_r"], params["win_i"],
                      params["w%s_r" % n], params["w%s_i" % n])
        br, bi = cmul(params["bin_r"], params["bin_i"],
                      params["w%s_r" % n], params["w%s_i" % n])
        fused_w[n] = (wr, wi)
        fused_b[n] = (br + params["b%s_r" % n], bi + params["b%s_i" % n])

    # ---- fuse attention out-projection with final output projection --------
    wcr, wci = cmul(params["wao_r"], params["wao_i"],
                    params["wout_r"], params["wout_i"])
    bcr, bci = cmul(params["bao_r"], params["bao_i"],
                    params["wout_r"], params["wout_i"])
    bcr = bcr + params["bout_r"]
    bci = bci + params["bout_i"]

    # standard [re(E) | im(E)] -> head-major [h0_re | h0_im | h1_re | ...]
    perm = np.concatenate(
        [np.concatenate([np.arange(h * dh, (h + 1) * dh),
                         E + np.arange(h * dh, (h + 1) * dh)])
         for h in range(H)])

    def block_stack(wr, wi):
        # [a_r | a_i] @ [[Wr, Wi], [-Wi, Wr]] = [y_r | y_i]
        top = jnp.concatenate([wr, wi], axis=1)
        bot = jnp.concatenate([-wi, wr], axis=1)
        return jnp.concatenate([top, bot], axis=0)

    def pack_bias(br, bi):
        return jnp.concatenate([br, bi], axis=1)

    w_blocks, b_blocks = [], []
    for n, s in (("q", scale), ("k", 1.0), ("v", 1.0)):  # fold score scale into Q
        wr, wi = fused_w[n]
        br, bi = fused_b[n]
        w_blocks.append(block_stack(wr, wi)[:, perm] * s)
        b_blocks.append(pack_bias(br, bi)[:, perm] * s)

    w_qkv = jnp.concatenate(w_blocks, axis=1).astype(jnp.bfloat16)   # (2Din, 6E)
    b_qkv = jnp.concatenate(b_blocks, axis=1).astype(jnp.float32)    # (1, 6E)

    # rows permuted to accept the head-major attention output directly
    w_out = block_stack(wcr, wci)[perm, :].astype(jnp.bfloat16)      # (2E, 2Din)
    b_out = pack_bias(bcr, bci).astype(jnp.float32)                  # (1, 2Din)

    return w_qkv, b_qkv, w_out, b_out


def _pick_batch_block(B, T):
    """Whole batch in one grid step by default (per-step overhead dominates at
    small row counts).  Only split 2-way for megacore on 2-TC chips (v7x) when
    each core would still see >= ~256 rows of Bb*T."""
    try:
        kind = jax.devices()[0].device_kind.lower()
    except Exception:
        kind = ""
    two_core = ("v7" in kind) or ("tpu7" in kind) or ("7x" in kind)
    if two_core and B % 2 == 0 and (B // 2) * T >= 256:
        return B // 2
    return B


# ----------------------------------------------------------------------------
# Public wrapper
# ----------------------------------------------------------------------------
def multi_attn_block(x, params, num_heads, batch_block=None):
    """x: complex64 (B, C, F, T). Returns complex64 (B, C, F, T)."""
    B, C, F, T = x.shape
    Din = C * F
    E = params["wq_r"].shape[0]
    assert E % num_heads == 0

    if batch_block is None:
        batch_block = _pick_batch_block(B, T)
    assert B % batch_block == 0
    n_blocks = B // batch_block

    x_flat = jnp.transpose(x, (0, 3, 1, 2)).reshape(B, T, Din)
    # lane-dense packed re/im input (last dim 2*Din); bf16 MXU operands
    x_packed = jnp.concatenate(
        [jnp.real(x_flat), jnp.imag(x_flat)], axis=-1).astype(jnp.bfloat16)

    weights = list(pack_params(params, num_heads))   # w_qkv, b_qkv, w_out, b_out

    x_spec = pl.BlockSpec((batch_block, T, 2 * Din), lambda b: (b, 0, 0))
    w_specs = [pl.BlockSpec(w.shape, lambda b: (0, 0)) for w in weights]

    out = pl.pallas_call(
        _make_kernel(num_heads, E, Din, batch_block, T),
        grid=(n_blocks,),
        in_specs=[x_spec] + w_specs,
        out_specs=x_spec,
        out_shape=jax.ShapeDtypeStruct((B, T, 2 * Din), jnp.float32),
        compiler_params=pltpu.CompilerParams(dimension_semantics=("parallel",)),
    )(x_packed, *weights)

    out_c = (out[..., :Din] + 1j * out[..., Din:]).astype(jnp.complex64)   # (B,T,Din)
    return out_c.reshape(B, T, C, F).transpose(0, 2, 3, 1)                 # (B,C,F,T)


# ----------------------------------------------------------------------------
# Parameter init + pure-numpy complex reference
# ----------------------------------------------------------------------------
def _linear_params(key, fan_in, fan_out):
    k1, k2, k3, k4 = jax.random.split(key, 4)
    s = 1.0 / math.sqrt(fan_in)
    wr = jax.random.uniform(k1, (fan_in, fan_out), jnp.float32, -s, s)
    wi = jax.random.uniform(k2, (fan_in, fan_out), jnp.float32, -s, s)
    br = jax.random.uniform(k3, (1, fan_out), jnp.float32, -s, s)
    bi = jax.random.uniform(k4, (1, fan_out), jnp.float32, -s, s)
    return wr, wi, br, bi


def init_params(key, din, embed_dim):
    ks = jax.random.split(key, 6)
    p = {}
    p["win_r"], p["win_i"], p["bin_r"], p["bin_i"] = _linear_params(ks[0], din, embed_dim)
    p["wq_r"], p["wq_i"], p["bq_r"], p["bq_i"] = _linear_params(ks[1], embed_dim, embed_dim)
    p["wk_r"], p["wk_i"], p["bk_r"], p["bk_i"] = _linear_params(ks[2], embed_dim, embed_dim)
    p["wv_r"], p["wv_i"], p["bv_r"], p["bv_i"] = _linear_params(ks[3], embed_dim, embed_dim)
    p["wao_r"], p["wao_i"], p["bao_r"], p["bao_i"] = _linear_params(ks[4], embed_dim, embed_dim)
    p["wout_r"], p["wout_i"], p["bout_r"], p["bout_i"] = _linear_params(ks[5], embed_dim, din)
    return p


def reference(x, params, num_heads):
    """Pure numpy complex reference (unfused weights) for validation."""
    x = np.asarray(x)
    pn = {k: np.asarray(v) for k, v in params.items()}
    B, C, F, T = x.shape
    Din = C * F
    E = pn["win_r"].shape[1]
    dh = E // num_heads

    def c(name):
        return (pn[name + "_r"] + 1j * pn[name + "_i"]).astype(np.complex64)

    xf = np.transpose(x, (0, 3, 1, 2)).reshape(B, T, Din)
    e = xf @ c("win") + c("bin")
    q = e @ c("wq") + c("bq")
    k = e @ c("wk") + c("bk")
    v = e @ c("wv") + c("bv")
    qh = q.reshape(B, T, num_heads, dh).transpose(0, 2, 1, 3)
    kh = k.reshape(B, T, num_heads, dh).transpose(0, 2, 1, 3)
    vh = v.reshape(B, T, num_heads, dh).transpose(0, 2, 1, 3)
    s = np.real(np.einsum('bhtd,bhsd->bhts', qh, np.conj(kh))) / math.sqrt(dh)
    s = s - s.max(-1, keepdims=True)
    a = np.exp(s)
    a = a / a.sum(-1, keepdims=True)
    o = np.einsum('bhts,bhsd->bhtd', a.astype(np.complex64), vh)
    o = o.transpose(0, 2, 1, 3).reshape(B, T, E)
    o = o @ c("wao") + c("bao")
    o = o @ c("wout") + c("bout")
    return o.reshape(B, T, C, F).transpose(0, 2, 3, 1)


if __name__ == "__main__":
    B, C, F, T = 2, 4, 16, 16            # (batch, channels, freqs, time_bins)
    embed_dim, num_heads = 128, 8        # module defaults; Din = C*F = 64

    key = jax.random.PRNGKey(0)
    kxr, kxi, kp = jax.random.split(key, 3)
    x = (jax.random.normal(kxr, (B, C, F, T), jnp.float32)
         + 1j * jax.random.normal(kxi, (B, C, F, T), jnp.float32)).astype(jnp.complex64)

    params = init_params(kp, C * F, embed_dim)

    out = multi_attn_block(x, params, num_heads)
    out = jax.block_until_ready(out)

    assert out.shape == (B, C, F, T) and out.dtype == jnp.complex64

    ref = reference(x, params, num_heads)
    # Tolerance accounts for bf16 MXU operands (f32 accumulation), the single
    # bf16 cast of the fused weights, and the approximate softmax reciprocal;
    # structural errors would be O(1).
    np.testing.assert_allclose(np.asarray(out), ref, rtol=5e-2, atol=5e-2)

    print("KERNEL_OK")
</pallas_src>

<mosaic_0001>
module attributes {stable_mosaic.version = 11 : i64} {
  func.func @kernel(%arg0: i32, %arg1: memref<2x16x128xbf16, #tpu.memory_space<vmem>>, %arg2: memref<128x768xbf16, #tpu.memory_space<vmem>>, %arg3: memref<1x768xf32, #tpu.memory_space<vmem>>, %arg4: memref<256x128xbf16, #tpu.memory_space<vmem>>, %arg5: memref<1x128xf32, #tpu.memory_space<vmem>>, %arg6: memref<2x16x128xf32, #tpu.memory_space<vmem>>) attributes {dimension_semantics = [#tpu.dimension_semantics<parallel>], iteration_bounds = array<i64: 1>, scalar_prefetch = 0 : i64, scratch_operands = 0 : i64, tpu.core_type = #tpu.core_type<tc>, window_params = [{transform_indices = @transform_0, window_bounds = array<i64: 2, 16, 128>}, {pipeline_mode = #tpu.pipeline_mode<synchronous>, transform_indices = @transform_1, window_bounds = array<i64: 128, 768>}, {pipeline_mode = #tpu.pipeline_mode<synchronous>, transform_indices = @transform_2, window_bounds = array<i64: 1, 768>}, {pipeline_mode = #tpu.pipeline_mode<synchronous>, transform_indices = @transform_3, window_bounds = array<i64: 256, 128>}, {pipeline_mode = #tpu.pipeline_mode<synchronous>, transform_indices = @transform_4, window_bounds = array<i64: 1, 128>}, {transform_indices = @transform_5, window_bounds = array<i64: 2, 16, 128>}]} {
    %c0 = arith.constant 0 : index
    %c0_0 = arith.constant 0 : index
    %c0_1 = arith.constant 0 : index
    %0 = vector.load %arg1[%c0, %c0_0, %c0_1] : memref<2x16x128xbf16, #tpu.memory_space<vmem>>, vector<2x16x128xbf16>
    %1 = vector.shape_cast %0 : vector<2x16x128xbf16> to vector<32x128xbf16>
    %c0_2 = arith.constant 0 : index
    %c0_3 = arith.constant 0 : index
    %2 = vector.load %arg2[%c0_2, %c0_3] : memref<128x768xbf16, #tpu.memory_space<vmem>>, vector<128x768xbf16>
    %cst = arith.constant dense<0.000000e+00> : vector<32x768xf32>
    %3 = tpu.matmul %1, %2, %cst {dimension_numbers = #tpu.dot_dimension_numbers<[1], [0], [0], [1], [0, 0, 1, 1], [], []>} : vector<32x128xbf16>, vector<128x768xbf16>, vector<32x768xf32> -> vector<32x768xf32>
    %c0_4 = arith.constant 0 : index
    %c0_5 = arith.constant 0 : index
    %4 = vector.load %arg3[%c0_4, %c0_5] : memref<1x768xf32, #tpu.memory_space<vmem>>, vector<1x768xf32>
    %5 = vector.broadcast %4 : vector<1x768xf32> to vector<32x768xf32>
    %6 = arith.addf %3, %5 : vector<32x768xf32>
    %7 = vector.extract_strided_slice %6 {offsets = [0, 0], sizes = [32, 256], strides = [1, 1]} : vector<32x768xf32> to vector<32x256xf32>
    %8 = arith.truncf %7 : vector<32x256xf32> to vector<32x256xbf16>
    %9 = vector.shape_cast %8 : vector<32x256xbf16> to vector<2x16x8x32xbf16>
    %10 = tpu.transpose %9, [0, 2, 1, 3] : vector<2x16x8x32xbf16> -> vector<2x8x16x32xbf16>
    %11 = vector.shape_cast %10 : vector<2x8x16x32xbf16> to vector<16x16x32xbf16>
    %12 = vector.extract_strided_slice %6 {offsets = [0, 256], sizes = [32, 256], strides = [1, 1]} : vector<32x768xf32> to vector<32x256xf32>
    %13 = arith.truncf %12 : vector<32x256xf32> to vector<32x256xbf16>
    %14 = vector.shape_cast %13 : vector<32x256xbf16> to vector<2x16x8x32xbf16>
    %15 = tpu.transpose %14, [0, 2, 1, 3] : vector<2x16x8x32xbf16> -> vector<2x8x16x32xbf16>
    %16 = vector.shape_cast %15 : vector<2x8x16x32xbf16> to vector<16x16x32xbf16>
    %17 = vector.extract_strided_slice %6 {offsets = [0, 512], sizes = [32, 256], strides = [1, 1]} : vector<32x768xf32> to vector<32x256xf32>
    %18 = arith.truncf %17 : vector<32x256xf32> to vector<32x256xbf16>
    %19 = vector.shape_cast %18 : vector<32x256xbf16> to vector<2x16x8x32xbf16>
    %20 = tpu.transpose %19, [0, 2, 1, 3] : vector<2x16x8x32xbf16> -> vector<2x8x16x32xbf16>
    %21 = vector.shape_cast %20 : vector<2x8x16x32xbf16> to vector<16x16x32xbf16>
    %cst_6 = arith.constant dense<0.000000e+00> : vector<16x16x16xf32>
    %22 = tpu.matmul %11, %16, %cst_6 {dimension_numbers = #tpu.dot_dimension_numbers<[2], [2], [1], [1], [0, 0, 0, 1, 1, 1], [0], [0]>} : vector<16x16x32xbf16>, vector<16x16x32xbf16>, vector<16x16x16xf32> -> vector<16x16x16xf32>
    %cst_7 = arith.constant dense<0xFF800000> : vector<16x16xf32>
    %23 = vector.multi_reduction <maximumf>, %22, %cst_7 [2] : vector<16x16x16xf32> to vector<16x16xf32>
    %24 = vector.shape_cast %23 : vector<16x16xf32> to vector<16x16x1xf32>
    %25 = vector.broadcast %24 : vector<16x16x1xf32> to vector<16x16x16xf32>
    %26 = arith.subf %22, %25 : vector<16x16x16xf32>
    %27 = math.exp %26 : vector<16x16x16xf32>
    %cst_8 = arith.constant dense<0.000000e+00> : vector<16x16xf32>
    %28 = vector.multi_reduction <add>, %27, %cst_8 [2] : vector<16x16x16xf32> to vector<16x16xf32>
    %29 = vector.shape_cast %28 : vector<16x16xf32> to vector<16x16x1xf32>
    %30 = tpu.reciprocal %29 {approx = true} : vector<16x16x1xf32> -> vector<16x16x1xf32>
    %31 = vector.broadcast %30 : vector<16x16x1xf32> to vector<16x16x16xf32>
    %32 = arith.mulf %27, %31 : vector<16x16x16xf32>
    %33 = arith.truncf %32 : vector<16x16x16xf32> to vector<16x16x16xbf16>
    %cst_9 = arith.constant dense<0.000000e+00> : vector<16x16x32xf32>
    %34 = tpu.matmul %33, %21, %cst_9 {dimension_numbers = #tpu.dot_dimension_numbers<[2], [1], [1], [2], [0, 0, 0, 1, 1, 2], [0], [0]>} : vector<16x16x16xbf16>, vector<16x16x32xbf16>, vector<16x16x32xf32> -> vector<16x16x32xf32>
    %35 = vector.shape_cast %34 : vector<16x16x32xf32> to vector<2x8x16x32xf32>
    %36 = tpu.transpose %35, [0, 2, 1, 3] : vector<2x8x16x32xf32> -> vector<2x16x8x32xf32>
    %37 = vector.shape_cast %36 : vector<2x16x8x32xf32> to vector<32x256xf32>
    %38 = arith.truncf %37 : vector<32x256xf32> to vector<32x256xbf16>
    %c0_10 = arith.constant 0 : index
    %c0_11 = arith.constant 0 : index
    %39 = vector.load %arg4[%c0_10, %c0_11] : memref<256x128xbf16, #tpu.memory_space<vmem>>, vector<256x128xbf16>
    %cst_12 = arith.constant dense<0.000000e+00> : vector<32x128xf32>
    %40 = tpu.matmul %38, %39, %cst_12 {dimension_numbers = #tpu.dot_dimension_numbers<[1], [0], [0], [1], [0, 0, 1, 1], [], []>} : vector<32x256xbf16>, vector<256x128xbf16>, vector<32x128xf32> -> vector<32x128xf32>
    %c0_13 = arith.constant 0 : index
    %c0_14 = arith.constant 0 : index
    %41 = vector.load %arg5[%c0_13, %c0_14] : memref<1x128xf32, #tpu.memory_space<vmem>>, vector<1x128xf32>
    %42 = vector.broadcast %41 : vector<1x128xf32> to vector<32x128xf32>
    %43 = arith.addf %40, %42 : vector<32x128xf32>
    %44 = vector.shape_cast %43 : vector<32x128xf32> to vector<2x16x128xf32>
    %c0_15 = arith.constant 0 : index
    %c0_16 = arith.constant 0 : index
    %c0_17 = arith.constant 0 : index
    %45 = vector.load %arg6[%c0_15, %c0_16, %c0_17] : memref<2x16x128xf32, #tpu.memory_space<vmem>>, vector<2x16x128xf32>
    tpu.vector_store %arg6[%c0_15, %c0_16, %c0_17], %44 {strides = array<i32>} : memref<2x16x128xf32, #tpu.memory_space<vmem>>, vector<2x16x128xf32>,
    return
  }
  func.func @transform_0(%arg0: i32) -> (i32, i32, i32) {
    %c0_i32 = arith.constant 0 : i32
    %c0_i32_0 = arith.constant 0 : i32
    %c0_i32_1 = arith.constant 0 : i32
    return %arg0, %c0_i32, %c0_i32_0 : i32, i32, i32
  }
  func.func @transform_1(%arg0: i32) -> (i32, i32) {
    %c0_i32 = arith.constant 0 : i32
    %c0_i32_0 = arith.constant 0 : i32
    %c0_i32_1 = arith.constant 0 : i32
    return %c0_i32, %c0_i32_0 : i32, i32
  }
  func.func @transform_2(%arg0: i32) -> (i32, i32) {
    %c0_i32 = arith.constant 0 : i32
    %c0_i32_0 = arith.constant 0 : i32
    %c0_i32_1 = arith.constant 0 : i32
    return %c0_i32, %c0_i32_0 : i32, i32
  }
  func.func @transform_3(%arg0: i32) -> (i32, i32) {
    %c0_i32 = arith.constant 0 : i32
    %c0_i32_0 = arith.constant 0 : i32
    %c0_i32_1 = arith.constant 0 : i32
    return %c0_i32, %c0_i32_0 : i32, i32
  }
  func.func @transform_4(%arg0: i32) -> (i32, i32) {
    %c0_i32 = arith.constant 0 : i32
    %c0_i32_0 = arith.constant 0 : i32
    %c0_i32_1 = arith.constant 0 : i32
    return %c0_i32, %c0_i32_0 : i32, i32
  }
  func.func @transform_5(%arg0: i32) -> (i32, i32, i32) {
    %c0_i32 = arith.constant 0 : i32
    %c0_i32_0 = arith.constant 0 : i32
    %c0_i32_1 = arith.constant 0 : i32
    return %arg0, %c0_i32, %c0_i32_0 : i32, i32, i32
  }
}

</mosaic_0001>

<bundles_post_ra>
// kernel: tpu_custom_call.1
= control target key start
LH: loop header
LB: loop body
LE: loop exit
PB: predicated region body
PF: predicated region fallthrough
CT: control target
= control target key end

     0   :  { %10 = vsyncpa [#allocation3], 0  ;;  %s8474_s0 = inlined_call_operand.hbm [shape: bf16[2,16,128], index: 0, kind: input, shape index: {}]   ;;  %s8475_s1 = inlined_call_operand.hbm [shape: bf16[128,768], index: 1, kind: input, shape index: {}]   ;;  %s8476_s2 = inlined_call_operand.hbm [shape: f32[1,768], index: 2, kind: input, shape index: {}]   ;;  %s8477_s3 = inlined_call_operand.hbm [shape: bf16[256,128], index: 3, kind: input, shape index: {}]   ;;  %s8478_s4 = inlined_call_operand.vmem [shape: f32[1,128], index: 4, kind: input, shape index: {}]   ;;  %s8479_s5 = inlined_call_operand.hbm [shape: f32[2,16,128], index: 5, kind: output, shape index: {}]  }
   0x1   :  { %11 = vsyncpa [#allocation6], 0 }
   0x2   :  { %12 = vsyncpa [#allocation9], 0 }
   0x3   :  { %13 = vsyncpa [#allocation4], 0  ;;  %s6740_s18 = smov [#allocation5]  }
   0x4   :  { %s31_s19 = sshll.u32 %s6740_s18, 4  ;;  %s32_s19 = int_to_ptr.vmem [resolvable:$true] %s31_s19 }
   0x5   :  { %s6640_s20 = scalar_lea.vmem %s32_s19, 6144  ;;  %p6645_p1 = scmp.lt.s32.totalorder %s32_s19, %s32_s19 }
   0x6   :  { %p6641_p0 = scmp.ne.s32.totalorder %s32_s19, %s6640_s20  ;;  %p6646_p2 = scmp.lt.s32.totalorder %s6640_s20, %s6640_s20 }
   0x8   :  { %p6647_p3 = por %p6646_p2, %p6645_p1 }
   0xa   :  { %p6648_p4 = pnand %p6647_p3, %p6641_p0 }
   0xc   :  { %6651 = shalt.err (!%p6648_p4)
}
   0xd   :  { %s6741_s21 = smov 384   ;;  %s6742_s22 = smov 24  }
   0xe   :  { %37 = dma.hbm_to_vmem [thread:$0]  %s8475_s1, 6144, %s32_s19, [#allocation6], %s6741_s21, %s6741_s21, %s6742_s22  }
   0xf   :  { %s6743_s25 = smov [#allocation2]  }
  0x10   :  { %s19_s26 = sshll.u32 %s6743_s25, 4  ;;  %s20_s26 = int_to_ptr.vmem [resolvable:$true] %s19_s26 }
  0x11   :  { %s6660_s27 = scalar_lea.vmem %s20_s26, 256  ;;  %p6665_p6 = scmp.lt.s32.totalorder %s20_s26, %s20_s26 }
  0x12   :  { %p6661_p5 = scmp.ne.s32.totalorder %s20_s26, %s6660_s27  ;;  %p6666_p7 = scmp.lt.s32.totalorder %s6660_s27, %s6660_s27 }
  0x14   :  { %p6667_p8 = por %p6666_p7, %p6665_p6 }
  0x16   :  { %p6668_p9 = pnand %p6667_p8, %p6661_p5 }
  0x18   :  { %6671 = shalt.err (!%p6668_p9)
}
  0x19   :  { %s6744_s28 = smov 64   ;;  %s6745_s29 = smov 4  }
  0x1a   :  { %25 = dma.hbm_to_vmem [thread:$0]  %s8474_s0, 256, %s20_s26, [#allocation3], %s6744_s28, %s6744_s28, %s6745_s29  }
  0x1b   :  { %s6746_s7 = smov [#allocation7]   ;;  %s6747_s8 = smov [#allocation8]  }
  0x1c   :  { %s44_s1 = sshll.u32 %s6746_s7, 4  ;;  %s53_s9 = sshll.u32 %s6747_s8, 4  ;;  %s45_s1 = int_to_ptr.vmem [resolvable:$true] %s44_s1  ;;  %s54_s9 = int_to_ptr.vmem [resolvable:$true] %s53_s9 }
  0x1d   :  { %s6680_s10 = scalar_lea.vmem %s45_s1, 96  ;;  %p6685_p11 = scmp.lt.s32.totalorder %s45_s1, %s45_s1 }
  0x1e   :  { %p6681_p10 = scmp.ne.s32.totalorder %s45_s1, %s6680_s10  ;;  %p6686_p12 = scmp.lt.s32.totalorder %s6680_s10, %s6680_s10 }
  0x20   :  { %p6687_p13 = por %p6686_p12, %p6685_p11 }
  0x22   :  { %p6688_p0 = pnand %p6687_p13, %p6681_p10 }
  0x24   :  { %6691 = shalt.err (!%p6688_p0)
}
  0x25   :  { %47 = dma.hbm_to_vmem [thread:$0]  %s8476_s2, 96, %s45_s1, [#allocation6]  }
  0x26   :  { %s6700_s13 = scalar_lea.vmem %s54_s9, 2048  ;;  %p6705_p2 = scmp.lt.s32.totalorder %s54_s9, %s54_s9 }
  0x27   :  { %p6701_p1 = scmp.ne.s32.totalorder %s54_s9, %s6700_s13  ;;  %p6706_p3 = scmp.lt.s32.totalorder %s6700_s13, %s6700_s13 }
  0x29   :  { %p6707_p4 = por %p6706_p3, %p6705_p2 }
  0x2b   :  { %p6708_p5 = pnand %p6707_p4, %p6701_p1 }
  0x2d   :  { %6711 = shalt.err (!%p6708_p5)
}
  0x2e   :  { %59 = dma.hbm_to_vmem [thread:$0]  %s8477_s3, 2048, %s54_s9, [#allocation9], %s6744_s28, %s6744_s28, %s6745_s29  }
  0x2f   :  { %6732 = dma.done.wait [#allocation3], 256  }
  0x30   :  { %6733 = vsyncadd [#allocation3], 4294967040 }
  0x31   :  { %6734 = dma.done.wait [#allocation6], 6240  }
  0x32   :  { %6735 = vsyncadd [#allocation6], 4294961056 }
  0x33   :  { %6736 = dma.done.wait [#allocation9], 2048  }
  0x34   :  { %6737 = vsyncadd [#allocation9], 4294965248  ;;  %v6748_v0 = vmov 0   ;;  %v6414_v1 = vld [vmem:[#allocation5 + $0x154] ss:$24 sps:$4 sm:$0xff]   ;;  %v6454_v32 = vld [vmem:[#allocation2 + $0x8] sm:$0xff]   ;;  %v129_v51 = vlaneseq }
  0x35   :  { %443 = vmatprep.mubr.bf16.mxu1 %v6748_v0  ;;  %549 = vmatprep.mubr.bf16.mxu0 %v6748_v0  ;;  %v6416_v2 = vld [vmem:[#allocation5 + $0x150] ss:$24 sps:$4 sm:$0xff]   ;;  %v6417_v3 = vld [vmem:[#allocation5 + $0x124] ss:$24 sps:$4 sm:$0xff]   ;;  %v6419_v4 = vld [vmem:[#allocation5 + $0x120] ss:$24 sps:$4 sm:$0xff]  }
  0x36   :  { %411 = vmatprep.subr.bf16.mxu1 %v6414_v1  ;;  %v6420_v5 = vld [vmem:[#allocation5 + $0xf4] ss:$24 sps:$4 sm:$0xff]   ;;  %v6422_v6 = vld [vmem:[#allocation5 + $0xf0] ss:$24 sps:$4 sm:$0xff]   ;;  %v6423_v7 = vld [vmem:[#allocation5 + $0xc4] ss:$24 sps:$4 sm:$0xff]  }
  0x37   :  { %412 = vmatpush1.bf16.msra.mxu1 %v6416_v2  ;;  %v6425_v8 = vld [vmem:[#allocation5 + $0xc0] ss:$24 sps:$4 sm:$0xff]   ;;  %v6426_v9 = vld [vmem:[#allocation5 + $0x94] ss:$24 sps:$4 sm:$0xff]   ;;  %v6428_v10 = vld [vmem:[#allocation5 + $0x90] ss:$24 sps:$4 sm:$0xff]  }
  0x38   :  { %413 = vmatprep.subr.bf16.mxu1 %v6417_v3  ;;  %v6429_v11 = vld [vmem:[#allocation5 + $0x64] ss:$24 sps:$4 sm:$0xff]   ;;  %v6431_v12 = vld [vmem:[#allocation5 + $0x60] ss:$24 sps:$4 sm:$0xff]   ;;  %v6432_v13 = vld [vmem:[#allocation5 + $0x34] ss:$24 sps:$4 sm:$0xff]  }
  0x39   :  { %v6434_v14 = vld [vmem:[#allocation5 + $0x30] ss:$24 sps:$4 sm:$0xff]   ;;  %v6435_v15 = vld [vmem:[#allocation5 + $0x4] ss:$24 sps:$4 sm:$0xff]   ;;  %v6466_v17 = vld [vmem:[#allocation5 + $0x160] ss:$24 sps:$4 sm:$0xff]  }
  0x3a   :  { %v6464_v16 = vld [vmem:[#allocation5 + $0x164] ss:$24 sps:$4 sm:$0xff]   ;;  %v6467_v18 = vld [vmem:[#allocation5 + $0x134] ss:$24 sps:$4 sm:$0xff]   ;;  %v6437_v19 = vld [vmem:[#allocation5] ss:$24 sps:$4 sm:$0xff]  }
  0x3b   :  { %414 = vmatpush1.bf16.msra.mxu1 %v6419_v4  ;;  %517 = vmatprep.subr.bf16.mxu0 %v6464_v16  ;;  %v6469_v20 = vld [vmem:[#allocation5 + $0x130] ss:$24 sps:$4 sm:$0xff]   ;;  %v6441_v21 = vld [vmem:[#allocation5 + $0x15c] ss:$24 sps:$4 sm:$0xff]   ;;  %v6444_v25 = vld [vmem:[#allocation5 + $0x12c] ss:$24 sps:$4 sm:$0xff]  }
  0x3c   :  { %415 = vmatprep.subr.bf16.mxu1 %v6420_v5  ;;  %518 = vmatpush1.bf16.msra.mxu0 %v6466_v17  ;;  %v6470_v22 = vld [vmem:[#allocation5 + $0x104] ss:$24 sps:$4 sm:$0xff]   ;;  %v6806_v23 = vld [vmem:[#allocation2] sm:$0xff]   ;;  %v6472_v26 = vld [vmem:[#allocation5 + $0x100] ss:$24 sps:$4 sm:$0xff]   ;;  %v6815_v52 = vshrl.u32 %v129_v51, 7 }
  0x3d   :  { %519 = vmatprep.subr.bf16.mxu0 %v6467_v18  ;;  %v6439_v24 = vld [vmem:[#allocation5 + $0x158] ss:$24 sps:$4 sm:$0xff]   ;;  %v6473_v27 = vld [vmem:[#allocation5 + $0xd4] ss:$24 sps:$4 sm:$0xff]   ;;  %v6442_v28 = vld [vmem:[#allocation5 + $0x128] ss:$24 sps:$4 sm:$0xff]  }
  0x3e   :  { %v6447_v29 = vld [vmem:[#allocation5 + $0xfc] ss:$24 sps:$4 sm:$0xff]   ;;  %v6475_v30 = vld [vmem:[#allocation5 + $0xd0] ss:$24 sps:$4 sm:$0xff]   ;;  %v6450_v34 = vld [vmem:[#allocation5 + $0xcc] ss:$24 sps:$4 sm:$0xff]  }
  0x3f   :  { %416 = vmatpush1.bf16.msra.mxu1 %v6422_v6  ;;  %v6476_v31 = vld [vmem:[#allocation5 + $0xa4] ss:$24 sps:$4 sm:$0xff]   ;;  %v6445_v33 = vld [vmem:[#allocation5 + $0xf8] ss:$24 sps:$4 sm:$0xff]   ;;  %v6479_v36 = vld [vmem:[#allocation5 + $0x74] ss:$24 sps:$4 sm:$0xff]  }
  0x40   :  { %417 = vmatprep.subr.bf16.mxu1 %v6423_v7  ;;  %520 = vmatpush1.bf16.msra.mxu0 %v6469_v20  ;;  %v6478_v35 = vld [vmem:[#allocation5 + $0xa0] ss:$24 sps:$4 sm:$0xff]   ;;  %v6453_v38 = vld [vmem:[#allocation5 + $0x9c] ss:$24 sps:$4 sm:$0xff]   ;;  %v6481_v39 = vld [vmem:[#allocation5 + $0x70] ss:$24 sps:$4 sm:$0xff]  }
  0x41   :  { %521 = vmatprep.subr.bf16.mxu0 %v6470_v22  ;;  %v6448_v37 = vld [vmem:[#allocation5 + $0xc8] ss:$24 sps:$4 sm:$0xff]   ;;  %v6451_v40 = vld [vmem:[#allocation5 + $0x98] ss:$24 sps:$4 sm:$0xff]   ;;  %v6457_v41 = vld [vmem:[#allocation5 + $0x6c] ss:$24 sps:$4 sm:$0xff]  }
  0x42   :  { %v6455_v42 = vld [vmem:[#allocation5 + $0x68] ss:$24 sps:$4 sm:$0xff]   ;;  %v6460_v43 = vld [vmem:[#allocation5 + $0x3c] ss:$24 sps:$4 sm:$0xff]   ;;  %v6458_v44 = vld [vmem:[#allocation5 + $0x38] ss:$24 sps:$4 sm:$0xff]  }
  0x43   :  { %418 = vmatpush1.bf16.msra.mxu1 %v6425_v8  ;;  %v6463_v45 = vld [vmem:[#allocation5 + $0xc] ss:$24 sps:$4 sm:$0xff]   ;;  %v6461_v46 = vld [vmem:[#allocation5 + $0x8] ss:$24 sps:$4 sm:$0xff]   ;;  %v131_v53 = vsub.s32 0, %v6815_v52  ;;  %s6749_s2 = smov 96  }
  0x44   :  { %419 = vmatprep.subr.bf16.mxu1 %v6426_v9  ;;  %522 = vmatpush1.bf16.msra.mxu0 %v6472_v26  ;;  %v6482_v47 = vld [vmem:[#allocation5 + $0x44] ss:$24 sps:$4 sm:$0xff]   ;;  %v6484_v48 = vld [vmem:[#allocation5 + $0x40] ss:$24 sps:$4 sm:$0xff]   ;;  %v6485_v49 = vld [vmem:[#allocation5 + $0x14] ss:$24 sps:$4 sm:$0xff]  }
  0x45   :  { %523 = vmatprep.subr.bf16.mxu0 %v6473_v27  ;;  %v6487_v50 = vld [vmem:[#allocation5 + $0x10] ss:$24 sps:$4 sm:$0xff]   ;;  %v6818_v54 = vld [vmem:[#allocation7] sm:$0x3f]  ;;  %v139_v2 = vsub.s32 2, %v6815_v52  ;;  %v143_v6 = vsub.s32 3, %v6815_v52 }
  0x46   :  { %v132_v56 = vrot.slane %v6818_v54, %v131_v53  ;;  %s6750_s3 = smov 32   ;;  %vm6752_vm0 = vmmov 0   ;;  %vm2650_vm1 = vcmask 261120   ;;  %vm3403_vm2 = vcmask 130048   ;;  %s6755_s17 = smov [#allocation10]  }
  0x47   :  { %420 = vmatpush1.bf16.msra.mxu1 %v6428_v10  ;;  %v140_v5 = vrot.slane %v6818_v54, %v139_v2  ;;  %v144_v10 = vrot.slane %v6818_v54, %v143_v6  ;;  %vm5664_vm3 = vcmask 523264   ;;  %vm5669_vm4 = vcmask 785408   ;;  %s5883_s18 = sshll.u32 %s6755_s17, 4  ;;  %s5884_s18 = int_to_ptr.vmem [resolvable:$true] %s5883_s18 }
  0x48   :  { %421 = vmatprep.subr.bf16.mxu1 %v6429_v11  ;;  %524 = vmatpush1.bf16.msra.mxu0 %v6475_v30  ;;  %p6717_p7 = scmp.lt.s32.totalorder %s5884_s18, %s5884_s18 }
  0x49   :  { %525 = vmatprep.subr.bf16.mxu0 %v6476_v31 }
  0x4b   :  { %422 = vmatpush1.bf16.msra.mxu1 %v6431_v12 }
  0x4c   :  { %423 = vmatprep.subr.bf16.mxu1 %v6432_v13  ;;  %526 = vmatpush1.bf16.msra.mxu0 %v6478_v35 }
  0x4d   :  { %527 = vmatprep.subr.bf16.mxu0 %v6479_v36 }
  0x4f   :  { %424 = vmatpush1.bf16.msra.mxu1 %v6434_v14 }
  0x50   :  { %425 = vmatprep.subr.bf16.mxu1 %v6435_v15  ;;  %528 = vmatpush1.bf16.msra.mxu0 %v6481_v39  ;;  %v135_v15 = vsub.s32 1, %v6815_v52  ;;  %v147_v39 = vsub.s32 4, %v6815_v52 }
  0x51   :  { %529 = vmatprep.subr.bf16.mxu0 %v6482_v47 }
  0x52   :  { %v136_v18 = vrot.slane %v6818_v54, %v135_v15 }
  0x53   :  { %426 = vmatpush1.bf16.msra.mxu1 %v6437_v19 }
  0x54   :  { %464 = vmatprep.subr.bf16.mxu1 %v6441_v21  ;;  %530 = vmatpush1.bf16.msra.mxu0 %v6484_v48 }
  0x55   :  { %531 = vmatprep.subr.bf16.mxu0 %v6485_v49 }
  0x56   :  { %444 = vmatmul.mubr.bf16.vlgmr.msra.gmra.mxu1 %v6806_v23 }
  0x57   :  { %465 = vmatpush1.bf16.msra.mxu1 %v6439_v24  ;;  %453 = vmatprep.mubr.bf16.mxu1 %v6748_v0 }
  0x58   :  { %466 = vmatprep.subr.bf16.mxu1 %v6444_v25  ;;  %532 = vmatpush1.bf16.msra.mxu0 %v6487_v50 }
  0x5b   :  { %467 = vmatpush1.bf16.msra.mxu1 %v6442_v28  ;;  %550 = vmatmul.mubr.bf16.vlgmr.msra.gmra.mxu0 %v6806_v23 }
  0x5c   :  { %468 = vmatprep.subr.bf16.mxu1 %v6447_v29  ;;  %559 = vmatprep.mubr.bf16.mxu0 %v6748_v0 }
  0x5e   :  { %454 = vmatmul.mubr.bf16.gmra.mxu1 %v6454_v32 }
  0x5f   :  { %469 = vmatpush1.bf16.msra.mxu1 %v6445_v33  ;;  %496 = vmatprep.mubr.bf16.mxu1 %v6748_v0 }
  0x60   :  { %470 = vmatprep.subr.bf16.mxu1 %v6450_v34 }
  0x63   :  { %471 = vmatpush1.bf16.msra.mxu1 %v6448_v37  ;;  %560 = vmatmul.mubr.bf16.gmra.mxu0 %v6454_v32  ;;  %v8480_v37 = vmov 0.0  }
  0x64   :  { %472 = vmatprep.subr.bf16.mxu1 %v6453_v38  ;;  %6144 = vmatprep.subr.bf16.mxu0 %v8480_v37 }
  0x65   :  { %6146 = vmatprep.mubr.msk.bf16.mxu0 %vm6752_vm0, %v8480_v37 }
  0x67   :  { %473 = vmatpush1.bf16.msra.mxu1 %v6451_v40 }
  0x68   :  { %474 = vmatprep.subr.bf16.mxu1 %v6457_v41  ;;  %v148_v41 = vrot.slane %v6818_v54, %v147_v39 }
  0x6b   :  { %475 = vmatpush1.bf16.msra.mxu1 %v6455_v42 }
  0x6c   :  { %476 = vmatprep.subr.bf16.mxu1 %v6460_v43 }
  0x6f   :  { %477 = vmatpush1.bf16.msra.mxu1 %v6458_v44  ;;  %v151_v44 = vsub.s32 5, %v6815_v52 }
  0x70   :  { %478 = vmatprep.subr.bf16.mxu1 %v6463_v45 }
  0x71   :  { %v152_v47 = vrot.slane %v6818_v54, %v151_v44 }
  0x73   :  { %479 = vmatpush1.bf16.msra.mxu1 %v6461_v46 }
  0x74   :  { %6150 = vmatprep.subr.bf16.mxu1 %v8480_v37 }
  0x76   :  { %497 = vmatmul.mubr.bf16.vlgmr.msra.gmra.mxu1 %v6806_v23 }
  0x77   :  { %506 = vmatprep.mubr.bf16.mxu1 %v6748_v0 }
  0x7e   :  { %507 = vmatmul.mubr.bf16.gmra.mxu1 %v6454_v32 }
  0x7f   :  { %6152 = vmatprep.mubr.msk.bf16.mxu1 %vm6752_vm0, %v8480_v37 }
 0x116   :  { %v445_v55 = vpop.f32.mrf.mxu1 }
 0x117   :  { %v446_v59 = vadd.f32 %v445_v55, %v132_v56 }
 0x118   :  { %v447_v57 = vpop.f32.mrf.mxu1 }
 0x119   :  { %v448_v21 = vadd.f32 %v447_v57, %v136_v18 }
 0x11a   :  { %v449_v58 = vpop.f32.mrf.mxu1 }
 0x11b   :  { %v450_v60 = vadd.f32 %v449_v58, %v132_v56  ;;  %v551_v40 = vpop.f32.mrf.mxu0 }
 0x11c   :  { %v451_v62 = vpop.f32.mrf.mxu1  ;;  %v552_v43 = vadd.f32 %v551_v40, %v148_v41 }
 0x11d   :  { %v6821_v61 = vpack.c.bf16 %v450_v60, %v446_v59  ;;  %v452_v19 = vadd.f32 %v451_v62, %v136_v18  ;;  %v553_v42 = vpop.f32.mrf.mxu0 }
 0x11e   :  { %v455_v63 = vpop.f32.mrf.mxu1  ;;  %v554_v49 = vadd.f32 %v553_v42, %v152_v47 }
 0x11f   :  { %580 = vrot.lane.b32.xlu1 %v6821_v61, %s6744_s28  ;;  %576 = vrot.lane.b32.xlu0 %v6821_v61, %s6749_s2  ;;  %v6849_v22 = vpack.c.bf16 %v452_v19, %v448_v21  ;;  %v456_v24 = vadd.f32 %v455_v63, %v132_v56  ;;  %v555_v45 = vpop.f32.mrf.mxu0  ;;  %v606_v19 = vshrl.u32 %v6821_v61, 16 }
 0x120   :  { %v457_v0 = vpop.f32.mrf.mxu1  ;;  %v556_v46 = vadd.f32 %v555_v45, %v148_v41 }
 0x121   :  { %v458_v35 = vadd.f32 %v457_v0, %v136_v18  ;;  %v557_v50 = vpop.f32.mrf.mxu0 }
 0x122   :  { %v459_v1 = vpop.f32.mrf.mxu1  ;;  %v6901_v48 = vpack.c.bf16 %v556_v46, %v552_v43  ;;  %v558_v51 = vadd.f32 %v557_v50, %v152_v47 }
 0x123   :  { %v460_v25 = vadd.f32 %v459_v1, %v132_v56  ;;  %v561_v54 = vpop.f32.mrf.mxu0 }
 0x124   :  { %v461_v3 = vpop.f32.mrf.mxu1  ;;  %v6909_v53 = vpack.c.bf16 %v558_v51, %v554_v49  ;;  %v562_v56 = vadd.f32 %v561_v54, %v148_v41 }
 0x125   :  { %v6859_v29 = vpack.c.bf16 %v460_v25, %v456_v24  ;;  %v462_v36 = vadd.f32 %v461_v3, %v136_v18  ;;  %v563_v55 = vpop.f32.mrf.mxu0  ;;  %v6753_v3 = vmov 1983009808  }
 0x126   :  { %v564_v62 = vadd.f32 %v563_v55, %v152_v47 }
 0x127   :  { %v6883_v38 = vpack.c.bf16 %v462_v36, %v458_v35  ;;  %v565_v57 = vpop.f32.mrf.mxu0  ;;  %v638_v24 = vshrl.u32 %v6859_v29, 16 }
 0x128   :  { %v566_v58 = vadd.f32 %v565_v57, %v148_v41 }
 0x129   :  { %v567_v60 = vpop.f32.mrf.mxu0  ;;  %v654_v50 = vshrl.u32 %v6883_v38, 16 }
 0x12a   :  { %v6917_v59 = vpack.c.bf16 %v566_v58, %v562_v56  ;;  %v568_v63 = vadd.f32 %v567_v60, %v152_v47 }
 0x12c   :  { %v6923_v0 = vpack.c.bf16 %v568_v63, %v564_v62 }
 0x136   :  { %v498_v4 = vpop.f32.mrf.mxu1 }
 0x137   :  { %v499_v9 = vadd.f32 %v498_v4, %v140_v5  ;;  %v669_v4 = vunpack.c.l.s4 %v6753_v3 }
 0x138   :  { %v500_v7 = vpop.f32.mrf.mxu1 }
 0x139   :  { %v501_v16 = vadd.f32 %v500_v7, %v144_v10 }
 0x13a   :  { %v502_v8 = vpop.f32.mrf.mxu1 }
 0x13b   :  { %v503_v11 = vadd.f32 %v502_v8, %v140_v5 }
 0x13c   :  { %v504_v12 = vpop.f32.mrf.mxu1 }
 0x13d   :  { %v6831_v13 = vpack.c.bf16 %v503_v11, %v499_v9  ;;  %v505_v14 = vadd.f32 %v504_v12, %v144_v10  ;;  %v670_v9 = vunpack.c.0.s8 %v669_v4 }
 0x13e   :  { %v508_v20 = vpop.f32.mrf.mxu1 }
 0x13f   :  { %1272 = vrot.lane.b32.xlu1 %v6831_v13, %s6750_s3  ;;  %1264 = vrot.lane.b32.xlu0 %v6831_v13, %s6749_s2  ;;  %v6838_v17 = vpack.c.bf16 %v505_v14, %v501_v16  ;;  %v509_v27 = vadd.f32 %v508_v20, %v140_v5  ;;  %v6934_v14 = vsub.s32 %v670_v9, %v6815_v52  ;;  %v1294_v36 = vshrl.u32 %v6831_v13, 16 }
 0x140   :  { %v510_v23 = vpop.f32.mrf.mxu1 }
 0x141   :  { %v511_v32 = vadd.f32 %v510_v23, %v144_v10  ;;  %v622_v23 = vshrl.u32 %v6849_v22, 16 }
 0x142   :  { %v512_v26 = vpop.f32.mrf.mxu1 }
 0x143   :  { %1278 = vrot.lane.b32.xlu1 %v6838_v17, %s6749_s2  ;;  %1268 = vrot.lane.b32.xlu0 %v6831_v13, %s6744_s28  ;;  %v513_v28 = vadd.f32 %v512_v26, %v140_v5  ;;  %v6754_v5 = vmov 1934713408  }
 0x144   :  { %v514_v30 = vpop.f32.mrf.mxu1  ;;  %v701_v6 = vunpack.c.l.s4 %v6754_v5 }
 0x145   :  { %v6861_v31 = vpack.c.bf16 %v513_v28, %v509_v27  ;;  %v515_v33 = vadd.f32 %v514_v30, %v144_v10  ;;  %v1310_v27 = vshrl.u32 %v6838_v17, 16 }
 0x146   :  { %v702_v10 = vunpack.c.0.s8 %v701_v6 }
 0x147   :  { %1286 = vrot.lane.b32.xlu1 %v6838_v17, %s6750_s3  ;;  %1282 = vrot.lane.b32.xlu0 %v6838_v17, %s6744_s28  ;;  %v6871_v34 = vpack.c.bf16 %v515_v33, %v511_v32  ;;  %v1326_v55 = vshrl.u32 %v6861_v31, 16 }
 0x148   :  { %v6938_v18 = vsub.s32 %v702_v10, %v6815_v52 }
 0x14b   :  { %590 = vrot.lane.b32.xlu1 %v6849_v22, %s6749_s2  ;;  %584 = vrot.lane.b32.xlu0 %v6821_v61, %s6750_s3 }
 0x14f   :  { %598 = vrot.lane.b32.xlu1 %v6849_v22, %s6750_s3  ;;  %594 = vrot.lane.b32.xlu0 %v6849_v22, %s6744_s28 }
 0x153   :  { %582 = vrot.lane.b32.xlu1 %v6859_v29, %s6744_s28  ;;  %578 = vrot.lane.b32.xlu0 %v6859_v29, %s6749_s2 }
 0x157   :  { %1270 = vrot.lane.b32.xlu1 %v6861_v31, %s6744_s28  ;;  %1266 = vrot.lane.b32.xlu0 %v6861_v31, %s6749_s2 }
 0x15b   :  { %1280 = vrot.lane.b32.xlu1 %v6871_v34, %s6749_s2  ;;  %1274 = vrot.lane.b32.xlu0 %v6861_v31, %s6750_s3 }
 0x15f   :  { %1288 = vrot.lane.b32.xlu1 %v6871_v34, %s6750_s3  ;;  %1284 = vrot.lane.b32.xlu0 %v6871_v34, %s6744_s28 }
 0x163   :  { %592 = vrot.lane.b32.xlu1 %v6883_v38, %s6749_s2  ;;  %586 = vrot.lane.b32.xlu0 %v6859_v29, %s6750_s3 }
 0x167   :  { %600 = vrot.lane.b32.xlu1 %v6883_v38, %s6750_s3  ;;  %596 = vrot.lane.b32.xlu0 %v6883_v38, %s6744_s28 }
 0x16b   :  { %1952 = vrot.lane.b32.xlu1 %v6901_v48, %s6749_s2  ;;  %1956 = vrot.lane.b32.xlu0 %v6901_v48, %s6744_s28 }
 0x16f   :  { %1960 = vrot.lane.b32.xlu1 %v6901_v48, %s6750_s3  ;;  %1970 = vrot.lane.b32.xlu0 %v6909_v53, %s6744_s28 }
 0x173   :  { %1966 = vrot.lane.b32.xlu1 %v6909_v53, %s6749_s2  ;;  %1958 = vrot.lane.b32.xlu0 %v6917_v59, %s6744_s28 }
 0x177   :  { %1974 = vrot.lane.b32.xlu1 %v6909_v53, %s6750_s3 }
 0x17b   :  { %1954 = vrot.lane.b32.xlu1 %v6917_v59, %s6749_s2 }
 0x17f   :  { %1962 = vrot.lane.b32.xlu1 %v6917_v59, %s6750_s3 }
 0x183   :  { %1968 = vrot.lane.b32.xlu1 %v6923_v0, %s6749_s2 }
 0x191   :  { %v6927_v1 = vpop.permute.xlu1 %580  ;;  %v6929_v2 = vpop.permute.xlu0 %576 }
 0x192   :  { %v604_v51 = vpack.i.b16 %v6929_v2, %v6821_v61  ;;  %v607_v56 = vshrl.u32 %v6929_v2, 16  ;;  %v614_v9 = vshrl.u32 %v6927_v1, 16  ;;  %v1342_v2 = vshrl.u32 %v6871_v34, 16 }
 0x1b1   :  { %v1273_v7 = vpop.permute.xlu1 %1272  ;;  %v1265_v8 = vpop.permute.xlu0 %1264 }
 0x1b2   :  { %v1292_v25 = vpack.i.b16 %v1265_v8, %v6831_v13  ;;  %v1295_v26 = vshrl.u32 %v1265_v8, 16  ;;  %v1303_v52 = vshrl.u32 %v1273_v7, 16 }
 0x1b4   :  { %v1296_v47 = vpack.i.b16 %v1295_v26, %v1294_v36 }
 0x1b5   :  { %v1279_v11 = vpop.permute.xlu1 %1278  ;;  %v1269_v12 = vpop.permute.xlu0 %1268 }
 0x1b6   :  { %v1308_v15 = vpack.i.b16 %v1279_v11, %v6838_v17  ;;  %v1311_v16 = vshrl.u32 %v1279_v11, 16  ;;  %v1302_v28 = vshrl.u32 %v1269_v12, 16  ;;  %v1300_v30 = vpack.i.b16 %v1273_v7, %v1269_v12 }
 0x1b7   :  { %v608_v12 = vpack.i.b16 %v607_v56, %v606_v19 }
 0x1b8   :  { %v1312_v39 = vpack.i.b16 %v1311_v16, %v1310_v27  ;;  %v1354_v40 = vcombine.low %v1292_v25, %v1308_v15  ;;  %v1355_v41 = vcombine.high %v1292_v25, %v1308_v15  ;;  %v1304_v49 = vpack.i.b16 %v1303_v52, %v1302_v28 }
 0x1b9   :  { %v1287_v20 = vpop.permute.xlu1 %1286  ;;  %v1283_v21 = vpop.permute.xlu0 %1282 }
 0x1ba   :  { %v1319_v32 = vshrl.u32 %v1287_v20, 16  ;;  %v1316_v33 = vpack.i.b16 %v1287_v20, %v1283_v21  ;;  %v1318_v35 = vshrl.u32 %v1283_v21, 16  ;;  %v1362_v57 = vrot.slane %v1354_v40, %v6934_v14 }
 0x1bb   :  { %v1422_v58 = vcombine.low %v1296_v47, %v1312_v39  ;;  %v1369_v62 = vrot.slane %v1355_v41, %v6934_v14 }
 0x1bc   :  { %v1320_v42 = vpack.i.b16 %v1319_v32, %v1318_v35  ;;  %v1370_v43 = vcombine.low %v1300_v30, %v1316_v33  ;;  %v1371_v44 = vcombine.high %v1300_v30, %v1316_v33 }
 0x1bd   :  { %v591_v45 = vpop.permute.xlu1 %590  ;;  %v585_v46 = vpop.permute.xlu0 %584  ;;  %v1430_v15 = vrot.slane %v1422_v58, %v6934_v14 }
 0x1be   :  { %v620_v17 = vpack.i.b16 %v591_v45, %v6849_v22  ;;  %v1378_v54 = vrot.slane %v1370_v43, %v6934_v14  ;;  %v1385_v13 = vrot.slane %v1371_v44, %v6934_v14  ;;  %v1438_v60 = vcombine.low %v1304_v49, %v1320_v42 }
 0x1bf   :  { %v1423_v22 = vcombine.high %v1296_v47, %v1312_v39  ;;  %v1439_v63 = vcombine.high %v1304_v49, %v1320_v42  ;;  %v623_v3 = vshrl.u32 %v591_v45, 16  ;;  %v615_v8 = vshrl.u32 %v585_v46, 16 }
 0x1c0   :  { %v1386_v61 = vcombine.low %v1362_v57, %v1378_v54  ;;  %v1387_v6 = vcombine.high %v1362_v57, %v1378_v54  ;;  %v666_v7 = vcombine.low %v604_v51, %v620_v17  ;;  %v1402_v10 = vcombine.low %v1369_v62, %v1385_v13 }
 0x1c1   :  { %v599_v4 = vpop.permute.xlu1 %598  ;;  %v595_v5 = vpop.permute.xlu0 %594  ;;  %v1403_v11 = vcombine.high %v1369_v62, %v1385_v13  ;;  %v1446_v16 = vrot.slane %v1438_v60, %v6934_v14  ;;  %v667_v20 = vcombine.high %v604_v51, %v620_v17  ;;  %v1437_v21 = vrot.slane %v1423_v22, %v6934_v14 }
 0x1c2   :  { %v1453_v25 = vrot.slane %v1439_v63, %v6934_v14  ;;  %v624_v26 = vpack.i.b16 %v623_v3, %v622_v23  ;;  %v612_v27 = vpack.i.b16 %v585_v46, %v6927_v1  ;;  %v6968_v32 = vrot.slane %v1386_v61, %v6938_v18 }
 0x1c3   :  { %v6971_v19 = vrot.slane %v1387_v6, %v6938_v18  ;;  %v674_v33 = vrot.slane %v666_v7, %v6934_v14  ;;  %v616_v35 = vpack.i.b16 %v615_v8, %v614_v9  ;;  %v6975_v52 = vrot.slane %v1402_v10, %v6938_v18 }
 0x1c4   :  { %v6978_v23 = vrot.slane %v1403_v11, %v6938_v18  ;;  %v631_v1 = vshrl.u32 %v599_v4, 16  ;;  %v628_v36 = vpack.i.b16 %v599_v4, %v595_v5  ;;  %v1454_v39 = vcombine.low %v1430_v15, %v1446_v16 }
 0x1c5   :  { %v6963_v28 = vpop.permute.xlu1 %582  ;;  %v6965_v30 = vpop.permute.xlu0 %578  ;;  %v1455_v40 = vcombine.high %v1430_v15, %v1446_v16  ;;  %v681_v41 = vrot.slane %v667_v20, %v6934_v14  ;;  %v630_v42 = vshrl.u32 %v595_v5, 16  ;;  %v1470_v43 = vcombine.low %v1437_v21, %v1453_v25 }
 0x1c6   :  { %v1471_v44 = vcombine.high %v1437_v21, %v1453_v25  ;;  %v682_v45 = vcombine.low %v612_v27, %v628_v36  ;;  %v683_v46 = vcombine.high %v612_v27, %v628_v36  ;;  %v1626_v47 = vcombine.low %v6968_v32, %v6971_v19 }
 0x1c7   :  { %v734_v49 = vcombine.low %v608_v12, %v624_v26  ;;  %v735_v17 = vcombine.high %v608_v12, %v624_v26  ;;  %v632_v51 = vpack.i.b16 %v631_v1, %v630_v42  ;;  %v5955_v13 = vcombine.high %v6968_v32, %v6971_v19 }
 0x1c8   :  { %v1642_v56 = vcombine.low %v6975_v52, %v6978_v23  ;;  %v690_v57 = vrot.slane %v682_v45, %v6934_v14  ;;  %v697_v58 = vrot.slane %v683_v46, %v6934_v14  ;;  %v5956_v62 = vcombine.high %v6975_v52, %v6978_v23 }
 0x1c9   :  { %v6983_v54 = vpop.permute.xlu1 %1270  ;;  %v1267_v60 = vpop.permute.xlu0 %1266  ;;  %v750_v22 = vcombine.low %v616_v35, %v632_v51  ;;  %v751_v63 = vcombine.high %v616_v35, %v632_v51  ;;  %v639_v3 = vshrl.u32 %v6965_v30, 16  ;;  %v742_v7 = vrot.slane %v734_v49, %v6934_v14 }
 0x1ca   :  { %v698_v4 = vcombine.low %v674_v33, %v690_v57  ;;  %v699_v5 = vcombine.high %v674_v33, %v690_v57  ;;  %v714_v61 = vcombine.low %v681_v41, %v697_v58  ;;  %v715_v6 = vcombine.high %v681_v41, %v697_v58 }
 0x1cb   :  { %v749_v8 = vrot.slane %v735_v17, %v6934_v14  ;;  %v758_v9 = vrot.slane %v750_v22, %v6934_v14  ;;  %v765_v10 = vrot.slane %v751_v63, %v6934_v14  ;;  %v7003_v32 = vrot.slane %v1454_v39, %v6938_v18 }
 0x1cc   :  { %v706_v11 = vrot.slane %v698_v4, %v6938_v18  ;;  %v713_v12 = vrot.slane %v699_v5, %v6938_v18  ;;  %v722_v15 = vrot.slane %v714_v61, %v6938_v18  ;;  %v729_v16 = vrot.slane %v715_v6, %v6938_v18 }
 0x1cd   :  { %v766_v20 = vcombine.low %v742_v7, %v758_v9  ;;  %v767_v21 = vcombine.high %v742_v7, %v758_v9  ;;  %v782_v25 = vcombine.low %v749_v8, %v765_v10  ;;  %v783_v26 = vcombine.high %v749_v8, %v765_v10  ;;  %v1281_v27 = vpop.permute.xlu1 %1280  ;;  %v1275_v1 = vpop.permute.xlu0 %1274 }
 0x1ce   :  { %v7006_v19 = vrot.slane %v1455_v40, %v6938_v18  ;;  %v938_v33 = vcombine.low %v706_v11, %v713_v12  ;;  %v5947_v35 = vcombine.high %v706_v11, %v713_v12  ;;  %v7009_v36 = vrot.slane %v1470_v43, %v6938_v18 }
 0x1cf   :  { %v7012_v41 = vrot.slane %v1471_v44, %v6938_v18  ;;  %v646_v42 = vshrl.u32 %v6963_v28, 16  ;;  %v1327_v45 = vshrl.u32 %v1267_v60, 16  ;;  %v774_v46 = vrot.slane %v766_v20, %v6938_v18 }
 0x1d0   :  { %v781_v39 = vrot.slane %v767_v21, %v6938_v18  ;;  %v954_v49 = vcombine.low %v722_v15, %v729_v16  ;;  %v5948_v17 = vcombine.high %v722_v15, %v729_v16  ;;  %v790_v40 = vrot.slane %v782_v25, %v6938_v18 }
 0x1d1   :  { %v797_v51 = vrot.slane %v783_v26, %v6938_v18  ;;  %v7021_v43 = vpack.i.b16 %v6965_v30, %v6859_v29  ;;  %v7025_v44 = vpack.i.b16 %v639_v3, %v638_v24  ;;  %v7028_v57 = vrot.slane %v938_v33, %v6934_v14  ;;  %v1289_v30 = vpop.permute.xlu1 %1288 }
 0x1d2   :  { %v7031_v58 = vrot.slane %v5947_v35, %v6934_v14  ;;  %v1334_v22 = vshrl.u32 %v6983_v54, 16  ;;  %v1324_v63 = vpack.i.b16 %v1267_v60, %v6861_v31  ;;  %v7037_v4 = vpack.i.b16 %v1327_v45, %v1326_v55  ;;  %v1285_v55 = vpop.permute.xlu0 %1284 }
 0x1d3   :  { %v7040_v5 = vrot.slane %v1626_v47, %v6934_v14  ;;  %v7043_v29 = vrot.slane %v5955_v13, %v6934_v14  ;;  %v7046_v24 = vrot.slane %v1642_v56, %v6934_v14  ;;  %v7049_v3 = vrot.slane %v954_v49, %v6934_v14 }
 0x1d4   :  { %v7052_v61 = vrot.slane %v5948_v17, %v6934_v14  ;;  %v1006_v60 = vcombine.low %v774_v46, %v781_v39  ;;  %v1340_v31 = vpack.i.b16 %v1281_v27, %v6871_v34  ;;  %v5949_v6 = vcombine.high %v774_v46, %v781_v39 }
 0x1d5   :  { %v1022_v7 = vcombine.low %v790_v40, %v797_v51  ;;  %v5950_v47 = vcombine.high %v790_v40, %v797_v51  ;;  %v1343_v8 = vshrl.u32 %v1281_v27, 16  ;;  %v970_v13 = vcombine.low %v7028_v57, %v7031_v58 }
 0x1d6   :  { %v1335_v9 = vshrl.u32 %v1275_v1, 16  ;;  %v1351_v10 = vshrl.u32 %v1289_v30, 16  ;;  %v1332_v11 = vpack.i.b16 %v1275_v1, %v6983_v54  ;;  %v1348_v12 = vpack.i.b16 %v1289_v30, %v1285_v55 }
 0x1d7   :  { %v1350_v15 = vshrl.u32 %v1285_v55, 16  ;;  %v7064_v16 = vrot.slane %v5956_v62, %v6934_v14  ;;  %v986_v20 = vcombine.low %v7049_v3, %v7052_v61  ;;  %v1490_v25 = vcombine.low %v1324_v63, %v1340_v31 }
 0x1d8   :  { %v1491_v26 = vcombine.high %v1324_v63, %v1340_v31  ;;  %v1344_v27 = vpack.i.b16 %v1343_v8, %v1342_v2  ;;  %v1506_v33 = vcombine.low %v1332_v11, %v1348_v12  ;;  %v1507_v35 = vcombine.high %v1332_v11, %v1348_v12  ;;  %v587_v8 = vpop.permute.xlu0 %586 }
 0x1d9   :  { %v1352_v54 = vpack.i.b16 %v1351_v10, %v1350_v15  ;;  %v7073_v1 = vrot.slane %v1006_v60, %v6934_v14  ;;  %v1336_v52 = vpack.i.b16 %v1335_v9, %v1334_v22  ;;  %v1658_v23 = vcombine.low %v7040_v5, %v7043_v29 }
 0x1da   :  { %v1674_v62 = vcombine.low %v7046_v24, %v7064_v16  ;;  %v7080_v45 = vrot.slane %v5949_v6, %v6934_v14  ;;  %v7083_v46 = vrot.slane %v1022_v7, %v6934_v14  ;;  %v1514_v34 = vrot.slane %v1506_v33, %v6934_v14  ;;  %v593_v7 = vpop.permute.xlu1 %592 }
 0x1db   :  { %v1694_v2 = vcombine.low %v7003_v32, %v7006_v19  ;;  %v1498_v39 = vrot.slane %v1490_v25, %v6934_v14  ;;  %v1521_v49 = vrot.slane %v1507_v35, %v6934_v14  ;;  %v1574_v17 = vcombine.low %v1336_v52, %v1352_v54 }
 0x1dc   :  { %v5957_v40 = vcombine.high %v7003_v32, %v7006_v19  ;;  %v7093_v51 = vrot.slane %v5950_v47, %v6934_v14  ;;  %v1505_v22 = vrot.slane %v1491_v26, %v6934_v14  ;;  %v1558_v63 = vcombine.low %v7037_v4, %v1344_v27 }
 0x1dd   :  { %v1559_v30 = vcombine.high %v7037_v4, %v1344_v27  ;;  %v1522_v60 = vcombine.low %v1498_v39, %v1514_v34  ;;  %v1575_v31 = vcombine.high %v1336_v52, %v1352_v54  ;;  %v7099_v55 = vrot.slane %v1658_v23, %v6938_v18 }
 0x1de   :  { %v7102_v6 = vrot.slane %v1674_v62, %v6938_v18  ;;  %v7105_v32 = vrot.slane %v970_v13, %v6938_v18  ;;  %v7108_v19 = vrot.slane %v1694_v2, %v6934_v14  ;;  %v7111_v47 = vrot.slane %v5957_v40, %v6934_v14 }
 0x1df   :  { %v1710_v4 = vcombine.low %v7009_v36, %v7012_v41  ;;  %v1523_v9 = vcombine.high %v1498_v39, %v1514_v34  ;;  %v1538_v10 = vcombine.low %v1505_v22, %v1521_v49  ;;  %v1539_v11 = vcombine.high %v1505_v22, %v1521_v49 }
 0x1e0   :  { %v7116_v12 = vrot.slane %v1574_v17, %v6934_v14  ;;  %v7119_v15 = vrot.slane %v986_v20, %v6938_v18  ;;  %v1038_v13 = vcombine.low %v7073_v1, %v7080_v45  ;;  %v1054_v25 = vcombine.low %v7083_v46, %v7093_v51  ;;  %v601_v17 = vpop.permute.xlu1 %600 }
 0x1e1   :  { %v7126_v26 = vrot.slane %v1558_v63, %v6934_v14  ;;  %v7129_v27 = vrot.slane %v1559_v30, %v6934_v14  ;;  %v7132_v54 = vrot.slane %v1522_v60, %v6938_v18  ;;  %v7135_v33 = vrot.slane %v1575_v31, %v6934_v14  ;;  %v597_v63 = vpop.permute.xlu0 %596 }
 0x1e2   :  { %v1690_v20 = vcombine.low %v7099_v55, %v7102_v6  ;;  %v7140_v35 = vrot.slane %v1710_v4, %v6934_v14  ;;  %v5958_v52 = vcombine.high %v7009_v36, %v7012_v41  ;;  %v1726_v23 = vcombine.low %v7108_v19, %v7111_v47 }
 0x1e3   :  { %v652_v62 = vpack.i.b16 %v593_v7, %v6883_v38  ;;  %v7148_v34 = vrot.slane %v1523_v9, %v6938_v18  ;;  %v7151_v2 = vrot.slane %v1538_v10, %v6938_v18  ;;  %v7154_v39 = vrot.slane %v1539_v11, %v6938_v18 }
 0x1e4   :  { %v1590_v49 = vcombine.low %v7126_v26, %v7116_v12  ;;  %v1591_v36 = vcombine.high %v7126_v26, %v7116_v12  ;;  %v7161_v41 = vrot.slane %v5958_v52, %v6934_v14  ;;  %v655_v40 = vshrl.u32 %v593_v7, 16 }
 0x1e5   :  { %v802_v22 = vcombine.low %v7021_v43, %v652_v62  ;;  %v1606_v30 = vcombine.low %v7129_v27, %v7135_v33  ;;  %v1607_v60 = vcombine.high %v7129_v27, %v7135_v33  ;;  %v7169_v31 = vrot.slane %v1726_v23, %v6938_v18 }
 0x1e6   :  { %v647_v4 = vshrl.u32 %v587_v8, 16  ;;  %v1742_v9 = vcombine.low %v7140_v35, %v7161_v41  ;;  %v656_v10 = vpack.i.b16 %v655_v40, %v654_v50  ;;  %v803_v7 = vcombine.high %v7021_v43, %v652_v62 }
 0x1e7   :  { %v663_v11 = vshrl.u32 %v601_v17, 16  ;;  %v644_v26 = vpack.i.b16 %v587_v8, %v6963_v28  ;;  %v660_v52 = vpack.i.b16 %v601_v17, %v597_v63  ;;  %v662_v27 = vshrl.u32 %v597_v63, 16 }
 0x1e8   :  { %v7180_v33 = vrot.slane %v1742_v9, %v6938_v18  ;;  %v810_v23 = vrot.slane %v802_v22, %v6934_v14  ;;  %v870_v21 = vcombine.low %v7025_v44, %v656_v10  ;;  %v1901_v56 = vshrl.u32 %v1690_v20, 16 }
 0x1e9   :  { %v648_v38 = vpack.i.b16 %v647_v4, %v646_v42  ;;  %v664_v50 = vpack.i.b16 %v663_v11, %v662_v27  ;;  %v818_v43 = vcombine.low %v644_v26, %v660_v52  ;;  %v819_v62 = vcombine.high %v644_v26, %v660_v52 }
 0x1ea   :  { %v1758_v40 = vcombine.low %v7169_v31, %v7180_v33  ;;  %v817_v8 = vrot.slane %v803_v7, %v6934_v14  ;;  %v871_v17 = vcombine.high %v7025_v44, %v656_v10  ;;  %v7191_v63 = vrot.slane %v1038_v13, %v6938_v18 }
 0x1eb   :  { %v826_v22 = vrot.slane %v818_v43, %v6934_v14  ;;  %v833_v9 = vrot.slane %v819_v62, %v6934_v14  ;;  %v886_v12 = vcombine.low %v648_v38, %v664_v50  ;;  %v887_v28 = vcombine.high %v648_v38, %v664_v50 }
 0x1ec   :  { %v1900_v42 = vpack.i.b16 %v1758_v40, %v1690_v20  ;;  %v878_v4 = vrot.slane %v870_v21, %v6934_v14  ;;  %v1902_v11 = vshrl.u32 %v1758_v40, 16  ;;  %v7197_v26 = vrot.slane %v1054_v25, %v6938_v18 }
 0x1ed   :  { %v834_v52 = vcombine.low %v810_v23, %v826_v22  ;;  %v835_v7 = vcombine.high %v810_v23, %v826_v22  ;;  %v850_v27 = vcombine.low %v817_v8, %v833_v9  ;;  %v851_v44 = vcombine.high %v817_v8, %v833_v9 }
 0x1ee   :  { %v2655_v13 = vsel %vm2650_vm1, %v1900_v42, 0  ;;  %v1903_v10 = vpack.i.b16 %v1902_v11, %v1901_v56  ;;  %v894_v43 = vrot.slane %v886_v12, %v6934_v14  ;;  %v901_v62 = vrot.slane %v887_v28, %v6934_v14 }
 0x1ef   :  { %v7203_v38 = vrot.slane %v1590_v49, %v6938_v18  ;;  %6145 = vmatpush3.bf16.xpose.msra.mxu0 %v2655_v13  ;;  %v885_v21 = vrot.slane %v871_v17, %v6934_v14  ;;  %v842_v25 = vrot.slane %v834_v52, %v6938_v18  ;;  %v849_v20 = vrot.slane %v835_v7, %v6938_v18 }
 0x1f0   :  { %v2702_v23 = vsel %vm2650_vm1, %v1903_v10, 0  ;;  %v902_v50 = vcombine.low %v878_v4, %v894_v43  ;;  %v903_v40 = vcombine.high %v878_v4, %v894_v43  ;;  %v1070_v56 = vcombine.low %v7191_v63, %v7197_v26  ;;  %6168 = vmatprep.subr.bf16.mxu0 %v8480_v37 }
 0x1f1   :  { %v7213_v12 = vrot.slane %v1591_v36, %v6938_v18  ;;  %v7216_v49 = vrot.slane %v1606_v30, %v6938_v18  ;;  %6151 = vmatpush3.bf16.xpose.msra.mxu1 %v2702_v23  ;;  %v918_v8 = vcombine.low %v885_v21, %v901_v62  ;;  %v919_v17 = vcombine.high %v885_v21, %v901_v62 }
 0x1f2   :  { %v7219_v22 = vrot.slane %v1607_v60, %v6938_v18  ;;  %v858_v9 = vrot.slane %v850_v27, %v6938_v18  ;;  %v865_v28 = vrot.slane %v851_v44, %v6938_v18  ;;  %v1002_v42 = vcombine.low %v7105_v32, %v7119_v15  ;;  %6156 = vmatprep.subr.bf16.mxu1 %v8480_v37 }
 0x1f3   :  { %v5959_v36 = vcombine.high %v7132_v54, %v7148_v34  ;;  %v1778_v30 = vcombine.low %v7151_v2, %v7154_v39  ;;  %v1074_v4 = vcombine.low %v842_v25, %v849_v20  ;;  %v1659_v60 = vcombine.high %v7040_v5, %v7043_v29 }
 0x1f4   :  { %v5960_v11 = vcombine.high %v7151_v2, %v7154_v39  ;;  %v910_v52 = vrot.slane %v902_v50, %v6938_v18  ;;  %v917_v7 = vrot.slane %v903_v40, %v6938_v18  ;;  %v1212_v27 = vpack.i.b16 %v1070_v56, %v1002_v42 }
 0x1f5   :  { %v1830_v44 = vcombine.low %v7203_v38, %v7213_v12  ;;  %v5961_v13 = vcombine.high %v7203_v38, %v7213_v12  ;;  %v926_v10 = vrot.slane %v918_v8, %v6938_v18  ;;  %v933_v43 = vrot.slane %v919_v17, %v6938_v18 }
 0x1f6   :  { %v5951_v62 = vcombine.high %v842_v25, %v849_v20  ;;  %v1090_v21 = vcombine.low %v858_v9, %v865_v28  ;;  %6147 = vmatmul.mubr.msk.bf16.vlgmr.msra.gmra.mxu0 %vm2650_vm1, %v1212_v27  ;;  %v7248_v23 = vrot.slane %v1074_v4, %v6934_v14  ;;  %v5952_v50 = vcombine.high %v858_v9, %v865_v28 }
 0x1f7   :  { %v1673_v40 = vrot.slane %v1659_v60, %v6938_v18  ;;  %v1675_v8 = vcombine.high %v7046_v24, %v7064_v16  ;;  %6170 = vmatprep.mubr.msk.bf16.mxu0 %vm6752_vm0, %v8480_v37  ;;  %v1142_v17 = vcombine.low %v910_v52, %v917_v7  ;;  %v5953_v5 = vcombine.high %v910_v52, %v917_v7 }
 0x1f8   :  { %v1727_v25 = vcombine.high %v7108_v19, %v7111_v47  ;;  %v1743_v20 = vcombine.high %v7140_v35, %v7161_v41  ;;  %v1158_v27 = vcombine.low %v926_v10, %v933_v43  ;;  %v5954_v4 = vcombine.high %v926_v10, %v933_v43 }
 0x1f9   :  { %v1689_v9 = vrot.slane %v1675_v8, %v6938_v18  ;;  %v1213_v28 = vshrl.u32 %v1002_v42, 16  ;;  %v1214_v16 = vshrl.u32 %v1070_v56, 16  ;;  %v1691_v29 = vcombine.high %v7099_v55, %v7102_v6 }
 0x1fa   :  { %v1741_v60 = vrot.slane %v1727_v25, %v6938_v18  ;;  %v1757_v24 = vrot.slane %v1743_v20, %v6938_v18  ;;  %v1759_v19 = vcombine.high %v7169_v31, %v7180_v33  ;;  %v8486_v47 = vcombine.high %v7028_v57, %v7031_v58 }
 0x1fb   :  { %v7264_v52 = vcombine.low %v1673_v40, %v1689_v9  ;;  %v8487_v41 = vcombine.high %v7049_v3, %v7052_v61  ;;  %v1215_v55 = vpack.i.b16 %v1214_v16, %v1213_v28  ;;  %v1039_v6 = vcombine.high %v7073_v1, %v7080_v45 }
 0x1fc   :  { %v7272_v35 = vrot.slane %v8486_v47, %v6938_v18  ;;  %v7280_v56 = vcombine.low %v1741_v60, %v1757_v24  ;;  %v1055_v31 = vcombine.high %v7083_v46, %v7093_v51  ;;  %v7287_v33 = vrot.slane %v5951_v62, %v6934_v14 }
 0x1fd   :  { %v7278_v42 = vrot.slane %v8487_v41, %v6938_v18  ;;  %v7290_v57 = vrot.slane %v1090_v21, %v6934_v14  ;;  %v7293_v58 = vrot.slane %v5952_v50, %v6934_v14  ;;  %v1906_v3 = vpack.i.b16 %v1759_v19, %v1691_v29  ;;  %6153 = vmatmul.mubr.msk.bf16.vlgmr.msra.gmra.mxu1 %vm2650_vm1, %v1215_v55 }
 0x1fe   :  { %v7296_v61 = vrot.slane %v1142_v17, %v6934_v14  ;;  %v1912_v7 = vpack.i.b16 %v7280_v56, %v7264_v52  ;;  %v1053_v1 = vrot.slane %v1039_v6, %v6938_v18  ;;  %v1069_v45 = vrot.slane %v1055_v31, %v6938_v18  ;;  %6158 = vmatprep.mubr.msk.bf16.mxu1 %vm6752_vm0, %v8480_v37 }
 0x1ff   :  { %v7304_v46 = vrot.slane %v5953_v5, %v6934_v14  ;;  %v7307_v51 = vrot.slane %v1158_v27, %v6934_v14  ;;  %v7310_v10 = vrot.slane %v5954_v4, %v6934_v14  ;;  %v2749_v43 = vsel %vm2650_vm1, %v1906_v3, 0 }
 0x200   :  { %v2843_v62 = vsel %vm2650_vm1, %v1912_v7, 0  ;;  %6157 = vmatpush3.bf16.xpose.msra.mxu1 %v2749_v43  ;;  %v7318_v21 = vcombine.low %v7272_v35, %v7278_v42  ;;  %v7320_v5 = vcombine.high %v1741_v60, %v1757_v24  ;;  %v1908_v50 = vshrl.u32 %v1759_v19, 16 }
 0x201   :  { %6169 = vmatpush3.bf16.xpose.msra.mxu0 %v2843_v62  ;;  %v7322_v8 = vcombine.high %v1673_v40, %v1689_v9  ;;  %v1071_v17 = vcombine.high %v7191_v63, %v7197_v26  ;;  %6162 = vmatprep.subr.bf16.mxu1 %v8480_v37  ;;  %v1907_v25 = vshrl.u32 %v1691_v29, 16  ;;  %v8488_v20 = vcombine.low %v7132_v54, %v7148_v34  ;;  %v7417_v62 = vpop.permute.xlu1 %1952 }
 0x202   :  { %v7333_v4 = vcombine.low %v1053_v1, %v1069_v45  ;;  %6180 = vmatprep.subr.bf16.mxu0 %v8480_v37  ;;  %v1003_v40 = vcombine.high %v7105_v32, %v7119_v15  ;;  %v7342_v63 = vrot.slane %v5959_v36, %v6934_v14  ;;  %v7348_v26 = vrot.slane %v1778_v30, %v6934_v14 }
 0x203   :  { %v7331_v27 = vrot.slane %v8488_v20, %v6934_v14  ;;  %v1909_v29 = vpack.i.b16 %v1908_v50, %v1907_v25  ;;  %v7354_v9 = vrot.slane %v5960_v11, %v6934_v14  ;;  %v7360_v32 = vrot.slane %v1830_v44, %v6934_v14 }
 0x204   :  { %v7366_v15 = vrot.slane %v5961_v13, %v6934_v14  ;;  %v1918_v54 = vpack.i.b16 %v7320_v5, %v7322_v8  ;;  %v8489_v2 = vcombine.low %v7216_v49, %v7219_v22  ;;  %v8490_v36 = vcombine.high %v7216_v49, %v7219_v22 }
 0x205   :  { %v1794_v34 = vcombine.low %v7331_v27, %v7342_v63  ;;  %v1106_v38 = vcombine.low %v7248_v23, %v7287_v33  ;;  %v1218_v12 = vpack.i.b16 %v1071_v17, %v1003_v40  ;;  %v1810_v11 = vcombine.low %v7348_v26, %v7354_v9 }
 0x206   :  { %v7376_v39 = vrot.slane %v8489_v2, %v6934_v14  ;;  %v7382_v30 = vrot.slane %v8490_v36, %v6934_v14  ;;  %v1862_v44 = vcombine.low %v7360_v32, %v7366_v15  ;;  %v1122_v13 = vcombine.low %v7290_v57, %v7293_v58 }
 0x207   :  { %v1224_v28 = vpack.i.b16 %v7333_v4, %v7318_v21  ;;  %v1802_v49 = vrot.slane %v1794_v34, %v6938_v18  ;;  %6159 = vmatmul.mubr.msk.bf16.vlgmr.msra.gmra.mxu1 %vm2650_vm1, %v1218_v12  ;;  %v2796_v60 = vsel %vm2650_vm1, %v1909_v29, 0  ;;  %v1818_v24 = vrot.slane %v1810_v11, %v6938_v18 }
 0x208   :  { %v1878_v22 = vcombine.low %v7376_v39, %v7382_v30  ;;  %v1870_v16 = vrot.slane %v1862_v44, %v6938_v18  ;;  %v1914_v19 = vshrl.u32 %v7280_v56, 16  ;;  %v1174_v47 = vcombine.low %v7296_v61, %v7304_v46  ;;  %6163 = vmatpush3.bf16.xpose.msra.mxu1 %v2796_v60  ;;  %6164 = vmatprep.mubr.msk.bf16.mxu1 %vm6752_vm0, %v8480_v37 }
 0x209   :  { %v1190_v41 = vcombine.low %v7307_v51, %v7310_v10  ;;  %6171 = vmatmul.mubr.msk.bf16.vlgmr.msra.gmra.mxu0 %vm2650_vm1, %v1224_v28  ;;  %v2937_v55 = vsel %vm2650_vm1, %v1918_v54, 0  ;;  %v7411_v31 = vcombine.high %v1053_v1, %v1069_v45  ;;  %v1220_v56 = vshrl.u32 %v1071_v17, 16  ;;  %6174 = vmatprep.subr.bf16.mxu1 %v8480_v37 }
 0x20a   :  { %v1886_v6 = vrot.slane %v1878_v22, %v6938_v18  ;;  %6181 = vmatpush3.bf16.xpose.msra.mxu0 %v2937_v55  ;;  %6182 = vmatprep.mubr.msk.bf16.mxu0 %vm6752_vm0, %v8480_v37  ;;  %v1913_v3 = vshrl.u32 %v7264_v52, 16  ;;  %v1826_v7 = vcombine.low %v1802_v49, %v1818_v24  ;;  %v7421_v50 = vcombine.high %v7272_v35, %v7278_v42 }
 0x20b   :  { %6192 = vmatprep.subr.bf16.mxu0 %v8480_v37  ;;  %v1219_v25 = vshrl.u32 %v1003_v40, 16  ;;  %v1114_v45 = vrot.slane %v1106_v38, %v6938_v18  ;;  %v1130_v17 = vrot.slane %v1122_v13, %v6938_v18  ;;  %v1182_v20 = vrot.slane %v1174_v47, %v6938_v18 }
 0x20c   :  { %v1894_v43 = vcombine.low %v1870_v16, %v1886_v6  ;;  %v1915_v1 = vpack.i.b16 %v1914_v19, %v1913_v3  ;;  %v1198_v29 = vrot.slane %v1190_v41, %v6938_v18  ;;  %v1107_v54 = vcombine.high %v7248_v23, %v7287_v33  ;;  %v1957_v3 = vpop.permute.xlu0 %1956 }
 0x20d   :  { %v1230_v35 = vpack.i.b16 %v7411_v31, %v7421_v50  ;;  %v1221_v42 = vpack.i.b16 %v1220_v56, %v1219_v25  ;;  %v1920_v40 = vshrl.u32 %v7320_v5, 16  ;;  %v1795_v2 = vcombine.high %v7331_v27, %v7342_v63 }
 0x20e   :  { %v1924_v52 = vpack.i.b16 %v1894_v43, %v1826_v7  ;;  %v1811_v36 = vcombine.high %v7348_v26, %v7354_v9  ;;  %v1863_v38 = vcombine.high %v7360_v32, %v7366_v15  ;;  %v1123_v23 = vcombine.high %v7290_v57, %v7293_v58  ;;  %v7451_v32 = vpop.permute.xlu1 %1960 }
 0x20f   :  { %6165 = vmatmul.mubr.msk.bf16.vlgmr.msra.gmra.mxu1 %vm2650_vm1, %v1221_v42  ;;  %v2890_v33 = vsel %vm2650_vm1, %v1915_v1, 0  ;;  %v1919_v5 = vshrl.u32 %v7322_v8, 16  ;;  %v1879_v12 = vcombine.high %v7376_v39, %v7382_v30  ;;  %v1138_v27 = vcombine.low %v1114_v45, %v1130_v17 }
 0x210   :  { %v3031_v34 = vsel %vm2650_vm1, %v1924_v52, 0  ;;  %6175 = vmatpush3.bf16.xpose.msra.mxu1 %v2890_v33  ;;  %v1206_v63 = vcombine.low %v1182_v20, %v1198_v29  ;;  %v7448_v26 = vcombine.high %v1870_v16, %v1886_v6  ;;  %v1226_v9 = vshrl.u32 %v7333_v4, 16  ;;  %6176 = vmatprep.mubr.msk.bf16.mxu1 %vm6752_vm0, %v8480_v37 }
 0x211   :  { %6183 = vmatmul.mubr.msk.bf16.vlgmr.msra.gmra.mxu0 %vm2650_vm1, %v1230_v35  ;;  %v1921_v57 = vpack.i.b16 %v1920_v40, %v1919_v5  ;;  %v1877_v58 = vrot.slane %v1863_v38, %v6938_v18  ;;  %v1893_v8 = vrot.slane %v1879_v12, %v6938_v18  ;;  %v1827_v15 = vcombine.high %v1802_v49, %v1818_v24 }
 0x212   :  { %6193 = vmatpush3.bf16.xpose.msra.mxu0 %v3031_v34  ;;  %6194 = vmatprep.mubr.msk.bf16.mxu0 %vm6752_vm0, %v8480_v37  ;;  %v1225_v39 = vshrl.u32 %v7318_v21, 16  ;;  %v1809_v4 = vrot.slane %v1795_v2, %v6938_v18  ;;  %v1825_v30 = vrot.slane %v1811_v36, %v6938_v18  ;;  %v1175_v11 = vcombine.high %v7296_v61, %v7304_v46  ;;  %v1967_v47 = vpop.permute.xlu1 %1966 }
 0x213   :  { %6204 = vmatprep.subr.bf16.mxu0 %v8480_v37  ;;  %v1191_v44 = vcombine.high %v7307_v51, %v7310_v10  ;;  %6186 = vmatprep.subr.bf16.mxu1 %v8480_v37  ;;  %v1926_v13 = vshrl.u32 %v1894_v43, 16  ;;  %v1236_v28 = vpack.i.b16 %v1206_v63, %v1138_v27  ;;  %v1930_v22 = vpack.i.b16 %v7448_v26, %v1827_v15 }
 0x214   :  { %v1227_v60 = vpack.i.b16 %v1226_v9, %v1225_v39  ;;  %v7469_v49 = vcombine.high %v1114_v45, %v1130_v17  ;;  %v2984_v21 = vsel %vm2650_vm1, %v1921_v57, 0  ;;  %v7472_v24 = vcombine.high %v1182_v20, %v1198_v29 }
 0x215   :  { %v7474_v16 = vcombine.low %v1877_v58, %v1893_v8  ;;  %v1925_v19 = vshrl.u32 %v1826_v7, 16  ;;  %v7476_v61 = vcombine.low %v1809_v4, %v1825_v30  ;;  %v1232_v46 = vshrl.u32 %v7411_v31, 16 }
 0x216   :  { %v1121_v51 = vrot.slane %v1107_v54, %v6938_v18  ;;  %v1137_v10 = vrot.slane %v1123_v23, %v6938_v18  ;;  %v7483_v55 = vrot.slane %v1175_v11, %v6938_v18  ;;  %v7486_v6 = vrot.slane %v1191_v44, %v6938_v18  ;;  %v1975_v38 = vpop.permute.xlu1 %1974 }
 0x217   :  { %6177 = vmatmul.mubr.msk.bf16.vlgmr.msra.gmra.mxu1 %vm2650_vm1, %v1227_v60  ;;  %v1927_v41 = vpack.i.b16 %v1926_v13, %v1925_v19  ;;  %v7488_v56 = vcombine.high %v1877_v58, %v1893_v8  ;;  %v3125_v31 = vsel %vm2650_vm1, %v1930_v22, 0  ;;  %v1231_v7 = vshrl.u32 %v7421_v50, 16 }
 0x218   :  { %6187 = vmatpush3.bf16.xpose.msra.mxu1 %v2984_v21  ;;  %v1238_v43 = vshrl.u32 %v1206_v63, 16  ;;  %v1242_v25 = vpack.i.b16 %v7472_v24, %v7469_v49  ;;  %v1936_v1 = vpack.i.b16 %v7474_v16, %v7476_v61  ;;  %v7499_v45 = vcombine.high %v1809_v4, %v1825_v30  ;;  %6188 = vmatprep.mubr.msk.bf16.mxu1 %vm6752_vm0, %v8480_v37 }
 0x219   :  { %6195 = vmatmul.mubr.msk.bf16.vlgmr.msra.gmra.mxu0 %vm2650_vm1, %v1236_v28  ;;  %v1233_v52 = vpack.i.b16 %v1232_v46, %v1231_v7  ;;  %v7504_v50 = vcombine.low %v1121_v51, %v1137_v10  ;;  %v1237_v17 = vshrl.u32 %v1138_v27, 16  ;;  %v1932_v20 = vshrl.u32 %v7448_v26, 16  ;;  %6198 = vmatprep.subr.bf16.mxu1 %v8480_v37  ;;  %v1971_v27 = vpop.permute.xlu0 %1970 }
 0x21a   :  { %6205 = vmatpush3.bf16.xpose.msra.mxu0 %v3125_v31  ;;  %6206 = vmatprep.mubr.msk.bf16.mxu0 %vm6752_vm0, %v8480_v37  ;;  %v3078_v29 = vsel %vm2650_vm1, %v1927_v41, 0  ;;  %v7511_v54 = vcombine.low %v7483_v55, %v7486_v6  ;;  %v1942_v35 = vpack.i.b16 %v7488_v56, %v7499_v45  ;;  %v1931_v42 = vshrl.u32 %v1827_v15, 16 }
 0x21b   :  { %6216 = vmatprep.subr.bf16.mxu0 %v8480_v37  ;;  %v1239_v40 = vpack.i.b16 %v1238_v43, %v1237_v17  ;;  %v1982_v34 = vshrl.u32 %v6901_v48, 16  ;;  %v1980_v2 = vpack.i.b16 %v7417_v62, %v6901_v48  ;;  %v1983_v36 = vshrl.u32 %v7417_v62, 16 }
 0x21c   :  { %v3219_v23 = vsel %vm2650_vm1, %v1936_v1, 0  ;;  %v7520_v33 = vcombine.high %v1121_v51, %v1137_v10  ;;  %v1991_v5 = vshrl.u32 %v7451_v32, 16  ;;  %v1998_v12 = vshrl.u32 %v6909_v53, 16 }
 0x21d   :  { %v1933_v63 = vpack.i.b16 %v1932_v20, %v1931_v42  ;;  %v1984_v26 = vpack.i.b16 %v1983_v36, %v1982_v34  ;;  %v1996_v9 = vpack.i.b16 %v1967_v47, %v6909_v53  ;;  %v1999_v57 = vshrl.u32 %v1967_v47, 16 }
 0x21e   :  { %v1988_v48 = vpack.i.b16 %v7451_v32, %v1957_v3  ;;  %v1990_v62 = vshrl.u32 %v1957_v3, 16  ;;  %v2007_v58 = vshrl.u32 %v1975_v38, 16  ;;  %v2004_v8 = vpack.i.b16 %v1975_v38, %v1971_v27 }
 0x21f   :  { %6189 = vmatmul.mubr.msk.bf16.vlgmr.msra.gmra.mxu1 %vm2650_vm1, %v1233_v52  ;;  %v2000_v15 = vpack.i.b16 %v1999_v57, %v1998_v12  ;;  %v2042_v39 = vcombine.low %v1980_v2, %v1996_v9  ;;  %v2043_v4 = vcombine.high %v1980_v2, %v1996_v9  ;;  %v2006_v30 = vshrl.u32 %v1971_v27, 16 }
 0x220   :  { %6199 = vmatpush3.bf16.xpose.msra.mxu1 %v3078_v29  ;;  %v1992_v53 = vpack.i.b16 %v1991_v5, %v1990_v62  ;;  %v2058_v11 = vcombine.low %v1988_v48, %v2004_v8  ;;  %v2059_v44 = vcombine.high %v1988_v48, %v2004_v8  ;;  %6200 = vmatprep.mubr.msk.bf16.mxu1 %vm6752_vm0, %v8480_v37  ;;  %v1937_v10 = vshrl.u32 %v7476_v61, 16 }
 0x221   :  { %6207 = vmatmul.mubr.msk.bf16.vlgmr.msra.gmra.mxu0 %vm2650_vm1, %v1242_v25  ;;  %v2050_v32 = vrot.slane %v2042_v39, %v6934_v14  ;;  %v2057_v13 = vrot.slane %v2043_v4, %v6934_v14  ;;  %v2110_v28 = vcombine.low %v1984_v26, %v2000_v15  ;;  %6210 = vmatprep.subr.bf16.mxu1 %v8480_v37  ;;  %v1938_v47 = vshrl.u32 %v7474_v16, 16 }
 0x222   :  { %6217 = vmatpush3.bf16.xpose.msra.mxu0 %v3219_v23  ;;  %6218 = vmatprep.mubr.msk.bf16.mxu0 %vm6752_vm0, %v8480_v37  ;;  %v2111_v22 = vcombine.high %v1984_v26, %v2000_v15  ;;  %v2008_v60 = vpack.i.b16 %v2007_v58, %v2006_v30  ;;  %v2066_v21 = vrot.slane %v2058_v11, %v6934_v14  ;;  %v3172_v17 = vsel %vm2650_vm1, %v1933_v63, 0 }
 0x223   :  { %6228 = vmatprep.subr.bf16.mxu0 %v8480_v37  ;;  %v2073_v19 = vrot.slane %v2059_v44, %v6934_v14  ;;  %v1248_v46 = vpack.i.b16 %v7511_v54, %v7504_v50  ;;  %v7542_v51 = vcombine.high %v7483_v55, %v7486_v6  ;;  %v2118_v41 = vrot.slane %v2110_v28, %v6934_v14 }
 0x224   :  { %v2074_v3 = vcombine.low %v2050_v32, %v2066_v21  ;;  %v2075_v31 = vcombine.high %v2050_v32, %v2066_v21  ;;  %v2125_v43 = vrot.slane %v2111_v22, %v6934_v14  ;;  %v2126_v1 = vcombine.low %v1992_v53, %v2008_v60 }
 0x225   :  { %v2090_v7 = vcombine.low %v2057_v13, %v2073_v19  ;;  %v2091_v25 = vcombine.high %v2057_v13, %v2073_v19  ;;  %v2127_v52 = vcombine.high %v1992_v53, %v2008_v60  ;;  %v3313_v6 = vsel %vm2650_vm1, %v1942_v35, 0 }
 0x226   :  { %v2082_v55 = vrot.slane %v2074_v3, %v6938_v18  ;;  %v2089_v61 = vrot.slane %v2075_v31, %v6938_v18  ;;  %v2134_v29 = vrot.slane %v2126_v1, %v6934_v14  ;;  %v1939_v34 = vpack.i.b16 %v1938_v47, %v1937_v10 }
 0x227   :  { %6201 = vmatmul.mubr.msk.bf16.vlgmr.msra.gmra.mxu1 %vm2650_vm1, %v1239_v40  ;;  %v2098_v16 = vrot.slane %v2090_v7, %v6938_v18  ;;  %v2105_v20 = vrot.slane %v2091_v25, %v6938_v18  ;;  %v2141_v42 = vrot.slane %v2127_v52, %v6934_v14  ;;  %v1244_v40 = vshrl.u32 %v7472_v24, 16 }
 0x228   :  { %6211 = vmatpush3.bf16.xpose.msra.mxu1 %v3172_v17  ;;  %v2314_v2 = vcombine.low %v2082_v55, %v2089_v61  ;;  %v5963_v36 = vcombine.high %v2082_v55, %v2089_v61  ;;  %6212 = vmatprep.mubr.msk.bf16.mxu1 %vm6752_vm0, %v8480_v37  ;;  %v1243_v35 = vshrl.u32 %v7469_v49, 16  ;;  %v2142_v38 = vcombine.low %v2118_v41, %v2134_v29 }
 0x229   :  { %6219 = vmatmul.mubr.msk.bf16.vlgmr.msra.gmra.mxu0 %vm2650_vm1, %v1248_v46  ;;  %6222 = vmatprep.subr.bf16.mxu1 %v8480_v37  ;;  %v2143_v23 = vcombine.high %v2118_v41, %v2134_v29  ;;  %v2158_v5 = vcombine.low %v2125_v43, %v2141_v42  ;;  %v2159_v12 = vcombine.high %v2125_v43, %v2141_v42  ;;  %v1944_v15 = vshrl.u32 %v7488_v56, 16 }
 0x22a   :  { %6229 = vmatpush3.bf16.xpose.msra.mxu0 %v3313_v6  ;;  %6230 = vmatprep.mubr.msk.bf16.mxu0 %vm6752_vm0, %v8480_v37  ;;  %v2321_v27 = vrot.slane %v2314_v2, %v6934_v14  ;;  %v2329_v63 = vrot.slane %v5963_v36, %v6934_v14  ;;  %v2330_v26 = vcombine.low %v2098_v16, %v2105_v20  ;;  %v3266_v53 = vsel %vm2650_vm1, %v1939_v34, 0 }
 0x22b   :  { %6240 = vmatprep.subr.bf16.mxu0 %v8480_v37  ;;  %v2150_v24 = vrot.slane %v2142_v38, %v6938_v18  ;;  %v2157_v9 = vrot.slane %v2143_v23, %v6938_v18  ;;  %v2166_v57 = vrot.slane %v2158_v5, %v6938_v18  ;;  %v5964_v49 = vcombine.high %v2098_v16, %v2105_v20 }
 0x22c   :  { %v1254_v48 = vpack.i.b16 %v7542_v51, %v7520_v33  ;;  %v1245_v62 = vpack.i.b16 %v1244_v40, %v1243_v35  ;;  %v2173_v58 = vrot.slane %v2159_v12, %v6938_v18  ;;  %v2337_v8 = vrot.slane %v2330_v26, %v6934_v14 }
 0x22d   :  { %v2345_v39 = vrot.slane %v5964_v49, %v6934_v14  ;;  %v2382_v4 = vcombine.low %v2150_v24, %v2157_v9  ;;  %v5965_v30 = vcombine.high %v2150_v24, %v2157_v9  ;;  %v1250_v32 = vshrl.u32 %v7511_v54, 16 }
 0x22e   :  { %v2398_v11 = vcombine.low %v2166_v57, %v2173_v58  ;;  %v5966_v44 = vcombine.high %v2166_v57, %v2173_v58  ;;  %v1943_v13 = vshrl.u32 %v7499_v45, 16  ;;  %v2346_v28 = vcombine.low %v2321_v27, %v2329_v63 }
 0x22f   :  { %6213 = vmatmul.mubr.msk.bf16.vlgmr.msra.gmra.mxu1 %vm2650_vm1, %v1245_v62  ;;  %v2362_v22 = vcombine.low %v2337_v8, %v2345_v39  ;;  %v1249_v56 = vshrl.u32 %v7504_v50, 16  ;;  %v2389_v60 = vrot.slane %v2382_v4, %v6934_v14  ;;  %v2397_v21 = vrot.slane %v5965_v30, %v6934_v14 }
 0x230   :  { %6223 = vmatpush3.bf16.xpose.msra.mxu1 %v3266_v53  ;;  %6224 = vmatprep.mubr.msk.bf16.mxu1 %vm6752_vm0, %v8480_v37  ;;  %v1945_v19 = vpack.i.b16 %v1944_v15, %v1943_v13  ;;  %v2354_v46 = vrot.slane %v2346_v28, %v6938_v18  ;;  %v2405_v45 = vrot.slane %v2398_v11, %v6934_v14  ;;  %v1255_v42 = vshrl.u32 %v7520_v33, 16 }
 0x231   :  { %6231 = vmatmul.mubr.msk.bf16.vlgmr.msra.gmra.mxu0 %vm2650_vm1, %v1254_v48  ;;  %6234 = vmatprep.subr.bf16.mxu1 %v8480_v37  ;;  %v2370_v54 = vrot.slane %v2362_v22, %v6938_v18  ;;  %v2413_v10 = vrot.slane %v5966_v44, %v6934_v14  ;;  %v2414_v47 = vcombine.low %v2389_v60, %v2397_v21  ;;  %v1256_v40 = vshrl.u32 %v7542_v51, 16 }
 0x232   :  { %6242 = vmatprep.mubr.msk.bf16.mxu0 %vm6752_vm0, %v8480_v37  ;;  %v2347_v50 = vcombine.high %v2321_v27, %v2329_v63  ;;  %v2363_v41 = vcombine.high %v2337_v8, %v2345_v39  ;;  %v1251_v3 = vpack.i.b16 %v1250_v32, %v1249_v56  ;;  %v2415_v43 = vcombine.high %v2389_v60, %v2397_v21 }
 0x233   :  { %v2378_v31 = vcombine.low %v2354_v46, %v2370_v54  ;;  %v7594_v7 = vcombine.high %v2354_v46, %v2370_v54  ;;  %v2422_v25 = vrot.slane %v2414_v47, %v6938_v18  ;;  %v2430_v1 = vcombine.low %v2405_v45, %v2413_v10 }
 0x234   :  { %v2361_v52 = vrot.slane %v2347_v50, %v6938_v18  ;;  %v2377_v17 = vrot.slane %v2363_v41, %v6938_v18  ;;  %v2429_v55 = vrot.slane %v2415_v43, %v6938_v18  ;;  %v2431_v61 = vcombine.high %v2405_v45, %v2413_v10 }
 0x235   :  { %v3360_v16 = vsel %vm2650_vm1, %v1945_v19, 0  ;;  %v2438_v6 = vrot.slane %v2430_v1, %v6938_v18  ;;  %v2590_v36 = vshrl.u32 %v2378_v31, 16  ;;  %v2598_v38 = vshrl.u32 %v7594_v7, 16 }
 0x236   :  { %v7603_v20 = vcombine.low %v2361_v52, %v2377_v17  ;;  %v7605_v29 = vcombine.high %v2361_v52, %v2377_v17  ;;  %v2445_v34 = vrot.slane %v2431_v61, %v6938_v18  ;;  %v1257_v48 = vpack.i.b16 %v1256_v40, %v1255_v42 }
 0x237   :  { %6225 = vmatmul.mubr.msk.bf16.vlgmr.msra.gmra.mxu1 %vm2650_vm1, %v1251_v3  ;;  %v2446_v2 = vcombine.low %v2422_v25, %v2438_v6  ;;  %v7613_v35 = vcombine.high %v2422_v25, %v2438_v6 }
 0x238   :  { %6235 = vmatpush3.bf16.xpose.msra.mxu1 %v3360_v16  ;;  %6236 = vmatprep.mubr.msk.bf16.mxu1 %vm6752_vm0, %v8480_v37  ;;  %v7616_v23 = vcombine.low %v2429_v55, %v2445_v34  ;;  %v7618_v5 = vcombine.high %v2429_v55, %v2445_v34  ;;  %v2606_v12 = vshrl.u32 %v7603_v20, 16  ;;  %v2614_v33 = vshrl.u32 %v7605_v29, 16 }
 0x239   :  { %6246 = vmatprep.subr.bf16.mxu1 %v8480_v37  ;;  %v2588_v27 = vpack.i.b16 %v2446_v2, %v2378_v31  ;;  %v2591_v51 = vshrl.u32 %v2446_v2, 16  ;;  %v2599_v26 = vshrl.u32 %v7613_v35, 16 }
 0x23a   :  { %v2607_v57 = vshrl.u32 %v7616_v23, 16  ;;  %v2615_v49 = vshrl.u32 %v7618_v5, 16 }
 0x23b   :  { %6241 = vmatpush3.bf16.msra.mxu0 %v2588_v27  ;;  %v2592_v62 = vpack.i.b16 %v2591_v51, %v2590_v36  ;;  %v7631_v58 = vpack.i.b16 %v2599_v26, %v2598_v38 }
 0x23c   :  { %6252 = vmatprep.subr.bf16.mxu0 %v8480_v37  ;;  %v7634_v8 = vpack.i.b16 %v2607_v57, %v2606_v12  ;;  %v7636_v15 = vpack.i.b16 %v2615_v49, %v2614_v33 }
 0x23f   :  { %6237 = vmatmul.mubr.msk.bf16.vlgmr.msra.gmra.mxu1 %vm2650_vm1, %v1257_v48 }
 0x240   :  { %6247 = vmatpush3.bf16.msra.mxu1 %v2592_v62  ;;  %6248 = vmatprep.mubr.msk.bf16.mxu1 %vm6752_vm0, %v8480_v37 }
 0x241   :  { %6258 = vmatprep.subr.bf16.mxu1 %v8480_v37 }
 0x2b6   :  { %v7642_v39 = vpop.f32.mrf.mxu0 }
 0x2b7   :  { %v3404_v4 = vsel %vm3403_vm2, %v7642_v39, -inf }
 0x2b8   :  { %3405 = vmax.xlane.f32.xlu0 %v3404_v4  ;;  %v6148_v30 = vpop.f32.mrf.mxu0 }
 0x2ba   :  { %v7646_v53 = vpop.f32.mrf.mxu0 }
 0x2bb   :  { %v3407_v11 = vsel %vm3403_vm2, %v7646_v53, -inf }
 0x2bc   :  { %3408 = vmax.xlane.f32.xlu1 %v3407_v11  ;;  %v6149_v44 = vpop.f32.mrf.mxu0 }
 0x2bd   :  { %v7650_v32 = vpop.f32.mrf.mxu1 }
 0x2be   :  { %v3410_v13 = vsel %vm3403_vm2, %v7650_v32, -inf }
 0x2bf   :  { %v6154_v28 = vpop.f32.mrf.mxu1  ;;  %3411 = vmax.xlane.f32.xlu0 %v3410_v13 }
 0x2c1   :  { %v7654_v22 = vpop.f32.mrf.mxu1 }
 0x2c2   :  { %v3413_v56 = vsel %vm3403_vm2, %v7654_v22, -inf }
 0x2c3   :  { %v6155_v60 = vpop.f32.mrf.mxu1  ;;  %3414 = vmax.xlane.f32.xlu0 %v3413_v56 }
 0x2c7   :  { %v7658_v21 = vpop.f32.mrf.mxu1 }
 0x2c8   :  { %v3416_v50 = vsel %vm3403_vm2, %v7658_v21, -inf }
 0x2c9   :  { %v7660_v19 = vpop.f32.mrf.mxu0  ;;  %v6160_v54 = vpop.f32.mrf.mxu1 }
 0x2ca   :  { %v3428_v46 = vsel %vm3403_vm2, %v7660_v19, -inf }
 0x2cb   :  { %3429 = vmax.xlane.f32.xlu1 %v3428_v46  ;;  %v6172_v45 = vpop.f32.mrf.mxu0  ;;  %v7664_v10 = vpop.f32.mrf.mxu1 }
 0x2cc   :  { %v3419_v1 = vsel %vm3403_vm2, %v7664_v10, -inf }
 0x2cd   :  { %v7666_v47 = vpop.f32.mrf.mxu0  ;;  %v6161_v3 = vpop.f32.mrf.mxu1 }
 0x2ce   :  { %v3431_v41 = vsel %vm3403_vm2, %v7666_v47, -inf }
 0x2cf   :  { %3417 = vmax.xlane.f32.xlu1 %v3416_v50  ;;  %3432 = vmax.xlane.f32.xlu0 %v3431_v41  ;;  %v6173_v31 = vpop.f32.mrf.mxu0  ;;  %v7672_v43 = vpop.f32.mrf.mxu1 }
 0x2d0   :  { %v3422_v6 = vsel %vm3403_vm2, %v7672_v43, -inf }
 0x2d1   :  { %v7674_v25 = vpop.f32.mrf.mxu0  ;;  %v6166_v17 = vpop.f32.mrf.mxu1 }
 0x2d2   :  { %v3440_v52 = vsel %vm3403_vm2, %v7674_v25, -inf }
 0x2d3   :  { %3420 = vmax.xlane.f32.xlu0 %v3419_v1  ;;  %3441 = vmax.xlane.f32.xlu1 %v3440_v52  ;;  %v6184_v55 = vpop.f32.mrf.mxu0  ;;  %v7680_v61 = vpop.f32.mrf.mxu1 }
 0x2d4   :  { %v3425_v38 = vsel %vm3403_vm2, %v7680_v61, -inf }
 0x2d5   :  { %v7682_v16 = vpop.f32.mrf.mxu0  ;;  %v6167_v40 = vpop.f32.mrf.mxu1 }
 0x2d6   :  { %v3443_v42 = vsel %vm3403_vm2, %v7682_v16, -inf }
 0x2d7   :  { %3423 = vmax.xlane.f32.xlu1 %v3422_v6  ;;  %3444 = vmax.xlane.f32.xlu0 %v3443_v42  ;;  %v6185_v34 = vpop.f32.mrf.mxu0  ;;  %v7688_v2 = vpop.f32.mrf.mxu1 }
 0x2d8   :  { %v3434_v57 = vsel %vm3403_vm2, %v7688_v2, -inf }
 0x2d9   :  { %v7690_v36 = vpop.f32.mrf.mxu0  ;;  %v6178_v33 = vpop.f32.mrf.mxu1 }
 0x2da   :  { %v3452_v12 = vsel %vm3403_vm2, %v7690_v36, -inf }
 0x2db   :  { %3426 = vmax.xlane.f32.xlu0 %v3425_v38  ;;  %3453 = vmax.xlane.f32.xlu1 %v3452_v12  ;;  %v6196_v27 = vpop.f32.mrf.mxu0  ;;  %v7696_v51 = vpop.f32.mrf.mxu1 }
 0x2dc   :  { %v3437_v11 = vsel %vm3403_vm2, %v7696_v51, -inf }
 0x2dd   :  { %v7698_v26 = vpop.f32.mrf.mxu0  ;;  %v6179_v48 = vpop.f32.mrf.mxu1 }
 0x2de   :  { %v3455_v49 = vsel %vm3403_vm2, %v7698_v26, -inf }
 0x2df   :  { %3435 = vmax.xlane.f32.xlu1 %v3434_v57  ;;  %3456 = vmax.xlane.f32.xlu0 %v3455_v49  ;;  %v6197_v62 = vpop.f32.mrf.mxu0  ;;  %v7704_v4 = vpop.f32.mrf.mxu1 }
 0x2e0   :  { %v3446_v46 = vsel %vm3403_vm2, %v7704_v4, -inf }
 0x2e1   :  { %v7706_v30 = vpop.f32.mrf.mxu0  ;;  %v6190_v13 = vpop.f32.mrf.mxu1 }
 0x2e2   :  { %v3464_v44 = vsel %vm3403_vm2, %v7706_v30, -inf }
 0x2e3   :  { %3438 = vmax.xlane.f32.xlu0 %v3437_v11  ;;  %3465 = vmax.xlane.f32.xlu1 %v3464_v44  ;;  %v6208_v28 = vpop.f32.mrf.mxu0  ;;  %v7712_v56 = vpop.f32.mrf.mxu1 }
 0x2e4   :  { %v3449_v31 = vsel %vm3403_vm2, %v7712_v56, -inf }
 0x2e5   :  { %v7714_v60 = vpop.f32.mrf.mxu0  ;;  %v6191_v45 = vpop.f32.mrf.mxu1 }
 0x2e6   :  { %v3467_v54 = vsel %vm3403_vm2, %v7714_v60, -inf }
 0x2e7   :  { %3447 = vmax.xlane.f32.xlu1 %v3446_v46  ;;  %3468 = vmax.xlane.f32.xlu0 %v3467_v54  ;;  %v6209_v50 = vpop.f32.mrf.mxu0  ;;  %v7720_v41 = vpop.f32.mrf.mxu1 }
 0x2e8   :  { %v3458_v42 = vsel %vm3403_vm2, %v7720_v41, -inf }
 0x2e9   :  { %v7722_v3 = vpop.f32.mrf.mxu0  ;;  %v6202_v52 = vpop.f32.mrf.mxu1 }
 0x2ea   :  { %v3476_v1 = vsel %vm3403_vm2, %v7722_v3, -inf }
 0x2eb   :  { %3450 = vmax.xlane.f32.xlu0 %v3449_v31  ;;  %3477 = vmax.xlane.f32.xlu1 %v3476_v1  ;;  %v6220_v17 = vpop.f32.mrf.mxu0  ;;  %v7728_v55 = vpop.f32.mrf.mxu1 }
 0x2ec   :  { %v3461_v27 = vsel %vm3403_vm2, %v7728_v55, -inf }
 0x2ed   :  { %v7730_v6 = vpop.f32.mrf.mxu0  ;;  %v6203_v34 = vpop.f32.mrf.mxu1 }
 0x2ee   :  { %v3479_v40 = vsel %vm3403_vm2, %v7730_v6, -inf }
 0x2ef   :  { %3459 = vmax.xlane.f32.xlu1 %v3458_v42  ;;  %3480 = vmax.xlane.f32.xlu0 %v3479_v40  ;;  %v6221_v38 = vpop.f32.mrf.mxu0  ;;  %v7736_v12 = vpop.f32.mrf.mxu1 }
 0x2f0   :  { %v3470_v44 = vsel %vm3403_vm2, %v7736_v12, -inf }
 0x2f1   :  { %v7738_v33 = vpop.f32.mrf.mxu0  ;;  %v6214_v49 = vpop.f32.mrf.mxu1 }
 0x2f2   :  { %v3488_v57 = vsel %vm3403_vm2, %v7738_v33, -inf  ;;  %v7770_v49 = vpop.permute.xlu1 %1954 }
 0x2f3   :  { %3462 = vmax.xlane.f32.xlu0 %v3461_v27  ;;  %3489 = vmax.xlane.f32.xlu1 %v3488_v57  ;;  %v6232_v48 = vpop.f32.mrf.mxu0  ;;  %v7744_v62 = vpop.f32.mrf.mxu1 }
 0x2f4   :  { %v3473_v50 = vsel %vm3403_vm2, %v7744_v62, -inf }
 0x2f5   :  { %v7746_v11 = vpop.f32.mrf.mxu0  ;;  %v6215_v28 = vpop.f32.mrf.mxu1 }
 0x2f6   :  { %v3491_v13 = vsel %vm3403_vm2, %v7746_v11, -inf  ;;  %v7772_v48 = vpop.permute.xlu1 %1962 }
 0x2f7   :  { %3471 = vmax.xlane.f32.xlu1 %v3470_v44  ;;  %3492 = vmax.xlane.f32.xlu0 %v3491_v13  ;;  %v6233_v46 = vpop.f32.mrf.mxu0  ;;  %v7752_v54 = vpop.f32.mrf.mxu1 }
 0x2f8   :  { %v3482_v45 = vsel %vm3403_vm2, %v7752_v54, -inf  ;;  %v7774_v44 = vpop.permute.xlu0 %1958 }
 0x2f9   :  { %v6226_v31 = vpop.f32.mrf.mxu1 }
 0x2fa   :  { %v7776_v13 = vpop.permute.xlu1 %1968 }
 0x2fb   :  { %3474 = vmax.xlane.f32.xlu0 %v3473_v50  ;;  %3483 = vmax.xlane.f32.xlu1 %v3482_v45  ;;  %v7758_v1 = vpop.f32.mrf.mxu1 }
 0x2fc   :  { %v3485_v52 = vsel %vm3403_vm2, %v7758_v1, -inf }
 0x2fd   :  { %v6227_v17 = vpop.f32.mrf.mxu1 }
 0x2ff   :  { %3486 = vmax.xlane.f32.xlu0 %v3485_v52  ;;  %v7762_v42 = vpop.f32.mrf.mxu1 }
 0x300   :  { %v3494_v40 = vsel %vm3403_vm2, %v7762_v42, -inf }
 0x301   :  { %v6238_v34 = vpop.f32.mrf.mxu1  ;;  %3495 = vmax.xlane.f32.xlu1 %v3494_v40 }
 0x303   :  { %v7766_v38 = vpop.f32.mrf.mxu1 }
 0x304   :  { %v3497_v27 = vsel %vm3403_vm2, %v7766_v38, -inf }
 0x305   :  { %v6239_v57 = vpop.f32.mrf.mxu1  ;;  %3498 = vmax.xlane.f32.xlu0 %v3497_v27 }
 0x341   :  { %v3406_v28 = vpop.xlane.xlu0 %3405 }
 0x342   :  { %v3500_v46 = vsub.f32 %v7642_v39, %v3406_v28 }
 0x344   :  { %v3532_v45 = vmul.f32 1.442695, %v3500_v46 }
 0x345   :  { %v3409_v50 = vpop.xlane.xlu1 %3408 }
 0x346   :  { %6504 = vpow2.f32 %v3532_v45  ;;  %v3501_v31 = vsub.f32 %v7646_v53, %v3409_v50 }
 0x348   :  { %v3534_v52 = vmul.f32 1.442695, %v3501_v31  ;;  %v3412_v17 = vpop.xlane.xlu0 %3411 }
 0x349   :  { %v3502_v40 = vsub.f32 %v7650_v32, %v3412_v17 }
 0x34a   :  { %6506 = vpow2.f32 %v3534_v52 }
 0x34b   :  { %v3536_v34 = vmul.f32 1.442695, %v3502_v40 }
 0x34c   :  { %v3415_v27 = vpop.xlane.xlu0 %3414 }
 0x34d   :  { %6508 = vpow2.f32 %v3536_v34  ;;  %v3503_v57 = vsub.f32 %v7654_v22, %v3415_v27 }
 0x34f   :  { %v3538_v9 = vmul.f32 1.442695, %v3503_v57 }
 0x351   :  { %6510 = vpow2.f32 %v3538_v9 }
 0x353   :  { %v7782_v24 = vpop.eup %6504 }
 0x354   :  { %v3430_v39 = vpop.xlane.xlu1 %3429  ;;  %v3596_v53 = vsel %vm3403_vm2, %v7782_v24, 0.0 }
 0x355   :  { %v3508_v28 = vsub.f32 %v7660_v19, %v3430_v39  ;;  %3597 = vadd.xlane.f32.xlu1 %v3596_v53 }
 0x357   :  { %v3548_v46 = vmul.f32 1.442695, %v3508_v28  ;;  %v7787_v45 = vpop.eup %6506 }
 0x358   :  { %v3418_v32 = vpop.xlane.xlu1 %3417  ;;  %v3433_v50 = vpop.xlane.xlu0 %3432  ;;  %v3599_v9 = vsel %vm3403_vm2, %v7787_v45, 0.0 }
 0x359   :  { %6512 = vpow2.f32 %v3548_v46  ;;  %v3504_v31 = vsub.f32 %v7658_v21, %v3418_v32  ;;  %v3509_v22 = vsub.f32 %v7666_v47, %v3433_v50  ;;  %3600 = vadd.xlane.f32.xlu0 %v3599_v9 }
 0x35a   :  { %v7793_v17 = vpop.eup %6508 }
 0x35b   :  { %v3540_v52 = vmul.f32 1.442695, %v3504_v31  ;;  %v3550_v19 = vmul.f32 1.442695, %v3509_v22  ;;  %v3602_v21 = vsel %vm3403_vm2, %v7793_v17, 0.0 }
 0x35c   :  { %v3421_v40 = vpop.xlane.xlu0 %3420  ;;  %v3442_v34 = vpop.xlane.xlu1 %3441  ;;  %3603 = vadd.xlane.f32.xlu1 %v3602_v21 }
 0x35d   :  { %6514 = vpow2.f32 %v3540_v52  ;;  %v3505_v27 = vsub.f32 %v7664_v10, %v3421_v40  ;;  %v3512_v57 = vsub.f32 %v7674_v25, %v3442_v34 }
 0x35e   :  { %6516 = vpow2.f32 %v3550_v19  ;;  %v7799_v28 = vpop.eup %6510 }
 0x35f   :  { %v3542_v47 = vmul.f32 1.442695, %v3505_v27  ;;  %v3556_v39 = vmul.f32 1.442695, %v3512_v57  ;;  %v3605_v10 = vsel %vm3403_vm2, %v7799_v28, 0.0 }
 0x360   :  { %v3424_v53 = vpop.xlane.xlu1 %3423  ;;  %v3445_v46 = vpop.xlane.xlu0 %3444  ;;  %3606 = vadd.xlane.f32.xlu0 %v3605_v10 }
 0x361   :  { %6518 = vpow2.f32 %v3542_v47  ;;  %v3506_v32 = vsub.f32 %v7672_v43, %v3424_v53  ;;  %v3513_v50 = vsub.f32 %v7682_v16, %v3445_v46 }
 0x362   :  { %6520 = vpow2.f32 %v3556_v39 }
 0x363   :  { %v3544_v25 = vmul.f32 1.442695, %v3506_v32  ;;  %v3558_v31 = vmul.f32 1.442695, %v3513_v50 }
 0x364   :  { %v3427_v22 = vpop.xlane.xlu0 %3426  ;;  %v3454_v9 = vpop.xlane.xlu1 %3453 }
 0x365   :  { %6522 = vpow2.f32 %v3544_v25  ;;  %v3507_v52 = vsub.f32 %v7680_v61, %v3427_v22  ;;  %v3516_v19 = vsub.f32 %v7690_v36, %v3454_v9 }
 0x366   :  { %v7807_v40 = vpop.eup %6512  ;;  %6524 = vpow2.f32 %v3558_v31 }
 0x367   :  { %v3546_v43 = vmul.f32 1.442695, %v3507_v52  ;;  %v3564_v34 = vmul.f32 1.442695, %v3516_v19  ;;  %v3620_v16 = vsel %vm3403_vm2, %v7807_v40, 0.0 }
 0x368   :  { %v3436_v27 = vpop.xlane.xlu1 %3435  ;;  %v3457_v57 = vpop.xlane.xlu0 %3456  ;;  %3621 = vadd.xlane.f32.xlu1 %v3620_v16 }
 0x369   :  { %v3510_v21 = vsub.f32 %v7688_v2, %v3436_v27  ;;  %v3517_v47 = vsub.f32 %v7698_v26, %v3457_v57  ;;  %6526 = vpow2.f32 %v3564_v34 }
 0x36a   :  { %v7813_v39 = vpop.eup %6514  ;;  %6528 = vpow2.f32 %v3546_v43 }
 0x36b   :  { %v3552_v61 = vmul.f32 1.442695, %v3510_v21  ;;  %v3566_v36 = vmul.f32 1.442695, %v3517_v47  ;;  %v3608_v53 = vsel %vm3403_vm2, %v7813_v39, 0.0  ;;  %v7817_v46 = vpop.eup %6516 }
 0x36c   :  { %v3439_v32 = vpop.xlane.xlu0 %3438  ;;  %v7819_v50 = vpop.xlane.xlu1 %3465  ;;  %3609 = vadd.xlane.f32.xlu0 %v3608_v53  ;;  %v3623_v31 = vsel %vm3403_vm2, %v7817_v46, 0.0 }
 0x36d   :  { %6530 = vpow2.f32 %v3552_v61  ;;  %v3511_v2 = vsub.f32 %v7696_v51, %v3439_v32 }
 0x36e   :  { %v7822_v10 = vpop.eup %6518  ;;  %6532 = vpow2.f32 %v3566_v36 }
 0x36f   :  { %v3554_v26 = vmul.f32 1.442695, %v3511_v2  ;;  %v3611_v25 = vsel %vm3403_vm2, %v7822_v10, 0.0  ;;  %v7828_v22 = vpop.eup %6520 }
 0x370   :  { %v3448_v9 = vpop.xlane.xlu1 %3447  ;;  %3612 = vadd.xlane.f32.xlu1 %v3611_v25  ;;  %3624 = vadd.xlane.f32.xlu0 %v3623_v31  ;;  %v3632_v43 = vsel %vm3403_vm2, %v7828_v22, 0.0 }
 0x371   :  { %v3514_v52 = vsub.f32 %v7704_v4, %v3448_v9  ;;  %6534 = vpow2.f32 %v3554_v26 }
 0x372   :  { %v7831_v19 = vpop.eup %6522 }
 0x373   :  { %v3560_v51 = vmul.f32 1.442695, %v3514_v52  ;;  %v3614_v34 = vsel %vm3403_vm2, %v7831_v19, 0.0  ;;  %v7837_v16 = vpop.eup %6524 }
 0x374   :  { %v3478_v27 = vpop.xlane.xlu1 %3477  ;;  %3633 = vadd.xlane.f32.xlu1 %v3632_v43  ;;  %3615 = vadd.xlane.f32.xlu0 %v3614_v34  ;;  %v3635_v4 = vsel %vm3403_vm2, %v7837_v16, 0.0 }
 0x375   :  { %6536 = vpow2.f32 %v3560_v51 }
 0x376   :  { %v7839_v57 = vpop.eup %6526 }
 0x377   :  { %8491 = vst [vmem:[#allocation15_spill] sm:$0xff] %v7839_v57  ;;  %v7843_v21 = vpop.eup %6528  ;;  %v3644_v61 = vsel %vm3403_vm2, %v7839_v57, 0.0 }
 0x378   :  { %v3460_v47 = vpop.xlane.xlu1 %3459  ;;  %3636 = vadd.xlane.f32.xlu0 %v3635_v4  ;;  %3645 = vadd.xlane.f32.xlu1 %v3644_v61  ;;  %v3617_v26 = vsel %vm3403_vm2, %v7843_v21, 0.0  ;;  %v3469_v4 = vpop.xlane.xlu0 %3468 }
 0x379   :  { %v3518_v36 = vsub.f32 %v7720_v41, %v3460_v47 }
 0x37a   :  { %v7848_v53 = vpop.eup %6530 }
 0x37b   :  { %v3568_v32 = vmul.f32 1.442695, %v3518_v36  ;;  %v3626_v2 = vsel %vm3403_vm2, %v7848_v53, 0.0  ;;  %v7854_v25 = vpop.eup %6532 }
 0x37c   :  { %8492 = vst [vmem:[#allocation16_spill] sm:$0xff] %v7854_v25  ;;  %3618 = vadd.xlane.f32.xlu0 %v3617_v26  ;;  %3627 = vadd.xlane.f32.xlu1 %v3626_v2  ;;  %v3647_v31 = vsel %vm3403_vm2, %v7854_v25, 0.0  ;;  %v3451_v47 = vpop.xlane.xlu0 %3450  ;;  %v3490_v2 = vpop.xlane.xlu1 %3489  ;;  %v3520_v26 = vsub.f32 %v7706_v30, %v7819_v50 }
 0x37d   :  { %6538 = vpow2.f32 %v3568_v32  ;;  %v3515_v36 = vsub.f32 %v7712_v56, %v3451_v47 }
 0x37e   :  { %v7858_v9 = vpop.eup %6534 }
 0x37f   :  { %v3629_v51 = vsel %vm3403_vm2, %v7858_v9, 0.0 }
 0x380   :  { %3648 = vadd.xlane.f32.xlu0 %v3647_v31  ;;  %v3481_v61 = vpop.xlane.xlu0 %3480  ;;  %v3562_v31 = vmul.f32 1.442695, %v3515_v36  ;;  %v3472_v63 = vpop.xlane.xlu1 %3471 }
 0x381   :  { %v3522_v56 = vsub.f32 %v7736_v12, %v3472_v63 }
 0x382   :  { %v7860_v41 = vpop.eup %6536  ;;  %6540 = vpow2.f32 %v3562_v31 }
 0x383   :  { %8493 = vst [vmem:[#allocation17_spill] sm:$0xff] %v7860_v41  ;;  %v3638_v52 = vsel %vm3403_vm2, %v7860_v41, 0.0  ;;  %v3524_v41 = vsub.f32 %v7722_v3, %v3478_v27  ;;  %v3528_v3 = vsub.f32 %v7738_v33, %v3490_v2 }
 0x384   :  { %3639 = vadd.xlane.f32.xlu1 %v3638_v52  ;;  %3630 = vadd.xlane.f32.xlu0 %v3629_v51  ;;  %v3463_v32 = vpop.xlane.xlu0 %3462  ;;  %v3521_v51 = vsub.f32 %v7714_v60, %v3469_v4  ;;  %v3484_v25 = vpop.xlane.xlu1 %3483  ;;  %v3576_v60 = vmul.f32 1.442695, %v3522_v56 }
 0x385   :  { %v3519_v37 = vsub.f32 %v7728_v55, %v3463_v32  ;;  %v3580_v30 = vmul.f32 1.442695, %v3524_v41  ;;  %v3526_v4 = vsub.f32 %v7752_v54, %v3484_v25  ;;  %v3525_v55 = vsub.f32 %v7730_v6, %v3481_v61 }
 0x387   :  { %v3570_v57 = vmul.f32 1.442695, %v3519_v37  ;;  %v3584_v37 = vmul.f32 1.442695, %v3526_v4 }
 0x388   :  { %v3493_v52 = vpop.xlane.xlu0 %3492 }
 0x389   :  { %v3529_v33 = vsub.f32 %v7746_v11, %v3493_v52 }
 0x38a   :  { %v7866_v43 = vpop.eup %6538  ;;  %v3496_v12 = vpop.xlane.xlu1 %3495 }
 0x38b   :  { %8494 = vst [vmem:[#allocation18_spill] sm:$0xff] %v7866_v43  ;;  %v3650_v34 = vsel %vm3403_vm2, %v7866_v43, 0.0  ;;  %v3574_v43 = vmul.f32 1.442695, %v3521_v51  ;;  %v3530_v54 = vsub.f32 %v7762_v42, %v3496_v12 }
 0x38c   :  { %3651 = vadd.xlane.f32.xlu1 %v3650_v34  ;;  %v3572_v34 = vmul.f32 1.442695, %v3520_v26  ;;  %v3475_v47 = vpop.xlane.xlu0 %3474  ;;  %v3590_v26 = vmul.f32 1.442695, %v3529_v33 }
 0x38d   :  { %v3523_v50 = vsub.f32 %v7744_v62, %v3475_v47  ;;  %v3592_v32 = vmul.f32 1.442695, %v3530_v54 }
 0x38e   :  { %6542 = vpow2.f32 %v3572_v34 }
 0x38f   :  { %6544 = vpow2.f32 %v3574_v43  ;;  %v3578_v36 = vmul.f32 1.442695, %v3523_v50  ;;  %v7885_v63 = vpop.eup %6540  ;;  %v3582_v43 = vmul.f32 1.442695, %v3525_v55 }
 0x390   :  { %6546 = vpow2.f32 %v3570_v57  ;;  %v3487_v27 = vpop.xlane.xlu0 %3486  ;;  %v3588_v57 = vmul.f32 1.442695, %v3528_v3  ;;  %v3641_v6 = vsel %vm3403_vm2, %v7885_v63, 0.0 }
 0x391   :  { %6548 = vpow2.f32 %v3580_v30  ;;  %v3527_v62 = vsub.f32 %v7758_v1, %v3487_v27 }
 0x392   :  { %6550 = vpow2.f32 %v3576_v60 }
 0x393   :  { %6552 = vpow2.f32 %v3578_v36  ;;  %v3586_v41 = vmul.f32 1.442695, %v3527_v62 }
 0x394   :  { %6554 = vpow2.f32 %v3584_v37  ;;  %v3499_v42 = vpop.xlane.xlu0 %3498 }
 0x395   :  { %6556 = vpow2.f32 %v3582_v43  ;;  %v3531_v51 = vsub.f32 %v7766_v38, %v3499_v42 }
 0x396   :  { %6558 = vpow2.f32 %v3588_v57 }
 0x397   :  { %6560 = vpow2.f32 %v3586_v41  ;;  %v3594_v47 = vmul.f32 1.442695, %v3531_v51 }
 0x398   :  { %6562 = vpow2.f32 %v3592_v32 }
 0x399   :  { %6564 = vpow2.f32 %v3590_v26 }
 0x39a   :  { %1972 = vrot.lane.b32.xlu0 %v6923_v0, %s6744_s28  ;;  %6566 = vpow2.f32 %v3594_v47 }
 0x39b   :  { %v7891_v25 = vpop.eup %6542 }
 0x39c   :  { %v7894_v61 = vpop.eup %6544  ;;  %v3656_v1 = vsel %vm3403_vm2, %v7891_v25, 0.0 }
 0x39d   :  { %1976 = vrot.lane.b32.xlu1 %v6923_v0, %s6750_s3  ;;  %v7898_v2 = vpop.eup %6546  ;;  %v3659_v11 = vsel %vm3403_vm2, %v7894_v61, 0.0 }
 0x39e   :  { %v7900_v31 = vpop.eup %6548  ;;  %v3653_v52 = vsel %vm3403_vm2, %v7898_v2, 0.0 }
 0x39f   :  { %v7907_v34 = vpop.eup %6550  ;;  %v3668_v30 = vsel %vm3403_vm2, %v7900_v31, 0.0 }
 0x3a0   :  { %v7909_v56 = vpop.eup %6552  ;;  %v3662_v38 = vsel %vm3403_vm2, %v7907_v34, 0.0 }
 0x3a1   :  { %v7915_v50 = vpop.eup %6554  ;;  %v3665_v55 = vsel %vm3403_vm2, %v7909_v56, 0.0 }
 0x3a2   :  { %v7917_v60 = vpop.eup %6556  ;;  %v3674_v4 = vsel %vm3403_vm2, %v7915_v50, 0.0 }
 0x3a3   :  { %v7923_v36 = vpop.eup %6558  ;;  %v3671_v27 = vsel %vm3403_vm2, %v7917_v60, 0.0 }
 0x3a4   :  { %v7925_v3 = vpop.eup %6560  ;;  %v3680_v37 = vsel %vm3403_vm2, %v7923_v36, 0.0 }
 0x3a5   :  { %v7931_v12 = vpop.eup %6562  ;;  %v3677_v62 = vsel %vm3403_vm2, %v7925_v3, 0.0 }
 0x3a6   :  { %v3686_v43 = vsel %vm3403_vm2, %v7931_v12, 0.0  ;;  %v7937_v57 = vpop.eup %6564 }
 0x3a7   :  { %v3683_v54 = vsel %vm3403_vm2, %v7937_v57, 0.0 }
 0x3b9   :  { %3642 = vadd.xlane.f32.xlu0 %v3641_v6  ;;  %v7941_v6 = vpop.eup %6566 }
 0x3ba   :  { %v3689_v33 = vsel %vm3403_vm2, %v7941_v6, 0.0 }
 0x3bd   :  { %3657 = vadd.xlane.f32.xlu0 %v3656_v1 }
 0x3c1   :  { %3660 = vadd.xlane.f32.xlu1 %v3659_v11  ;;  %3654 = vadd.xlane.f32.xlu0 %v3653_v52 }
 0x3c5   :  { %3669 = vadd.xlane.f32.xlu1 %v3668_v30  ;;  %3663 = vadd.xlane.f32.xlu0 %v3662_v38 }
 0x3c9   :  { %3675 = vadd.xlane.f32.xlu1 %v3674_v4  ;;  %3666 = vadd.xlane.f32.xlu0 %v3665_v55  ;;  %v8495_v55 = vpack.i.b16 %v7613_v35, %v7594_v7 }
 0x3cd   :  { %3681 = vadd.xlane.f32.xlu1 %v3680_v37  ;;  %3672 = vadd.xlane.f32.xlu0 %v3671_v27  ;;  %v8496_v37 = vmov 0.0  }
 0x3d1   :  { %3687 = vadd.xlane.f32.xlu1 %v3686_v43  ;;  %3678 = vadd.xlane.f32.xlu0 %v3677_v62 }
 0x3d5   :  { %3684 = vadd.xlane.f32.xlu0 %v3683_v54 }
 0x3d9   :  { %3690 = vadd.xlane.f32.xlu0 %v3689_v33 }
 0x3de   :  { %v3598_v41 = vpop.xlane.xlu1 %3597 }
 0x3df   :  { %6568 = vrcp.f32 %v3598_v41 }
 0x3e2   :  { %v3601_v32 = vpop.xlane.xlu0 %3600 }
 0x3e3   :  { %6570 = vrcp.f32 %v3601_v32 }
 0x3e5   :  { %v3604_v1 = vpop.xlane.xlu1 %3603 }
 0x3e6   :  { %6572 = vrcp.f32 %v3604_v1 }
 0x3e9   :  { %v3607_v42 = vpop.xlane.xlu0 %3606 }
 0x3ea   :  { %6574 = vrcp.f32 %v3607_v42 }
 0x3ec   :  { %v6569_v26 = vpop.eup %6568 }
 0x3ed   :  { %v3724_v11 = vmul.f32 %v6569_v26, %v7782_v24 }
 0x3f0   :  { %v6571_v51 = vpop.eup %6570 }
 0x3f1   :  { %v3725_v52 = vmul.f32 %v6571_v51, %v7787_v45  ;;  %v3622_v30 = vpop.xlane.xlu1 %3621 }
 0x3f3   :  { %v3756_v47 = vpack.c.bf16 %v3725_v52, %v3724_v11  ;;  %v6573_v4 = vpop.eup %6572 }
 0x3f4   :  { %v3726_v45 = vmul.f32 %v6573_v4, %v7793_v17 }
 0x3f5   :  { %v3610_v38 = vpop.xlane.xlu0 %3609  ;;  %6243 = vmatmul.mubr.msk.bf16.vlgmr.msra.gmra.mxu0 %vm3403_vm2, %v3756_v47  ;;  %v8497_v47 = vpack.i.b16 %v7616_v23, %v7603_v20  ;;  %v2015_v20 = vshrl.u32 %v7770_v49, 16 }
 0x3f6   :  { %6253 = vmatpush3.bf16.msra.mxu0 %v8495_v55  ;;  %6254 = vmatprep.mubr.msk.bf16.mxu0 %vm6752_vm0, %v8496_v37  ;;  %6576 = vrcp.f32 %v3610_v38 }
 0x3f7   :  { %6264 = vmatprep.subr.bf16.mxu0 %v8496_v37  ;;  %v6575_v27 = vpop.eup %6574 }
 0x3f8   :  { %v3727_v62 = vmul.f32 %v6575_v27, %v7799_v28  ;;  %v2014_v27 = vshrl.u32 %v6917_v59, 16 }
 0x3f9   :  { %v3613_v24 = vpop.xlane.xlu1 %3612  ;;  %v3625_v43 = vpop.xlane.xlu0 %3624 }
 0x3fa   :  { %6578 = vrcp.f32 %v3613_v24  ;;  %v3757_v54 = vpack.c.bf16 %v3727_v62, %v3726_v45  ;;  %v2030_v45 = vshrl.u32 %v6923_v0, 16 }
 0x3fb   :  { %6580 = vrcp.f32 %v3625_v43  ;;  %v2012_v43 = vpack.i.b16 %v7770_v49, %v6917_v59  ;;  %v2016_v49 = vpack.i.b16 %v2015_v20, %v2014_v27 }
 0x3fc   :  { %6249 = vmatmul.mubr.msk.bf16.vlgmr.msra.gmra.mxu1 %vm3403_vm2, %v3757_v54  ;;  %6582 = vrcp.f32 %v3622_v30 }
 0x3fd   :  { %v3616_v33 = vpop.xlane.xlu0 %3615  ;;  %v3634_v41 = vpop.xlane.xlu1 %3633  ;;  %6259 = vmatpush3.bf16.msra.mxu1 %v7631_v58  ;;  %6260 = vmatprep.mubr.msk.bf16.mxu1 %vm6752_vm0, %v8496_v37 }
 0x3fe   :  { %6270 = vmatprep.subr.bf16.mxu1 %v8496_v37  ;;  %6584 = vrcp.f32 %v3616_v33 }
 0x401   :  { %v3637_v7 = vpop.xlane.xlu0 %3636  ;;  %v7961_v35 = vpop.xlane.xlu1 %3645 }
 0x402   :  { %6586 = vrcp.f32 %v3637_v7 }
 0x403   :  { %v6577_v17 = vpop.eup %6576 }
 0x404   :  { %v3728_v1 = vmul.f32 %v6577_v17, %v7813_v39 }
 0x405   :  { %v3619_v28 = vpop.xlane.xlu0 %3618  ;;  %v3628_v26 = vpop.xlane.xlu1 %3627 }
 0x406   :  { %6588 = vrcp.f32 %v3619_v28  ;;  %v2022_v28 = vshrl.u32 %v7774_v44, 16 }
 0x407   :  { %v6579_v32 = vpop.eup %6578  ;;  %6590 = vrcp.f32 %v3634_v41  ;;  %v8498_v41 = vpack.i.b16 %v7618_v5, %v7605_v29 }
 0x408   :  { %v3729_v58 = vmul.f32 %v6579_v32, %v7822_v10  ;;  %v6581_v11 = vpop.eup %6580  ;;  %6592 = vrcp.f32 %v3628_v26  ;;  %v2020_v32 = vpack.i.b16 %v7772_v48, %v7774_v44 }
 0x409   :  { %v7965_v42 = vpop.xlane.xlu0 %3648  ;;  %v6583_v52 = vpop.eup %6582  ;;  %v3733_v39 = vmul.f32 %v6581_v11, %v7817_v46  ;;  %v2028_v46 = vpack.i.b16 %v7776_v13, %v6923_v0 }
 0x40a   :  { %v3758_v51 = vpack.c.bf16 %v3729_v58, %v3728_v1  ;;  %v3732_v10 = vmul.f32 %v6583_v52, %v7807_v40  ;;  %v2031_v40 = vshrl.u32 %v7776_v13, 16 }
 0x40b   :  { %v6585_v38 = vpop.eup %6584  ;;  %v2179_v5 = vcombine.high %v2012_v43, %v2028_v46 }
 0x40c   :  { %6255 = vmatmul.mubr.msk.bf16.vlgmr.msra.gmra.mxu0 %vm3403_vm2, %v3758_v51  ;;  %v3760_v23 = vpack.c.bf16 %v3733_v39, %v3732_v10  ;;  %v3730_v62 = vmul.f32 %v6585_v38, %v7831_v19  ;;  %v2032_v13 = vpack.i.b16 %v2031_v40, %v2030_v45  ;;  %v2178_v19 = vcombine.low %v2012_v43, %v2028_v46 }
 0x40d   :  { %6265 = vmatpush3.bf16.msra.mxu0 %v8497_v47  ;;  %v3631_v30 = vpop.xlane.xlu0 %3630  ;;  %6266 = vmatprep.mubr.msk.bf16.mxu0 %vm6752_vm0, %v8496_v37  ;;  %v7976_v4 = vpop.xlane.xlu1 %3639 }
 0x40e   :  { %6276 = vmatprep.subr.bf16.mxu0 %v8496_v37  ;;  %6594 = vrcp.f32 %v3631_v30  ;;  %v2186_v52 = vrot.slane %v2178_v19, %v6934_v14  ;;  %v2247_v10 = vcombine.high %v2016_v49, %v2032_v13 }
 0x40f   :  { %v6587_v55 = vpop.eup %6586  ;;  %6596 = vrcp.f32 %v7965_v42 }
 0x410   :  { %v3737_v0 = vmul.f32 %v6587_v55, %v7837_v16  ;;  %6598 = vrcp.f32 %v7961_v35 }
 0x411   :  { %v1973_v17 = vpop.permute.xlu0 %1972  ;;  %6600 = vrcp.f32 %v7976_v4 }
 0x412   :  { %v2038_v58 = vshrl.u32 %v1973_v17, 16 }
 0x413   :  { %v6589_v24 = vpop.eup %6588 }
 0x414   :  { %6267 = vmatmul.mubr.msk.bf16.vlgmr.msra.gmra.mxu0 %vm3403_vm2, %v3760_v23  ;;  %v3731_v54 = vmul.f32 %v6589_v24, %v7843_v21  ;;  %v6591_v33 = vpop.eup %6590  ;;  %v2023_v21 = vshrl.u32 %v7772_v48, 16 }
 0x415   :  { %6277 = vmatpush3.bf16.msra.mxu0 %v8498_v41  ;;  %v7992_v7 = vpop.xlane.xlu1 %3651  ;;  %6278 = vmatprep.mubr.msk.bf16.mxu0 %vm6752_vm0, %v8496_v37  ;;  %v3736_v29 = vmul.f32 %v6591_v33, %v7828_v22  ;;  %v6593_v1 = vpop.eup %6592  ;;  %v2246_v22 = vcombine.low %v2016_v49, %v2032_v13 }
 0x416   :  { %v3759_v59 = vpack.c.bf16 %v3731_v54, %v3730_v62  ;;  %6288 = vmatprep.subr.bf16.mxu0 %v8496_v37  ;;  %v2024_v30 = vpack.i.b16 %v2023_v21, %v2022_v28  ;;  %v3734_v38 = vmul.f32 %v6593_v1, %v7848_v53 }
 0x417   :  { %v3762_v11 = vpack.c.bf16 %v3737_v0, %v3736_v29  ;;  %v2254_v43 = vrot.slane %v2246_v22, %v6934_v14 }
 0x418   :  { %6261 = vmatmul.mubr.msk.bf16.vlgmr.msra.gmra.mxu1 %vm3403_vm2, %v3759_v59 }
 0x419   :  { %6271 = vmatpush3.bf16.msra.mxu1 %v7634_v8  ;;  %v1977_v16 = vpop.permute.xlu1 %1976  ;;  %6272 = vmatprep.mubr.msk.bf16.mxu1 %vm6752_vm0, %v8496_v37  ;;  %v2193_v8 = vrot.slane %v2179_v5, %v6934_v14 }
 0x41a   :  { %v2036_v26 = vpack.i.b16 %v1977_v16, %v1973_v17  ;;  %v2039_v51 = vshrl.u32 %v1977_v16, 16  ;;  %6282 = vmatprep.subr.bf16.mxu1 %v8496_v37 }
 0x41b   :  { %v6595_v47 = vpop.eup %6594 }
 0x41c   :  { %v2040_v39 = vpack.i.b16 %v2039_v51, %v2038_v58  ;;  %v2194_v48 = vcombine.low %v2020_v32, %v2036_v26  ;;  %v2195_v44 = vcombine.high %v2020_v32, %v2036_v26  ;;  %6279 = vmatmul.mubr.msk.bf16.vlgmr.msra.gmra.mxu0 %vm3403_vm2, %v3762_v11  ;;  %v3735_v55 = vmul.f32 %v6595_v47, %v7858_v9 }
 0x41d   :  { %6290 = vmatprep.mubr.msk.bf16.mxu0 %vm6752_vm0, %v8496_v37  ;;  %v2261_v9 = vrot.slane %v2247_v10, %v6934_v14 }
 0x41e   :  { %v2202_v27 = vrot.slane %v2194_v48, %v6934_v14  ;;  %v2209_v20 = vrot.slane %v2195_v44, %v6934_v14  ;;  %v2262_v23 = vcombine.low %v2024_v30, %v2040_v39  ;;  %v2263_v24 = vcombine.high %v2024_v30, %v2040_v39 }
 0x41f   :  { %v3761_v45 = vpack.c.bf16 %v3735_v55, %v3734_v38 }
 0x420   :  { %v2210_v46 = vcombine.low %v2186_v52, %v2202_v27  ;;  %v2211_v40 = vcombine.high %v2186_v52, %v2202_v27  ;;  %v2226_v62 = vcombine.low %v2193_v8, %v2209_v20  ;;  %v2227_v53 = vcombine.high %v2193_v8, %v2209_v20 }
 0x421   :  { %v2270_v54 = vrot.slane %v2262_v23, %v6934_v14  ;;  %v2277_v33 = vrot.slane %v2263_v24, %v6934_v14  ;;  %6273 = vmatmul.mubr.msk.bf16.vlgmr.msra.gmra.mxu1 %vm3403_vm2, %v3761_v45  ;;  %v6597_v23 = vpop.eup %6596 }
 0x422   :  { %v2218_v41 = vrot.slane %v2210_v46, %v6938_v18  ;;  %v2225_v59 = vrot.slane %v2211_v40, %v6938_v18  ;;  %v2234_v42 = vrot.slane %v2226_v62, %v6938_v18  ;;  %v2241_v0 = vrot.slane %v2227_v53, %v6938_v18  ;;  %6283 = vmatpush3.bf16.msra.mxu1 %v7636_v15  ;;  %v6599_v45 = vpop.eup %6598  ;;  %v8499_v62 = vld [vmem:[#allocation16_spill] sm:$0xff] }
 0x423   :  { %v2278_v49 = vcombine.low %v2254_v43, %v2270_v54  ;;  %v2279_v13 = vcombine.high %v2254_v43, %v2270_v54  ;;  %v2294_v19 = vcombine.low %v2261_v9, %v2277_v33  ;;  %v2295_v35 = vcombine.high %v2261_v9, %v2277_v33  ;;  %6284 = vmatprep.mubr.msk.bf16.mxu1 %vm6752_vm0, %v8496_v37  ;;  %v8500_v33 = vld [vmem:[#allocation15_spill] sm:$0xff] }
 0x424   :  { %v2450_v17 = vcombine.low %v2218_v41, %v2225_v59  ;;  %v5967_v21 = vcombine.high %v2218_v41, %v2225_v59  ;;  %v2466_v28 = vcombine.low %v2234_v42, %v2241_v0  ;;  %v5968_v29 = vcombine.high %v2234_v42, %v2241_v0  ;;  %6294 = vmatprep.subr.bf16.mxu1 %v8496_v37 }
 0x425   :  { %v2286_v5 = vrot.slane %v2278_v49, %v6938_v18  ;;  %v2293_v32 = vrot.slane %v2279_v13, %v6938_v18  ;;  %v2302_v16 = vrot.slane %v2294_v19, %v6938_v18  ;;  %v2309_v15 = vrot.slane %v2295_v35, %v6938_v18 }
 0x426   :  { %v8037_v1 = vrot.slane %v2450_v17, %v6934_v14  ;;  %v8040_v58 = vrot.slane %v5967_v21, %v6934_v14  ;;  %v8043_v26 = vrot.slane %v2466_v28, %v6934_v14  ;;  %v8046_v51 = vrot.slane %v5968_v29, %v6934_v14  ;;  %v6601_v17 = vpop.eup %6600 }
 0x427   :  { %v2518_v11 = vcombine.low %v2286_v5, %v2293_v32  ;;  %v5969_v52 = vcombine.high %v2286_v5, %v2293_v32  ;;  %v2534_v22 = vcombine.low %v2302_v16, %v2309_v15  ;;  %v5970_v47 = vcombine.high %v2302_v16, %v2309_v15  ;;  %v8501_v15 = vld [vmem:[#allocation17_spill] sm:$0xff] }
 0x428   :  { %v2482_v30 = vcombine.low %v8037_v1, %v8040_v58  ;;  %v2498_v39 = vcombine.low %v8043_v26, %v8046_v51  ;;  %v3741_v53 = vmul.f32 %v6597_v23, %v8499_v62  ;;  %v3740_v41 = vmul.f32 %v6599_v45, %v8500_v33  ;;  %v8502_v45 = vld [vmem:[#allocation18_spill] sm:$0xff] }
 0x429   :  { %v2525_v48 = vrot.slane %v2518_v11, %v6934_v14  ;;  %v2533_v44 = vrot.slane %v5969_v52, %v6934_v14  ;;  %v2541_v8 = vrot.slane %v2534_v22, %v6934_v14  ;;  %v2549_v10 = vrot.slane %v5970_v47, %v6934_v14 }
 0x42a   :  { %v2490_v38 = vrot.slane %v2482_v30, %v6938_v18  ;;  %v2506_v55 = vrot.slane %v2498_v39, %v6938_v18  ;;  %v3764_v42 = vpack.c.bf16 %v3741_v53, %v3740_v41  ;;  %v3738_v11 = vmul.f32 %v6601_v17, %v8501_v15 }
 0x42b   :  { %v2550_v27 = vcombine.low %v2525_v48, %v2533_v44  ;;  %v2566_v20 = vcombine.low %v2541_v8, %v2549_v10  ;;  %v2551_v32 = vcombine.high %v2525_v48, %v2533_v44  ;;  %v2567_v16 = vcombine.high %v2541_v8, %v2549_v10 }
 0x42c   :  { %v2514_v46 = vcombine.low %v2490_v38, %v2506_v55  ;;  %v8064_v59 = vcombine.high %v2490_v38, %v2506_v55  ;;  %v2499_v30 = vcombine.high %v8043_v26, %v8046_v51 }
 0x42d   :  { %v2558_v24 = vrot.slane %v2550_v27, %v6938_v18  ;;  %v2574_v43 = vrot.slane %v2566_v20, %v6938_v18  ;;  %v2565_v48 = vrot.slane %v2551_v32, %v6938_v18  ;;  %v2581_v44 = vrot.slane %v2567_v16, %v6938_v18 }
 0x42e   :  { %v2622_v47 = vshrl.u32 %v2514_v46, 16 }
 0x42f   :  { %v2582_v40 = vcombine.low %v2558_v24, %v2574_v43  ;;  %v8061_v54 = vcombine.high %v2558_v24, %v2574_v43  ;;  %v2584_v55 = vcombine.low %v2565_v48, %v2581_v44 }
 0x431   :  { %v2620_v9 = vpack.i.b16 %v2582_v40, %v2514_v46  ;;  %v2628_v0 = vpack.i.b16 %v8061_v54, %v8064_v59  ;;  %v2623_v5 = vshrl.u32 %v2582_v40, 16  ;;  %v2631_v24 = vshrl.u32 %v8061_v54, 16 }
 0x433   :  { %6289 = vmatpush3.bf16.msra.mxu0 %v2620_v9  ;;  %v2624_v38 = vpack.i.b16 %v2623_v5, %v2622_v47  ;;  %v2630_v9 = vshrl.u32 %v8064_v59, 16  ;;  %v2639_v59 = vshrl.u32 %v2584_v55, 16 }
 0x434   :  { %6300 = vmatprep.subr.bf16.mxu0 %v8496_v37 }
 0x436   :  { %6291 = vmatmul.mubr.msk.bf16.vlgmr.msra.gmra.mxu0 %vm3403_vm2, %v3764_v42 }
 0x437   :  { %6301 = vmatpush3.bf16.msra.mxu0 %v2628_v0  ;;  %6302 = vmatprep.mubr.msk.bf16.mxu0 %vm6752_vm0, %v8496_v37 }
 0x438   :  { %6312 = vmatprep.subr.bf16.mxu0 %v8496_v37 }
 0x442   :  { %v3643_v49 = vpop.xlane.xlu0 %3642 }
 0x443   :  { %6602 = vrcp.f32 %v3643_v49 }
 0x446   :  { %v3658_v13 = vpop.xlane.xlu0 %3657 }
 0x447   :  { %6604 = vrcp.f32 %v3658_v13 }
 0x448   :  { %6606 = vrcp.f32 %v7992_v7  ;;  %v2483_v7 = vcombine.high %v8037_v1, %v8040_v58  ;;  %v2513_v58 = vrot.slane %v2499_v30, %v6938_v18 }
 0x44a   :  { %v3661_v19 = vpop.xlane.xlu1 %3660  ;;  %v3655_v35 = vpop.xlane.xlu0 %3654  ;;  %v2497_v1 = vrot.slane %v2483_v7, %v6938_v18 }
 0x44b   :  { %6608 = vrcp.f32 %v3661_v19 }
 0x44c   :  { %6610 = vrcp.f32 %v3655_v35  ;;  %v2516_v62 = vcombine.low %v2497_v1, %v2513_v58  ;;  %v2517_v15 = vcombine.high %v2497_v1, %v2513_v58 }
 0x44e   :  { %v3670_v21 = vpop.xlane.xlu1 %3669  ;;  %v3664_v28 = vpop.xlane.xlu0 %3663  ;;  %v2636_v41 = vpack.i.b16 %v2584_v55, %v2516_v62  ;;  %v2638_v35 = vshrl.u32 %v2516_v62, 16 }
 0x44f   :  { %6612 = vrcp.f32 %v3664_v28 }
 0x450   :  { %v6603_v29 = vpop.eup %6602  ;;  %v2640_v28 = vpack.i.b16 %v2639_v59, %v2638_v35 }
 0x451   :  { %v3739_v4 = vmul.f32 %v6603_v29, %v7885_v63  ;;  %v2585_v29 = vcombine.high %v2565_v48, %v2581_v44 }
 0x452   :  { %v3676_v52 = vpop.xlane.xlu1 %3675  ;;  %v3667_v22 = vpop.xlane.xlu0 %3666 }
 0x453   :  { %v3763_v39 = vpack.c.bf16 %v3739_v4, %v3738_v11  ;;  %6614 = vrcp.f32 %v3667_v22  ;;  %v2644_v11 = vpack.i.b16 %v2585_v29, %v2517_v15  ;;  %v2647_v4 = vshrl.u32 %v2585_v29, 16 }
 0x454   :  { %v6605_v63 = vpop.eup %6604  ;;  %6616 = vrcp.f32 %v3670_v21 }
 0x455   :  { %6285 = vmatmul.mubr.msk.bf16.vlgmr.msra.gmra.mxu1 %vm3403_vm2, %v3763_v39  ;;  %v6607_v26 = vpop.eup %6606  ;;  %v3744_v20 = vmul.f32 %v6605_v63, %v7891_v25  ;;  %v2632_v25 = vpack.i.b16 %v2631_v24, %v2630_v9 }
 0x456   :  { %6295 = vmatpush3.bf16.msra.mxu1 %v2624_v38  ;;  %v3673_v8 = vpop.xlane.xlu0 %3672  ;;  %6296 = vmatprep.mubr.msk.bf16.mxu1 %vm6752_vm0, %v8496_v37  ;;  %v3682_v10 = vpop.xlane.xlu1 %3681  ;;  %v3742_v46 = vmul.f32 %v6607_v26, %v8502_v45 }
 0x457   :  { %6306 = vmatprep.subr.bf16.mxu1 %v8496_v37  ;;  %6618 = vrcp.f32 %v3673_v8 }
 0x458   :  { %v6609_v51 = vpop.eup %6608  ;;  %6620 = vrcp.f32 %v3676_v52 }
 0x459   :  { %v6611_v27 = vpop.eup %6610  ;;  %v3745_v23 = vmul.f32 %v6609_v51, %v7894_v61 }
 0x45a   :  { %v3679_v43 = vpop.xlane.xlu0 %3678  ;;  %v3743_v40 = vmul.f32 %v6611_v27, %v7898_v2  ;;  %v3688_v61 = vpop.xlane.xlu1 %3687 }
 0x45b   :  { %v3766_v53 = vpack.c.bf16 %v3745_v23, %v3744_v20  ;;  %6622 = vrcp.f32 %v3679_v43 }
 0x45c   :  { %v3765_v33 = vpack.c.bf16 %v3743_v40, %v3742_v46  ;;  %6624 = vrcp.f32 %v3682_v10  ;;  %v6613_v42 = vpop.eup %6612 }
 0x45d   :  { %6303 = vmatmul.mubr.msk.bf16.vlgmr.msra.gmra.mxu0 %vm3403_vm2, %v3766_v53  ;;  %v3746_v49 = vmul.f32 %v6613_v42, %v7907_v34 }
 0x45e   :  { %6297 = vmatmul.mubr.msk.bf16.vlgmr.msra.gmra.mxu1 %vm3403_vm2, %v3765_v33  ;;  %6313 = vmatpush3.bf16.msra.mxu0 %v2636_v41  ;;  %v3685_v54 = vpop.xlane.xlu0 %3684 }
 0x45f   :  { %6307 = vmatpush3.bf16.msra.mxu1 %v2632_v25  ;;  %6626 = vrcp.f32 %v3685_v54  ;;  %6308 = vmatprep.mubr.msk.bf16.mxu1 %vm6752_vm0, %v8496_v37 }
 0x460   :  { %6318 = vmatprep.subr.bf16.mxu1 %v8496_v37  ;;  %6314 = vmatprep.mubr.msk.bf16.mxu0 %vm6752_vm0, %v8496_v37  ;;  %v6615_v2 = vpop.eup %6614  ;;  %6628 = vrcp.f32 %v3688_v61 }
 0x461   :  { %6324 = vmatprep.subr.bf16.mxu0 %v8496_v37  ;;  %v3747_v13 = vmul.f32 %v6615_v2, %v7909_v56  ;;  %v6617_v19 = vpop.eup %6616 }
 0x462   :  { %v3691_v0 = vpop.xlane.xlu0 %3690  ;;  %v3748_v5 = vmul.f32 %v6617_v19, %v7900_v31 }
 0x463   :  { %6630 = vrcp.f32 %v3691_v0  ;;  %v3767_v17 = vpack.c.bf16 %v3747_v13, %v3746_v49 }
 0x464   :  { %v6619_v21 = vpop.eup %6618 }
 0x465   :  { %v3749_v32 = vmul.f32 %v6619_v21, %v7917_v60  ;;  %v6621_v16 = vpop.eup %6620  ;;  %v2646_v60 = vshrl.u32 %v2517_v15, 16 }
 0x466   :  { %6309 = vmatmul.mubr.msk.bf16.vlgmr.msra.gmra.mxu1 %vm3403_vm2, %v3767_v17  ;;  %v3750_v22 = vmul.f32 %v6621_v16, %v7915_v50 }
 0x467   :  { %6319 = vmatpush3.bf16.msra.mxu1 %v2640_v28  ;;  %6320 = vmatprep.mubr.msk.bf16.mxu1 %vm6752_vm0, %v8496_v37  ;;  %v3768_v34 = vpack.c.bf16 %v3749_v32, %v3748_v5  ;;  %v2648_v30 = vpack.i.b16 %v2647_v4, %v2646_v60 }
 0x468   :  { %6330 = vmatprep.subr.bf16.mxu1 %v8496_v37  ;;  %v6623_v56 = vpop.eup %6622 }
 0x469   :  { %v6625_v52 = vpop.eup %6624  ;;  %6315 = vmatmul.mubr.msk.bf16.vlgmr.msra.gmra.mxu0 %vm3403_vm2, %v3768_v34  ;;  %v3751_v31 = vmul.f32 %v6623_v56, %v7925_v3 }
 0x46a   :  { %6325 = vmatpush3.bf16.msra.mxu0 %v2644_v11  ;;  %6326 = vmatprep.mubr.msk.bf16.mxu0 %vm6752_vm0, %v8496_v37  ;;  %v3752_v39 = vmul.f32 %v6625_v52, %v7923_v36 }
 0x46b   :  { %v3769_v7 = vpack.c.bf16 %v3751_v31, %v3750_v22 }
 0x46c   :  { %v6627_v47 = vpop.eup %6626 }
 0x46d   :  { %v3753_v38 = vmul.f32 %v6627_v47, %v7937_v57  ;;  %v6629_v48 = vpop.eup %6628 }
 0x46e   :  { %6321 = vmatmul.mubr.msk.bf16.vlgmr.msra.gmra.mxu1 %vm3403_vm2, %v3769_v7  ;;  %v3754_v3 = vmul.f32 %v6629_v48, %v7931_v12 }
 0x46f   :  { %6331 = vmatpush3.bf16.msra.mxu1 %v2648_v30  ;;  %v3770_v44 = vpack.c.bf16 %v3753_v38, %v3752_v39  ;;  %6332 = vmatprep.mubr.msk.bf16.mxu1 %vm6752_vm0, %v8496_v37 }
 0x470   :  { %v6631_v50 = vpop.eup %6630 }
 0x471   :  { %v3755_v63 = vmul.f32 %v6631_v50, %v7941_v6  ;;  %6327 = vmatmul.mubr.msk.bf16.vlgmr.msra.gmra.mxu0 %vm3403_vm2, %v3770_v44 }
 0x473   :  { %v3771_v8 = vpack.c.bf16 %v3755_v63, %v3754_v3 }
 0x476   :  { %6333 = vmatmul.mubr.msk.bf16.vlgmr.msra.gmra.mxu1 %vm3403_vm2, %v3771_v8 }
 0x4b5   :  { %v3809_v36 = vpop.f32.mrf.mxu0 }
 0x4b7   :  { %v6244_v57 = vpop.f32.mrf.mxu0 }
 0x4b9   :  { %v3812_v1 = vpop.f32.mrf.mxu0 }
 0x4bb   :  { %v6245_v58 = vpop.f32.mrf.mxu0 }
 0x4bc   :  { %v3853_v26 = vpop.f32.mrf.mxu1 }
 0x4be   :  { %v6250_v51 = vpop.f32.mrf.mxu1 }
 0x4c0   :  { %v3856_v10 = vpop.f32.mrf.mxu1 }
 0x4c2   :  { %v6251_v55 = vpop.f32.mrf.mxu1 }
 0x4cc   :  { %v3897_v27 = vpop.f32.mrf.mxu0 }
 0x4cd   :  { %v4476_v24 = vcombine.low %v3809_v36, %v3897_v27  ;;  %v4477_v43 = vcombine.high %v3809_v36, %v3897_v27 }
 0x4ce   :  { %v6256_v37 = vpop.f32.mrf.mxu0 }
 0x4cf   :  { %v4484_v33 = vrot.slane %v4476_v24, %v6934_v14  ;;  %v4491_v41 = vrot.slane %v4477_v43, %v6934_v14 }
 0x4d0   :  { %v3900_v20 = vpop.f32.mrf.mxu0 }
 0x4d1   :  { %v4612_v54 = vcombine.low %v3812_v1, %v3900_v20  ;;  %v4613_v42 = vcombine.high %v3812_v1, %v3900_v20 }
 0x4d2   :  { %v6257_v23 = vpop.f32.mrf.mxu0 }
 0x4d3   :  { %v4620_v15 = vrot.slane %v4612_v54, %v6934_v14  ;;  %v4627_v34 = vrot.slane %v4613_v42, %v6934_v14 }
 0x4d4   :  { %v8125_v12 = vpop.f32.mrf.mxu0 }
 0x4d6   :  { %v6268_v6 = vpop.f32.mrf.mxu0 }
 0x4d8   :  { %v3941_v45 = vpop.f32.mrf.mxu1  ;;  %v8127_v46 = vpop.f32.mrf.mxu0 }
 0x4d9   :  { %v4492_v40 = vcombine.low %v3853_v26, %v3941_v45  ;;  %v4493_v62 = vcombine.high %v3853_v26, %v3941_v45 }
 0x4da   :  { %v6262_v53 = vpop.f32.mrf.mxu1  ;;  %v6269_v9 = vpop.f32.mrf.mxu0 }
 0x4db   :  { %v4500_v25 = vrot.slane %v4492_v40, %v6934_v14  ;;  %v4507_v61 = vrot.slane %v4493_v62, %v6934_v14 }
 0x4dc   :  { %v3944_v2 = vpop.f32.mrf.mxu1  ;;  %v8133_v59 = vpop.f32.mrf.mxu0 }
 0x4dd   :  { %v4540_v0 = vcombine.low %v4484_v33, %v4500_v25  ;;  %v4541_v49 = vcombine.high %v4484_v33, %v4500_v25  ;;  %v4556_v13 = vcombine.low %v4491_v41, %v4507_v61  ;;  %v4557_v19 = vcombine.high %v4491_v41, %v4507_v61 }
 0x4de   :  { %v4628_v35 = vcombine.low %v3856_v10, %v3944_v2  ;;  %v4629_v17 = vcombine.high %v3856_v10, %v3944_v2  ;;  %v6263_v21 = vpop.f32.mrf.mxu1  ;;  %v6280_v28 = vpop.f32.mrf.mxu0 }
 0x4df   :  { %v4548_v29 = vrot.slane %v4540_v0, %v6938_v18  ;;  %v4555_v5 = vrot.slane %v4541_v49, %v6938_v18  ;;  %v4564_v32 = vrot.slane %v4556_v13, %v6938_v18  ;;  %v4571_v16 = vrot.slane %v4557_v19, %v6938_v18  ;;  %v6488_v19 = vld [vmem:[#allocation8 + $0x78] sm:$0xff]  }
 0x4e0   :  { %v4636_v56 = vrot.slane %v4628_v35, %v6934_v14  ;;  %v4643_v11 = vrot.slane %v4629_v17, %v6934_v14  ;;  %v8143_v4 = vpop.f32.mrf.mxu0  ;;  %v6489_v35 = vld [vmem:[#allocation8 + $0x38] sm:$0xff]   ;;  %v6490_v17 = vld [vmem:[#allocation8 + $0x70] sm:$0xff]   ;;  %6116 = vmatprep.subr.bf16.mxu0 %v6488_v19 }
 0x4e1   :  { %v6003_v52 = vcombine.low %v4548_v29, %v4555_v5  ;;  %v6005_v22 = vcombine.high %v4548_v29, %v4555_v5  ;;  %v6007_v31 = vcombine.low %v4564_v32, %v4571_v16  ;;  %v6009_v60 = vcombine.high %v4564_v32, %v4571_v16  ;;  %v8145_v47 = vpop.f32.mrf.mxu1  ;;  %6117 = vmatpush3.bf16.msra.mxu0 %v6489_v35 }
 0x4e2   :  { %v4676_v7 = vcombine.low %v4620_v15, %v4636_v56  ;;  %v4677_v30 = vcombine.high %v4620_v15, %v4636_v56  ;;  %v4692_v39 = vcombine.low %v4627_v34, %v4643_v11  ;;  %v4693_v38 = vcombine.high %v4627_v34, %v4643_v11  ;;  %v6281_v48 = vpop.f32.mrf.mxu0  ;;  %v6491_v15 = vld [vmem:[#allocation8 + $0x30] sm:$0xff]   ;;  %6118 = vmatprep.subr.bf16.mxu0 %v6490_v17 }
 0x4e3   :  { %v5028_v44 = vrot.slane %v6003_v52, %v6934_v14  ;;  %v5044_v50 = vrot.slane %v6005_v22, %v6934_v14  ;;  %v5060_v3 = vrot.slane %v6007_v31, %v6934_v14  ;;  %v5076_v63 = vrot.slane %v6009_v60, %v6934_v14  ;;  %v6274_v8 = vpop.f32.mrf.mxu1  ;;  %v6492_v52 = vld [vmem:[#allocation8 + $0x68] sm:$0xff]   ;;  %v6496_v48 = vld [vmem:[#allocation8 + $0x58] sm:$0xff]  }
 0x4e4   :  { %v4684_v36 = vrot.slane %v4676_v7, %v6938_v18  ;;  %v4691_v57 = vrot.slane %v4677_v30, %v6938_v18  ;;  %v4700_v1 = vrot.slane %v4692_v39, %v6938_v18  ;;  %v4707_v58 = vrot.slane %v4693_v38, %v6938_v18  ;;  %v6493_v31 = vld [vmem:[#allocation8 + $0x28] sm:$0xff]   ;;  %v6494_v7 = vld [vmem:[#allocation8 + $0x60] sm:$0xff]  }
 0x4e5   :  { %v8155_v26 = vpop.f32.mrf.mxu1  ;;  %v5085_v51 = vcombine.high %v5028_v44, %v5044_v50  ;;  %v5117_v10 = vcombine.high %v5060_v3, %v5076_v63  ;;  %v5084_v53 = vcombine.low %v5028_v44, %v5044_v50  ;;  %v5116_v9 = vcombine.low %v5060_v3, %v5076_v63  ;;  %6119 = vmatpush3.bf16.msra.mxu0 %v6491_v15  ;;  %v6495_v39 = vld [vmem:[#allocation8 + $0x20] sm:$0xff]   ;;  %v6497_v50 = vld [vmem:[#allocation8 + $0x18] sm:$0xff]   ;;  %v6498_v63 = vld [vmem:[#allocation8 + $0x50] sm:$0xff]  }
 0x4e6   :  { %v6011_v55 = vcombine.low %v4684_v36, %v4691_v57  ;;  %v6013_v27 = vcombine.high %v4684_v36, %v4691_v57  ;;  %v6015_v37 = vcombine.low %v4700_v1, %v4707_v58  ;;  %v6017_v20 = vcombine.high %v4700_v1, %v4707_v58  ;;  %6120 = vmatprep.subr.bf16.mxu0 %v6492_v52 }
 0x4e7   :  { %v6275_v23 = vpop.f32.mrf.mxu1  ;;  %v5099_v40 = vrot.slane %v5085_v51, %v6938_v18  ;;  %v5131_v62 = vrot.slane %v5117_v10, %v6938_v18  ;;  %v8164_v54 = vrot.slane %v5084_v53, %v6938_v18  ;;  %v8167_v42 = vrot.slane %v5116_v9, %v6938_v18 }
 0x4e8   :  { %v5164_v6 = vrot.slane %v6011_v55, %v6934_v14  ;;  %v5180_v24 = vrot.slane %v6013_v27, %v6934_v14  ;;  %v5196_v43 = vrot.slane %v6015_v37, %v6934_v14  ;;  %v5212_v45 = vrot.slane %v6017_v20, %v6934_v14 }
 0x4e9   :  { %v5150_v21 = vcombine.low %v5099_v40, %v5131_v62  ;;  %v5148_v28 = vcombine.low %v8164_v54, %v8167_v42  ;;  %v5149_v5 = vcombine.high %v8164_v54, %v8167_v42  ;;  %v5151_v22 = vcombine.high %v5099_v40, %v5131_v62  ;;  %6121 = vmatpush3.bf16.msra.mxu0 %v6493_v31 }
 0x4ea   :  { %v5221_v33 = vcombine.high %v5164_v6, %v5180_v24  ;;  %v5253_v41 = vcombine.high %v5196_v43, %v5212_v45  ;;  %v5220_v25 = vcombine.low %v5164_v6, %v5180_v24  ;;  %v5252_v61 = vcombine.low %v5196_v43, %v5212_v45  ;;  %6122 = vmatprep.subr.bf16.mxu0 %v6494_v7 }
 0x4eb   :  { %v4508_v8 = vcombine.low %v8125_v12, %v8133_v59  ;;  %v4509_v36 = vcombine.high %v8125_v12, %v8133_v59  ;;  %v4644_v20 = vcombine.low %v8127_v46, %v8143_v4  ;;  %v4645_v12 = vcombine.high %v8127_v46, %v8143_v4 }
 0x4ec   :  { %v5235_v2 = vrot.slane %v5221_v33, %v6938_v18  ;;  %v5267_v0 = vrot.slane %v5253_v41, %v6938_v18  ;;  %v8172_v49 = vrot.slane %v5220_v25, %v6938_v18  ;;  %v8175_v13 = vrot.slane %v5252_v61, %v6938_v18 }
 0x4ed   :  { %6123 = vmatpush3.bf16.msra.mxu0 %v6495_v39  ;;  %v4516_v10 = vrot.slane %v4508_v8, %v6934_v14  ;;  %v4523_v55 = vrot.slane %v4509_v36, %v6934_v14  ;;  %v4652_v46 = vrot.slane %v4644_v20, %v6934_v14  ;;  %v4659_v4 = vrot.slane %v4645_v12, %v6934_v14 }
 0x4ee   :  { %v5286_v29 = vcombine.low %v5235_v2, %v5267_v0  ;;  %v5285_v32 = vcombine.high %v8172_v49, %v8175_v13  ;;  %v5284_v16 = vcombine.low %v8172_v49, %v8175_v13  ;;  %v5287_v11 = vcombine.high %v5235_v2, %v5267_v0  ;;  %6124 = vmatprep.subr.bf16.mxu0 %v6496_v48 }
 0x4f0   :  { %v6359_v34 = vpack.i.bf16 %v5286_v29, %v5150_v21  ;;  %v6354_v56 = vpack.i.bf16 %v5285_v32, %v5149_v5  ;;  %v6364_v60 = vpack.i.bf16 %v5287_v11, %v5151_v22 }
 0x4f1   :  { %6125 = vmatpush3.bf16.msra.mxu0 %v6497_v50 }
 0x4f2   :  { %6360 = vrot.lane.b32.xlu1 %v6359_v34, %s6744_s28  ;;  %6355 = vrot.lane.b32.xlu0 %v6354_v56, %s6750_s3 }
 0x4f3   :  { %6126 = vmatprep.subr.bf16.mxu0 %v6498_v63 }
 0x4f6   :  { %6365 = vrot.lane.b32.xlu1 %v6364_v60, %s6749_s2  ;;  %v8188_v30 = vpop.f32.mrf.mxu0 }
 0x4f8   :  { %v6292_v38 = vpop.f32.mrf.mxu0 }
 0x4fa   :  { %v8190_v44 = vpop.f32.mrf.mxu0 }
 0x4fc   :  { %v6293_v3 = vpop.f32.mrf.mxu0 }
 0x515   :  { %v4117_v57 = vpop.f32.mrf.mxu1 }
 0x516   :  { %v4524_v1 = vcombine.low %v8145_v47, %v4117_v57  ;;  %v4525_v58 = vcombine.high %v8145_v47, %v4117_v57 }
 0x517   :  { %v6286_v51 = vpop.f32.mrf.mxu1 }
 0x518   :  { %v4532_v27 = vrot.slane %v4524_v1, %v6934_v14  ;;  %v4539_v37 = vrot.slane %v4525_v58, %v6934_v14 }
 0x519   :  { %v4120_v59 = vpop.f32.mrf.mxu1 }
 0x51a   :  { %v4572_v23 = vcombine.low %v4516_v10, %v4532_v27  ;;  %v4573_v6 = vcombine.high %v4516_v10, %v4532_v27  ;;  %v4588_v24 = vcombine.low %v4523_v55, %v4539_v37  ;;  %v4589_v47 = vcombine.high %v4523_v55, %v4539_v37 }
 0x51b   :  { %v4660_v43 = vcombine.low %v8155_v26, %v4120_v59  ;;  %v4661_v45 = vcombine.high %v8155_v26, %v4120_v59  ;;  %v6287_v40 = vpop.f32.mrf.mxu1 }
 0x51c   :  { %v4580_v62 = vrot.slane %v4572_v23, %v6938_v18  ;;  %v4587_v53 = vrot.slane %v4573_v6, %v6938_v18  ;;  %v4596_v9 = vrot.slane %v4588_v24, %v6938_v18  ;;  %v4603_v33 = vrot.slane %v4589_v47, %v6938_v18 }
 0x51d   :  { %v4668_v41 = vrot.slane %v4660_v43, %v6934_v14  ;;  %v4675_v25 = vrot.slane %v4661_v45, %v6934_v14  ;;  %v4249_v61 = vpop.f32.mrf.mxu0 }
 0x51e   :  { %v6004_v2 = vcombine.low %v4580_v62, %v4587_v53  ;;  %v6006_v26 = vcombine.high %v4580_v62, %v4587_v53  ;;  %v6008_v0 = vcombine.low %v4596_v9, %v4603_v33  ;;  %v6010_v19 = vcombine.high %v4596_v9, %v4603_v33  ;;  %v4205_v35 = vpop.f32.mrf.mxu1 }
 0x51f   :  { %v4708_v17 = vcombine.low %v4652_v46, %v4668_v41  ;;  %v4709_v21 = vcombine.high %v4652_v46, %v4668_v41  ;;  %v4724_v29 = vcombine.low %v4659_v4, %v4675_v25  ;;  %v4725_v5 = vcombine.high %v4659_v4, %v4675_v25  ;;  %v6304_v32 = vpop.f32.mrf.mxu0 }
 0x520   :  { %v5035_v15 = vrot.slane %v6004_v2, %v6934_v14  ;;  %v5051_v34 = vrot.slane %v6006_v26, %v6934_v14  ;;  %v5067_v56 = vrot.slane %v6008_v0, %v6934_v14  ;;  %v5083_v11 = vrot.slane %v6010_v19, %v6934_v14  ;;  %v6298_v52 = vpop.f32.mrf.mxu1 }
 0x521   :  { %v4716_v22 = vrot.slane %v4708_v17, %v6938_v18  ;;  %v4723_v31 = vrot.slane %v4709_v21, %v6938_v18  ;;  %v4732_v60 = vrot.slane %v4724_v29, %v6938_v18  ;;  %v4739_v7 = vrot.slane %v4725_v5, %v6938_v18  ;;  %v4252_v39 = vpop.f32.mrf.mxu0 }
 0x522   :  { %v4748_v38 = vcombine.low %v8188_v30, %v4249_v61  ;;  %v4749_v48 = vcombine.high %v8188_v30, %v4249_v61  ;;  %v4208_v50 = vpop.f32.mrf.mxu1  ;;  %v4884_v3 = vcombine.low %v8190_v44, %v4252_v39  ;;  %v4885_v63 = vcombine.high %v8190_v44, %v4252_v39 }
 0x523   :  { %v6012_v8 = vcombine.low %v4716_v22, %v4723_v31  ;;  %v6014_v36 = vcombine.high %v4716_v22, %v4723_v31  ;;  %v6016_v57 = vcombine.low %v4732_v60, %v4739_v7  ;;  %v6018_v1 = vcombine.high %v4732_v60, %v4739_v7  ;;  %v6305_v58 = vpop.f32.mrf.mxu0  ;;  %v6499_v60 = vld [vmem:[#allocation8 + $0x10] sm:$0xff]   ;;  %v6500_v7 = vld [vmem:[#allocation8 + $0x48] sm:$0xff]  }
 0x524   :  { %v4756_v51 = vrot.slane %v4748_v38, %v6934_v14  ;;  %v4763_v10 = vrot.slane %v4749_v48, %v6934_v14  ;;  %v8231_v55 = vrot.slane %v4884_v3, %v6934_v14  ;;  %v8234_v27 = vrot.slane %v4885_v63, %v6934_v14  ;;  %v6299_v30 = vpop.f32.mrf.mxu1  ;;  %6127 = vmatpush3.bf16.msra.mxu0 %v6499_v60 }
 0x525   :  { %v5171_v37 = vrot.slane %v6012_v8, %v6934_v14  ;;  %v5187_v44 = vrot.slane %v6014_v36, %v6934_v14  ;;  %v5203_v20 = vrot.slane %v6016_v57, %v6934_v14  ;;  %v5219_v12 = vrot.slane %v6018_v1, %v6934_v14  ;;  %6128 = vmatprep.subr.bf16.mxu0 %v6500_v7 }
 0x526   :  { %v4293_v59 = vpop.f32.mrf.mxu1  ;;  %v5101_v23 = vcombine.high %v5035_v15, %v5051_v34  ;;  %v5133_v6 = vcombine.high %v5067_v56, %v5083_v11  ;;  %v5100_v24 = vcombine.low %v5035_v15, %v5051_v34  ;;  %v5132_v47 = vcombine.low %v5067_v56, %v5083_v11 }
 0x527   :  { %v4764_v43 = vcombine.low %v4205_v35, %v4293_v59  ;;  %v4765_v45 = vcombine.high %v4205_v35, %v4293_v59  ;;  %v5237_v40 = vcombine.high %v5171_v37, %v5187_v44  ;;  %v5269_v62 = vcombine.high %v5203_v20, %v5219_v12 }
 0x528   :  { %v6310_v53 = vpop.f32.mrf.mxu1  ;;  %v8241_v9 = vrot.slane %v5101_v23, %v6938_v18  ;;  %v8244_v33 = vrot.slane %v5133_v6, %v6938_v18  ;;  %v8247_v46 = vrot.slane %v5100_v24, %v6938_v18  ;;  %v8250_v4 = vrot.slane %v5132_v47, %v6938_v18  ;;  %v6501_v6 = vld [vmem:[#allocation8 + $0x8] sm:$0xff]   ;;  %v6502_v24 = vld [vmem:[#allocation8 + $0x40] sm:$0xff]  }
 0x529   :  { %v4772_v41 = vrot.slane %v4764_v43, %v6934_v14  ;;  %v4779_v25 = vrot.slane %v4765_v45, %v6934_v14  ;;  %v8255_v61 = vrot.slane %v5237_v40, %v6938_v18  ;;  %v8258_v2 = vrot.slane %v5269_v62, %v6938_v18  ;;  %v8260_v0 = vpop.f32.mrf.mxu0  ;;  %6129 = vmatpush3.bf16.msra.mxu0 %v6501_v6 }
 0x52a   :  { %v4296_v26 = vpop.f32.mrf.mxu1  ;;  %v5155_v19 = vcombine.high %v8241_v9, %v8244_v33  ;;  %v5153_v35 = vcombine.high %v8247_v46, %v8250_v4  ;;  %v5236_v17 = vcombine.low %v5171_v37, %v5187_v44  ;;  %v5268_v21 = vcombine.low %v5203_v20, %v5219_v12  ;;  %6130 = vmatprep.subr.bf16.mxu0 %v6502_v24 }
 0x52b   :  { %v4812_v29 = vcombine.low %v4756_v51, %v4772_v41  ;;  %v4813_v5 = vcombine.high %v4756_v51, %v4772_v41  ;;  %v4828_v32 = vcombine.low %v4763_v10, %v4779_v25  ;;  %v4829_v15 = vcombine.high %v4763_v10, %v4779_v25  ;;  %v6316_v52 = vpop.f32.mrf.mxu0 }
 0x52c   :  { %v4900_v34 = vcombine.low %v4208_v50, %v4296_v26  ;;  %v4901_v56 = vcombine.high %v4208_v50, %v4296_v26  ;;  %v6311_v11 = vpop.f32.mrf.mxu1  ;;  %v5291_v22 = vcombine.high %v8255_v61, %v8258_v2  ;;  %v8269_v31 = vrot.slane %v5236_v17, %v6938_v18  ;;  %v6503_v26 = vld [vmem:[#allocation8] sm:$0xff]  }
 0x52d   :  { %v4820_v39 = vrot.slane %v4812_v29, %v6938_v18  ;;  %v4827_v38 = vrot.slane %v4813_v5, %v6938_v18  ;;  %v4836_v48 = vrot.slane %v4828_v32, %v6938_v18  ;;  %v4843_v3 = vrot.slane %v4829_v15, %v6938_v18  ;;  %v8277_v8 = vpop.f32.mrf.mxu0  ;;  %6131 = vmatpush3.bf16.msra.mxu0 %v6503_v26 }
 0x52e   :  { %v4908_v50 = vrot.slane %v4900_v34, %v6934_v14  ;;  %v4915_v63 = vrot.slane %v4901_v56, %v6934_v14  ;;  %v8279_v36 = vpop.f32.mrf.mxu1  ;;  %v6379_v57 = vpack.i.bf16 %v5291_v22, %v5155_v19  ;;  %v8282_v1 = vrot.slane %v5268_v21, %v6938_v18 }
 0x52f   :  { %v6019_v58 = vcombine.low %v4820_v39, %v4827_v38  ;;  %v6021_v51 = vcombine.high %v4820_v39, %v4827_v38  ;;  %v6023_v10 = vcombine.low %v4836_v48, %v4843_v3  ;;  %v6025_v30 = vcombine.high %v4836_v48, %v4843_v3  ;;  %v6317_v59 = vpop.f32.mrf.mxu0 }
 0x530   :  { %v4948_v37 = vcombine.low %v8231_v55, %v4908_v50  ;;  %v4949_v44 = vcombine.high %v8231_v55, %v4908_v50  ;;  %v4964_v20 = vcombine.low %v8234_v27, %v4915_v63  ;;  %v4965_v12 = vcombine.high %v8234_v27, %v4915_v63  ;;  %6380 = vrot.lane.b32.xlu0 %v6379_v57, %s6749_s2  ;;  %v6322_v23 = vpop.f32.mrf.mxu1 }
 0x531   :  { %v8290_v47 = vrot.slane %v6019_v58, %v6934_v14  ;;  %v8293_v43 = vrot.slane %v6021_v51, %v6934_v14  ;;  %v8296_v45 = vrot.slane %v6023_v10, %v6934_v14  ;;  %v8299_v55 = vrot.slane %v6025_v30, %v6934_v14  ;;  %v4425_v25 = vpop.f32.mrf.mxu0 }
 0x532   :  { %v4956_v27 = vrot.slane %v4948_v37, %v6938_v18  ;;  %v4963_v40 = vrot.slane %v4949_v44, %v6938_v18  ;;  %v4972_v62 = vrot.slane %v4964_v20, %v6938_v18  ;;  %v4979_v53 = vrot.slane %v4965_v12, %v6938_v18  ;;  %v4384_v41 = vpop.f32.mrf.mxu1 }
 0x533   :  { %v5289_v19 = vcombine.high %v8269_v31, %v8282_v1  ;;  %v4780_v17 = vcombine.low %v8260_v0, %v4425_v25  ;;  %v4781_v21 = vcombine.high %v8260_v0, %v4425_v25  ;;  %v5154_v29 = vcombine.low %v8241_v9, %v8244_v33  ;;  %v6328_v11 = vpop.f32.mrf.mxu0 }
 0x534   :  { %v6027_v5 = vcombine.low %v4956_v27, %v4963_v40  ;;  %v6029_v32 = vcombine.high %v4956_v27, %v4963_v40  ;;  %v6031_v15 = vcombine.low %v4972_v62, %v4979_v53  ;;  %v6033_v34 = vcombine.high %v4972_v62, %v4979_v53  ;;  %v6323_v56 = vpop.f32.mrf.mxu1 }
 0x535   :  { %v6369_v52 = vpack.i.bf16 %v5289_v19, %v5153_v35  ;;  %v4788_v22 = vrot.slane %v4780_v17, %v6934_v14  ;;  %v4795_v60 = vrot.slane %v4781_v21, %v6934_v14  ;;  %v5290_v0 = vcombine.low %v8255_v61, %v8258_v2  ;;  %v4428_v35 = vpop.f32.mrf.mxu0 }
 0x536   :  { %v8319_v9 = vrot.slane %v6027_v5, %v6934_v14  ;;  %v8322_v33 = vrot.slane %v6029_v32, %v6934_v14  ;;  %v8325_v7 = vrot.slane %v6031_v15, %v6934_v14  ;;  %v8328_v39 = vrot.slane %v6033_v34, %v6934_v14  ;;  %v4469_v38 = vpop.f32.mrf.mxu1 }
 0x537   :  { %6370 = vrot.lane.b32.xlu1 %v6369_v52, %s6750_s3  ;;  %v6374_v48 = vpack.i.bf16 %v5290_v0, %v5154_v29  ;;  %v4916_v61 = vcombine.low %v8277_v8, %v4428_v35  ;;  %v4917_v2 = vcombine.high %v8277_v8, %v4428_v35  ;;  %v4796_v3 = vcombine.low %v8279_v36, %v4469_v38  ;;  %v6329_v63 = vpop.f32.mrf.mxu0 }
 0x538   :  { %v4797_v50 = vcombine.high %v8279_v36, %v4469_v38  ;;  %v6334_v57 = vpop.f32.mrf.mxu1  ;;  %v5356_v58 = vcombine.low %v8290_v47, %v8293_v43  ;;  %v5388_v51 = vcombine.low %v8296_v45, %v8299_v55  ;;  %v5492_v10 = vcombine.low %v8319_v9, %v8322_v33 }
 0x539   :  { %v4924_v30 = vrot.slane %v4916_v61, %v6934_v14  ;;  %v4931_v37 = vrot.slane %v4917_v2, %v6934_v14  ;;  %v4804_v8 = vrot.slane %v4796_v3, %v6934_v14  ;;  %v5524_v36 = vcombine.low %v8325_v7, %v8328_v39 }
 0x53a   :  { %v4811_v44 = vrot.slane %v4797_v50, %v6934_v14  ;;  %v4472_v20 = vpop.f32.mrf.mxu1  ;;  %v8348_v12 = vrot.slane %v5356_v58, %v6938_v18  ;;  %v8351_v59 = vrot.slane %v5388_v51, %v6938_v18  ;;  %v8354_v23 = vrot.slane %v5492_v10, %v6938_v18 }
 0x53b   :  { %6375 = vrot.lane.b32.xlu1 %v6374_v48, %s6744_s28  ;;  %v4844_v6 = vcombine.low %v4788_v22, %v4804_v8  ;;  %v4845_v24 = vcombine.high %v4788_v22, %v4804_v8  ;;  %v4932_v27 = vcombine.low %v4384_v41, %v4472_v20  ;;  %v4933_v40 = vcombine.high %v4384_v41, %v4472_v20 }
 0x53c   :  { %v4860_v62 = vcombine.low %v4795_v60, %v4811_v44  ;;  %v4861_v53 = vcombine.high %v4795_v60, %v4811_v44  ;;  %v6335_v25 = vpop.f32.mrf.mxu1  ;;  %v5421_v26 = vcombine.high %v8348_v12, %v8351_v59  ;;  %v8360_v19 = vrot.slane %v5524_v36, %v6938_v18 }
 0x53d   :  { %v4852_v17 = vrot.slane %v4844_v6, %v6938_v18  ;;  %v4859_v21 = vrot.slane %v4845_v24, %v6938_v18  ;;  %v4940_v29 = vrot.slane %v4932_v27, %v6934_v14  ;;  %v4947_v5 = vrot.slane %v4933_v40, %v6934_v14 }
 0x53e   :  { %v4868_v32 = vrot.slane %v4860_v62, %v6938_v18  ;;  %v4875_v41 = vrot.slane %v4861_v53, %v6938_v18  ;;  %v5557_v15 = vcombine.high %v8354_v23, %v8360_v19  ;;  %v5357_v34 = vcombine.high %v8290_v47, %v8293_v43 }
 0x53f   :  { %v6020_v56 = vcombine.low %v4852_v17, %v4859_v21  ;;  %v6022_v11 = vcombine.high %v4852_v17, %v4859_v21  ;;  %v4980_v52 = vcombine.low %v4924_v30, %v4940_v29  ;;  %v4981_v22 = vcombine.high %v4924_v30, %v4940_v29 }
 0x540   :  { %v6024_v60 = vcombine.low %v4868_v32, %v4875_v41  ;;  %v6026_v0 = vcombine.high %v4868_v32, %v4875_v41  ;;  %v4996_v35 = vcombine.low %v4931_v37, %v4947_v5  ;;  %v4997_v38 = vcombine.high %v4931_v37, %v4947_v5 }
 0x541   :  { %v5307_v48 = vrot.slane %v6020_v56, %v6934_v14  ;;  %v5323_v61 = vrot.slane %v6022_v11, %v6934_v14  ;;  %v4988_v2 = vrot.slane %v4980_v52, %v6938_v18  ;;  %v4995_v3 = vrot.slane %v4981_v22, %v6938_v18 }
 0x542   :  { %v5339_v50 = vrot.slane %v6024_v60, %v6934_v14  ;;  %v5355_v47 = vrot.slane %v6026_v0, %v6934_v14  ;;  %v5004_v43 = vrot.slane %v4996_v35, %v6938_v18  ;;  %v5011_v63 = vrot.slane %v4997_v38, %v6938_v18 }
 0x543   :  { %v6028_v57 = vcombine.low %v4988_v2, %v4995_v3  ;;  %v6030_v58 = vcombine.high %v4988_v2, %v4995_v3  ;;  %v6384_v51 = vpack.i.bf16 %v5557_v15, %v5421_v26  ;;  %v5371_v10 = vrot.slane %v5357_v34, %v6938_v18 }
 0x544   :  { %v6032_v30 = vcombine.low %v5004_v43, %v5011_v63  ;;  %v6034_v37 = vcombine.high %v5004_v43, %v5011_v63  ;;  %v5389_v8 = vcombine.high %v8296_v45, %v8299_v55  ;;  %v5493_v36 = vcombine.high %v8319_v9, %v8322_v33 }
 0x545   :  { %v5443_v44 = vrot.slane %v6028_v57, %v6934_v14  ;;  %v5459_v20 = vrot.slane %v6030_v58, %v6934_v14  ;;  %6385 = vrot.lane.b32.xlu1 %v6384_v51, %s6750_s3  ;;  %v5525_v6 = vcombine.high %v8325_v7, %v8328_v39  ;;  %v5372_v24 = vcombine.low %v5307_v48, %v5323_v61 }
 0x546   :  { %v5475_v27 = vrot.slane %v6032_v30, %v6934_v14  ;;  %v5491_v40 = vrot.slane %v6034_v37, %v6934_v14  ;;  %v5403_v62 = vrot.slane %v5389_v8, %v6938_v18  ;;  %v5507_v45 = vrot.slane %v5493_v36, %v6938_v18 }
 0x547   :  { %v5539_v55 = vrot.slane %v5525_v6, %v6938_v18  ;;  %v8396_v9 = vrot.slane %v5372_v24, %v6938_v18  ;;  %v5404_v33 = vcombine.low %v5339_v50, %v5355_v47  ;;  %v5508_v53 = vcombine.low %v5443_v44, %v5459_v20 }
 0x548   :  { %v5422_v25 = vcombine.low %v5371_v10, %v5403_v62  ;;  %v5540_v26 = vcombine.low %v5475_v27, %v5491_v40  ;;  %v5373_v17 = vcombine.high %v5307_v48, %v5323_v61  ;;  %v5423_v39 = vcombine.high %v5371_v10, %v5403_v62 }
 0x549   :  { %v5558_v7 = vcombine.low %v5507_v45, %v5539_v55  ;;  %v8399_v21 = vrot.slane %v5404_v33, %v6938_v18  ;;  %v8402_v14 = vrot.slane %v5508_v53, %v6938_v18  ;;  %v5559_v29 = vcombine.high %v5507_v45, %v5539_v55 }
 0x54a   :  { %v8405_v5 = vrot.slane %v5540_v26, %v6938_v18  ;;  %v5405_v32 = vcombine.high %v5339_v50, %v5355_v47  ;;  %v5509_v41 = vcombine.high %v5443_v44, %v5459_v20  ;;  %v5387_v56 = vrot.slane %v5373_v17, %v6938_v18 }
 0x54b   :  { %v6389_v15 = vpack.i.bf16 %v5558_v7, %v5422_v25  ;;  %v5425_v34 = vcombine.high %v8396_v9, %v8399_v21  ;;  %v5541_v11 = vcombine.high %v5475_v27, %v5491_v40  ;;  %v5152_v0 = vcombine.low %v8247_v46, %v8250_v4 }
 0x54c   :  { %v5561_v52 = vcombine.high %v8402_v14, %v8405_v5  ;;  %v5419_v22 = vrot.slane %v5405_v32, %v6938_v18  ;;  %v5523_v60 = vrot.slane %v5509_v41, %v6938_v18  ;;  %v5288_v38 = vcombine.low %v8269_v31, %v8282_v1 }
 0x54d   :  { %6390 = vrot.lane.b32.xlu1 %v6389_v15, %s6744_s28  ;;  %v5555_v35 = vrot.slane %v5541_v11, %v6938_v18  ;;  %v5420_v48 = vcombine.low %v8348_v12, %v8351_v59  ;;  %v5556_v61 = vcombine.low %v8354_v23, %v8360_v19  ;;  %v5424_v3 = vcombine.low %v8396_v9, %v8399_v21  ;;  %v6035_v21 = vld [vmem:[%s8478_s4] ss:$0 sm:$0xff]  ;;  %s6712_s4 = scalar_lea.vmem %s5884_s18, 512 }
 0x54e   :  { %v6394_v2 = vpack.i.bf16 %v5561_v52, %v5425_v34  ;;  %v6409_v50 = vpack.i.bf16 %v5559_v29, %v5423_v39  ;;  %v5560_v46 = vcombine.low %v8402_v14, %v8405_v5  ;;  %v5426_v18 = vcombine.low %v5387_v56, %v5419_v22  ;;  %p6713_p6 = scmp.ne.s32.totalorder %s5884_s18, %s6712_s4  ;;  %p6718_p8 = scmp.lt.s32.totalorder %s6712_s4, %s6712_s4 }
 0x54f   :  { %v5562_v47 = vcombine.low %v5523_v60, %v5555_v35  ;;  %v5563_v31 = vcombine.high %v5523_v60, %v5555_v35  ;;  %v5427_v1 = vcombine.high %v5387_v56, %v5419_v22 }
 0x550   :  { %6395 = vrot.lane.b32.xlu0 %v6394_v2, %s6750_s3  ;;  %p6719_p9 = por %p6718_p8, %p6717_p7 }
 0x551   :  { %6410 = vrot.lane.b32.xlu1 %v6409_v50, %s6749_s2  ;;  %v6399_v4 = vpack.i.bf16 %v5562_v47, %v5426_v18  ;;  %v6404_v12 = vpack.i.bf16 %v5563_v31, %v5427_v1 }
 0x552   :  { %p6720_p10 = pnand %p6719_p9, %p6713_p6 }
 0x554   :  { %6400 = vrot.lane.b32.xlu0 %v6399_v4, %s6744_s28 }
 0x558   :  { %6405 = vrot.lane.b32.xlu0 %v6404_v12, %s6749_s2 }
 0x564   :  { %v6361_v59 = vpop.permute.xlu1 %6360  ;;  %v6356_v23 = vpop.permute.xlu0 %6355 }
 0x565   :  { %v6358_v19 = vunpack.i.h.bf16 %v6356_v23  ;;  %v6357_v43 = vunpack.i.l.bf16 %v6356_v23  ;;  %v6363_v63 = vunpack.i.h.bf16 %v6361_v59  ;;  %v6362_v57 = vunpack.i.l.bf16 %v6361_v59 }
 0x567   :  { %v5660_v58 = vsel %vm2650_vm1, %v5148_v28, %v6357_v43  ;;  %v5661_v51 = vsel %vm2650_vm1, %v5284_v16, %v6358_v19 }
 0x568   :  { %v6366_v10 = vpop.permute.xlu1 %6365  ;;  %v5665_v8 = vsel %vm5664_vm3, %v5660_v58, %v6362_v57  ;;  %v5666_v36 = vsel %vm5664_vm3, %v5661_v51, %v6363_v63 }
 0x569   :  { %v6368_v30 = vunpack.i.h.bf16 %v6366_v10  ;;  %v6367_v37 = vunpack.i.l.bf16 %v6366_v10 }
 0x56b   :  { %v5670_v44 = vsel %vm5669_vm4, %v5665_v8, %v6367_v37  ;;  %v5671_v54 = vsel %vm5669_vm4, %v5666_v36, %v6368_v30 }
 0x56c   :  { %v5686_v42 = vpack.c.bf16 %v5671_v54, %v5670_v44 }
 0x5a2   :  { %v6381_v49 = vpop.permute.xlu0 %6380 }
 0x5a3   :  { %v6383_v27 = vunpack.i.h.bf16 %v6381_v49  ;;  %v6382_v40 = vunpack.i.l.bf16 %v6381_v49 }
 0x5a9   :  { %v6371_v28 = vpop.permute.xlu1 %6370 }
 0x5aa   :  { %v6373_v20 = vunpack.i.h.bf16 %v6371_v28  ;;  %v6372_v6 = vunpack.i.l.bf16 %v6371_v28 }
 0x5ac   :  { %v5674_v62 = vsel %vm2650_vm1, %v5152_v0, %v6372_v6  ;;  %v5675_v45 = vsel %vm2650_vm1, %v5288_v38, %v6373_v20 }
 0x5ad   :  { %v6376_v13 = vpop.permute.xlu1 %6375 }
 0x5ae   :  { %v6378_v16 = vunpack.i.h.bf16 %v6376_v13  ;;  %v6377_v24 = vunpack.i.l.bf16 %v6376_v13 }
 0x5b0   :  { %v5678_v55 = vsel %vm5664_vm3, %v5674_v62, %v6377_v24  ;;  %v5679_v33 = vsel %vm5664_vm3, %v5675_v45, %v6378_v16 }
 0x5b1   :  { %v5682_v53 = vsel %vm5669_vm4, %v5678_v55, %v6382_v40  ;;  %v5683_v25 = vsel %vm5669_vm4, %v5679_v33, %v6383_v27 }
 0x5b2   :  { %v5687_v26 = vpack.c.bf16 %v5683_v25, %v5682_v53 }
 0x5b4   :  { %5857 = vmatprep.mubr.bf16.mxu0 %v5687_v26 }
 0x5b5   :  { %5858 = vmatmul.mubr.bf16.vlgmr.msra.gmra.mxu0 %v5686_v42 }
 0x5b7   :  { %v6386_v17 = vpop.permute.xlu1 %6385 }
 0x5b8   :  { %v6388_v39 = vunpack.i.h.bf16 %v6386_v17  ;;  %v6387_v29 = vunpack.i.l.bf16 %v6386_v17 }
 0x5ba   :  { %v5662_v56 = vsel %vm2650_vm1, %v5420_v48, %v6387_v29  ;;  %v5663_v11 = vsel %vm2650_vm1, %v5556_v61, %v6388_v39 }
 0x5bf   :  { %v6391_v7 = vpop.permute.xlu1 %6390 }
 0x5c0   :  { %v6393_v32 = vunpack.i.h.bf16 %v6391_v7  ;;  %v6392_v41 = vunpack.i.l.bf16 %v6391_v7 }
 0x5c2   :  { %v6396_v15 = vpop.permute.xlu0 %6395  ;;  %v5667_v60 = vsel %vm5664_vm3, %v5662_v56, %v6392_v41  ;;  %v5668_v0 = vsel %vm5664_vm3, %v5663_v11, %v6393_v32 }
 0x5c3   :  { %v6411_v34 = vpop.permute.xlu1 %6410  ;;  %v6398_v50 = vunpack.i.h.bf16 %v6396_v15  ;;  %v6397_v47 = vunpack.i.l.bf16 %v6396_v15 }
 0x5c4   :  { %v6413_v52 = vunpack.i.h.bf16 %v6411_v34  ;;  %v6412_v22 = vunpack.i.l.bf16 %v6411_v34 }
 0x5c5   :  { %v5676_v48 = vsel %vm2650_vm1, %v5424_v3, %v6397_v47  ;;  %v5677_v61 = vsel %vm2650_vm1, %v5560_v46, %v6398_v50 }
 0x5c6   :  { %v6401_v35 = vpop.permute.xlu0 %6400  ;;  %v5672_v38 = vsel %vm5669_vm4, %v5667_v60, %v6412_v22  ;;  %v5673_v2 = vsel %vm5669_vm4, %v5668_v0, %v6413_v52 }
 0x5c7   :  { %v5688_v18 = vpack.c.bf16 %v5673_v2, %v5672_v38  ;;  %v6403_v4 = vunpack.i.h.bf16 %v6401_v35  ;;  %v6402_v31 = vunpack.i.l.bf16 %v6401_v35 }
 0x5c9   :  { %v5680_v23 = vsel %vm5664_vm3, %v5676_v48, %v6402_v31  ;;  %v5681_v19 = vsel %vm5664_vm3, %v5677_v61, %v6403_v4 }
 0x5ca   :  { %v6406_v1 = vpop.permute.xlu0 %6405 }
 0x5cb   :  { %v6408_v12 = vunpack.i.h.bf16 %v6406_v1  ;;  %v6407_v59 = vunpack.i.l.bf16 %v6406_v1 }
 0x5cd   :  { %v5684_v43 = vsel %vm5669_vm4, %v5680_v23, %v6407_v59  ;;  %v5685_v63 = vsel %vm5669_vm4, %v5681_v19, %v6408_v12 }
 0x5ce   :  { %v5689_v57 = vpack.c.bf16 %v5685_v63, %v5684_v43 }
 0x5d0   :  { %5865 = vmatprep.mubr.bf16.mxu0 %v5689_v57 }
 0x5d1   :  { %5866 = vmatmul.mubr.bf16.gmra.mxu0 %v5688_v18 }
 0x675   :  { %v6132_v9 = vpop.f32.mrf.mxu0 }
 0x677   :  { %v6133_v14 = vpop.f32.mrf.mxu0 }
 0x678   :  { %v6134_v5 = vadd.f32 %v6133_v14, %v6132_v9 }
 0x679   :  { %v6135_v3 = vpop.f32.mrf.mxu0 }
 0x67a   :  { %v5860_v46 = vadd.f32 %v6134_v5, %v6035_v21 }
 0x67b   :  { %v6136_v58 = vpop.f32.mrf.mxu0 }
 0x67c   :  { %5874 = vst [vmem:[#allocation10] sm:$0xff] %v5860_v46  ;;  %v6137_v51 = vadd.f32 %v6136_v58, %v6135_v3 }
 0x67e   :  { %v5863_v10 = vadd.f32 %v6137_v51, %v6035_v21 }
 0x680   :  { %5875 = vst [vmem:[#allocation10 + $0x8] sm:$0xff] %v5863_v10 }
 0x691   :  { %v6138_v30 = vpop.f32.mrf.mxu0 }
 0x693   :  { %v6139_v37 = vpop.f32.mrf.mxu0 }
 0x694   :  { %v6140_v8 = vadd.f32 %v6139_v37, %v6138_v30 }
 0x695   :  { %v6141_v36 = vpop.f32.mrf.mxu0 }
 0x696   :  { %v5868_v44 = vadd.f32 %v6140_v8, %v6035_v21 }
 0x697   :  { %v6142_v54 = vpop.f32.mrf.mxu0 }
 0x698   :  { %5876 = vst [vmem:[#allocation10 + $0x10] sm:$0xff] %v5868_v44  ;;  %v6143_v42 = vadd.f32 %v6142_v54, %v6141_v36 }
 0x69a   :  { %v5871_v28 = vadd.f32 %v6143_v42, %v6035_v21 }
 0x69c   :  { %5877 = vst [vmem:[#allocation10 + $0x18] sm:$0xff] %v5871_v28 }
 0x69d   :  { %6723 = shalt.err (!%p6720_p10)
}
 0x69e   :  { %s6756_s19 = smov 128   ;;  %s6757_s20 = smov 8  }
 0x69f   :  { %5889 = dma.vmem_to_hbm [thread:$0]  %s5884_s18, 512, %s8479_s5, [#allocation4], %s6756_s19, %s6756_s19, %s6757_s20  }
 0x6a0   :  { %6738 = dma.done.wait [#allocation4], 512  }
 0x6a1   :  { %6739 = vsyncadd [#allocation4], 4294966784 }
 0x6a2   :  { %5893 = vsyncpa [#allocation3], 1 }
 0x6a3   :  { %5894 = vsyncpa [#allocation6], 1 }
 0x6a4   :  { %5895 = vsyncpa [#allocation9], 1 }
 0x6a5   :  { %5896 = vsyncpa [#allocation4], 1 }

</bundles_post_ra>
